<compile_context>
chip_gen: v7x
topology: tpu7x:2x2x1
jax: 0.10.0
libtpu: 0.0.40
codegen_flags: <defaults>
</compile_context>

<pallas_src>
import math

import jax
import jax.numpy as jnp
from jax.experimental import pallas as pl
from jax.experimental.pallas import tpu as pltpu

SR = 0.5                                   # config.sr
BN_SCALE = 1.0 / math.sqrt(1.0 + 1e-5)     # BatchNorm2d eval with default stats
IN_EPS = 1e-5                              # InstanceNorm2d default eps
CIN_PAD = 16                               # pad tiny Cin (4/6) to a bf16 sublane tile


# --------------------------------------------------------------------------
# Pallas kernels (channel-major, lane-dense: feature maps are (C, N))
# --------------------------------------------------------------------------
def _conv_heads_kernel(x_ref, w_ref, b_ref, hw_ref, hb_ref, o_ref):
    """Fused 1x1 conv (+folded BN) -> ReLU -> fused [linear_0 | linear_1] heads.

    x_ref : (1, CIN_PAD, TN) bf16   point tile, channels on sublanes
    w_ref : (Cout, CIN_PAD)  bf16   conv weight (BN-eval scale folded in)
    b_ref : (Cout, 1)        f32    conv bias   (BN-eval scale folded in)
    hw_ref: (2, Cout)        bf16   stacked linear_0/linear_1 weights
    hb_ref: (2, 1)           f32    stacked linear_0/linear_1 biases
    o_ref : (1, 2, TN)       f32    lane-dense logits
    """
    z = jnp.dot(w_ref[...], x_ref[0],
                preferred_element_type=jnp.float32) + b_ref[...]
    z = jnp.maximum(z, 0.0)                                     # (Cout, TN)
    o_ref[0] = jnp.dot(hw_ref[...], z.astype(hw_ref.dtype),
                       preferred_element_type=jnp.float32) + hb_ref[...]


def _resnet_w8_kernel(x6_ref, x4_ref, wc_ref, bc_ref, w1_ref, b1_ref,
                      w2_ref, b2_ref, hw_ref, hb_ref, w2o_ref, xwx_ref):
    """Fused stem conv (recompute at downsampled points) + ResNet_Block(pre=False)
    + linear_2 head + weighted_8points up to the 9x9 XwX Gram matrix.

    x6_ref: (1, CIN_PAD, k) bf16   gathered 6-channel input (padded)
    x4_ref: (1, 4, k)       f32    gathered correspondences (full precision)
    outputs: w2 logits (1, 2, k) f32 and XwX (1, 9, 9) f32.
    """

    def inorm(z):  # InstanceNorm over points, then BN-eval scale (shift = 0)
        mu = jnp.mean(z, axis=1, keepdims=True)
        var = jnp.mean(jnp.square(z - mu), axis=1, keepdims=True)
        return (z - mu) * jax.lax.rsqrt(var + IN_EPS) * BN_SCALE

    # Recompute the pointwise stem conv at the k downsampled points: identical
    # to gathering the full-resolution feature map (1x1 conv is pointwise,
    # embeds are identity) but never writes a (B,128,N) feature map to HBM.
    z0 = jnp.dot(wc_ref[...], x6_ref[0],
                 preferred_element_type=jnp.float32) + bc_ref[...]
    z0 = jnp.maximum(z0, 0.0)                                   # (C, k)

    # ResNet_Block(pre=False): conv->IN->BN->ReLU->conv->IN->BN->(+x)->ReLU
    z = jnp.dot(w1_ref[...], z0.astype(w1_ref.dtype),
                preferred_element_type=jnp.float32) + b1_ref[...]
    z = jnp.maximum(inorm(z), 0.0)
    z = jnp.dot(w2_ref[...], z.astype(w2_ref.dtype),
                preferred_element_type=jnp.float32) + b2_ref[...]
    z = jnp.maximum(inorm(z) + z0, 0.0)

    lg = jnp.dot(hw_ref[...], z.astype(hw_ref.dtype),
                 preferred_element_type=jnp.float32) + hb_ref[...]   # (2, k)
    w2o_ref[0] = lg

    # weighted_8points up to XwX (coordinates kept in f32).
    xx = x4_ref[0]                                              # (4, k)
    mask = jax.nn.sigmoid(lg[0:1, :])
    w = jnp.exp(lg[1:2, :]) * mask
    w = w / (jnp.sum(w, axis=1, keepdims=True) + 1e-5)          # (1, k)
    c0, c1, c2, c3 = xx[0:1, :], xx[1:2, :], xx[2:3, :], xx[3:4, :]
    X = jnp.concatenate(
        [c2 * c0, c2 * c1, c2, c3 * c0, c3 * c1, c3, c0, c1,
         jnp.ones_like(c0)], axis=0)                            # (9, k)
    wX = w * X
    # XwX[i, j] = sum_p w_p X[i, p] X[j, p]  (contract over the point/lane axis)
    xwx_ref[0] = jax.lax.dot_general(wX, X, (((1,), (1,)), ((), ())),
                                     preferred_element_type=jnp.float32)


def _episym_kernel(p1_ref, p2_ref, e_ref, o_ref):
    """Symmetric epipolar distance; points lane-dense, e broadcast in-kernel."""
    p1 = p1_ref[0]                                  # (2, N)
    p2 = p2_ref[0]                                  # (2, N)
    e = e_ref[0]                                    # (1, 9)
    x1, y1 = p1[0:1, :], p1[1:2, :]
    x2, y2 = p2[0:1, :], p2[1:2, :]
    f0, f1, f2 = e[:, 0:1], e[:, 1:2], e[:, 2:3]
    f3, f4, f5 = e[:, 3:4], e[:, 4:5], e[:, 5:6]
    f6, f7, f8 = e[:, 6:7], e[:, 7:8], e[:, 8:9]
    Fx1_0 = f0 * x1 + f1 * y1 + f2
    Fx1_1 = f3 * x1 + f4 * y1 + f5
    Fx1_2 = f6 * x1 + f7 * y1 + f8
    Ftx2_0 = f0 * x2 + f3 * y2 + f6
    Ftx2_1 = f1 * x2 + f4 * y2 + f7
    x2Fx1 = x2 * Fx1_0 + y2 * Fx1_1 + Fx1_2
    o_ref[0] = jnp.square(x2Fx1) * (
        1.0 / (jnp.square(Fx1_0) + jnp.square(Fx1_1) + 1e-15)
        + 1.0 / (jnp.square(Ftx2_0) + jnp.square(Ftx2_1) + 1e-15))


# --------------------------------------------------------------------------
# Wrappers around pallas_call
# --------------------------------------------------------------------------
def _choose_tile(n, cap=1024):
    """Largest multiple of 128 dividing n (<= cap); else the full extent."""
    for t in (1024, 512, 256, 128):
        if t <= cap and n % t == 0:
            return t
    return n


def conv_heads(x_t, w, b, hw, hb):
    """x_t: (B, Cin, N) -> fused [linear_0 | linear_1] logits (B, 2, N).

    Fuses Conv2d(1x1)+BN(eval, folded)+ReLU with both Cout=1 logit heads in a
    single pass over the activations; N is tiled and both grid axes are
    'parallel' (megacore-shardable), bf16 MXU operands, f32 accumulation.
    """
    B, cin, N = x_t.shape
    cout = w.shape[0]
    xp = jnp.pad(x_t, ((0, 0), (0, CIN_PAD - cin), (0, 0))).astype(jnp.bfloat16)
    wp = jnp.pad(w, ((0, 0), (0, CIN_PAD - cin))).astype(jnp.bfloat16)
    hwp = hw.astype(jnp.bfloat16)
    tn = _choose_tile(N)
    grid = (B, N // tn)

    return pl.pallas_call(
        _conv_heads_kernel,
        out_shape=jax.ShapeDtypeStruct((B, 2, N), jnp.float32),
        grid=grid,
        in_specs=[
            pl.BlockSpec((1, CIN_PAD, tn), lambda bi, ni: (bi, 0, ni)),
            pl.BlockSpec((cout, CIN_PAD), lambda bi, ni: (0, 0)),
            pl.BlockSpec((cout, 1), lambda bi, ni: (0, 0)),
            pl.BlockSpec((2, cout), lambda bi, ni: (0, 0)),
            pl.BlockSpec((2, 1), lambda bi, ni: (0, 0)),
        ],
        out_specs=pl.BlockSpec((1, 2, tn), lambda bi, ni: (bi, 0, ni)),
        compiler_params=pltpu.CompilerParams(
            dimension_semantics=("parallel", "parallel")),
    )(xp, wp, b, hwp, hb)


def resnet_w8(xc_ds, conv_p, res_p):
    """xc_ds: (B, k, C) gathered raw input -> (w2 (B, 2, k), XwX (B, 9, 9)).

    One fused kernel per batch: stem conv recompute + ResNet_Block + linear_2
    head + weighted_8points Gram matrix.
    """
    B, k, C = xc_ds.shape
    wc, bc = conv_p
    x_t = jnp.transpose(xc_ds, (0, 2, 1))                       # (B, C, k) f32
    x6p = jnp.pad(x_t, ((0, 0), (0, CIN_PAD - C), (0, 0))).astype(jnp.bfloat16)
    x4 = x_t[:, :4, :]                                           # (B, 4, k) f32
    wcp = jnp.pad(wc, ((0, 0), (0, CIN_PAD - C))).astype(jnp.bfloat16)
    Cf = res_p['w1'].shape[0]                                    # 128

    mat = lambda: pl.BlockSpec((Cf, Cf), lambda b: (0, 0))
    vec = lambda: pl.BlockSpec((Cf, 1), lambda b: (0, 0))
    return pl.pallas_call(
        _resnet_w8_kernel,
        out_shape=(jax.ShapeDtypeStruct((B, 2, k), jnp.float32),
                   jax.ShapeDtypeStruct((B, 9, 9), jnp.float32)),
        grid=(B,),
        in_specs=[
            pl.BlockSpec((1, CIN_PAD, k), lambda b: (b, 0, 0)),
            pl.BlockSpec((1, 4, k), lambda b: (b, 0, 0)),
            pl.BlockSpec((Cf, CIN_PAD), lambda b: (0, 0)),
            vec(),
            mat(), vec(), mat(), vec(),
            pl.BlockSpec((2, Cf), lambda b: (0, 0)),
            pl.BlockSpec((2, 1), lambda b: (0, 0)),
        ],
        out_specs=(pl.BlockSpec((1, 2, k), lambda b: (b, 0, 0)),
                   pl.BlockSpec((1, 9, 9), lambda b: (b, 0, 0))),
        compiler_params=pltpu.CompilerParams(dimension_semantics=("parallel",)),
    )(x6p, x4, wcp, bc,
      res_p['w1'].astype(jnp.bfloat16), res_p['b1'],
      res_p['w2'].astype(jnp.bfloat16), res_p['b2'],
      res_p['hw'].astype(jnp.bfloat16), res_p['hb'])


def e_hat_from_xwx(xwx):
    """XwX (B, 9, 9) -> unit-norm eigenvector of the smallest eigenvalue."""
    # TODO(synk): batch_symeig (torch.linalg.eigh) has no Pallas TPU
    # equivalent; the 9x9 eigendecomposition runs in XLA via jnp.linalg.eigh.
    _, v = jnp.linalg.eigh(xwx)              # ascending eigenvalues
    e_hat = v[:, :, 0]
    return e_hat / jnp.linalg.norm(e_hat, axis=1, keepdims=True)


def batch_episym(pts1, pts2, e_hat):
    """pts1, pts2: (B, N, 2); e_hat: (B, 9) -> (B, N)."""
    # TODO(synk): batch_episym's source was not provided; the standard OANet
    # symmetric epipolar distance formula is used here.
    B, N, _ = pts1.shape
    p1t = jnp.transpose(pts1, (0, 2, 1))     # (B, 2, N) lane-dense
    p2t = jnp.transpose(pts2, (0, 2, 1))
    e3 = e_hat[:, None, :]                   # (B, 1, 9), broadcast in-kernel
    ys = pl.pallas_call(
        _episym_kernel,
        out_shape=jax.ShapeDtypeStruct((B, 1, N), jnp.float32),
        grid=(B,),
        in_specs=[pl.BlockSpec((1, 2, N), lambda b: (b, 0, 0)),
                  pl.BlockSpec((1, 2, N), lambda b: (b, 0, 0)),
                  pl.BlockSpec((1, 1, 9), lambda b: (b, 0, 0))],
        out_specs=pl.BlockSpec((1, 1, N), lambda b: (b, 0, 0)),
        compiler_params=pltpu.CompilerParams(dimension_semantics=("parallel",)),
    )(p1t, p2t, e3)
    return ys[:, 0, :]


# --------------------------------------------------------------------------
# Module forward (glue in plain JAX, hot paths in Pallas)
# --------------------------------------------------------------------------
def pruning_block_forward(p, x, y, *, predict, sr):
    """x: (B, 1, N, C_last); y: (B, N)."""
    B, _, N, C = x.shape
    x_t = jnp.transpose(x[:, 0, :, :], (0, 2, 1))          # (B, C_last, N)
    # TODO(synk): SCTBlock / DATBlock definitions (embed_0 / embed_1) were not
    # provided with the module; they are treated as identity, so linear_0 and
    # linear_1 act on the same conv output and are fused into one head matmul.
    heads = conv_heads(x_t, *p['conv'], *p['lin01'])        # (B, 2, N)
    w0 = heads[:, 0, :]
    w1 = heads[:, 1, :]

    k = int(N * sr)
    # TODO(synk): torch.sort (descending top-k) has no Pallas TPU equivalent;
    # the sort and the index gathers run in XLA.
    idx = jnp.argsort(-w1, axis=-1)[:, :k]
    w1_ds = jnp.take_along_axis(w1, idx, axis=-1)
    w0_ds = jnp.take_along_axis(w0, idx, axis=-1)
    y_ds = jnp.take_along_axis(y, idx, axis=-1)
    xc_ds = jnp.take_along_axis(
        x[:, 0, :, :], jnp.broadcast_to(idx[:, :, None], (B, k, C)), axis=1)
    x_ds = xc_ds[:, None, :, :4]                            # (B, 1, k, 4)

    if not predict:
        return x_ds, y_ds, [w0, w1], [w0_ds, w1_ds]

    # Fused stem-conv recompute + ResNet_Block + linear_2 + weighted_8points.
    w2, xwx = resnet_w8(xc_ds, p['conv'], p['res'])         # (B,2,k), (B,9,9)
    e_hat = e_hat_from_xwx(xwx)
    return x_ds, y_ds, [w0, w1, w2[:, 0, :]], [w0_ds, w1_ds], e_hat


def ptcnet_forward(params, x, y, sr=SR):
    B, _, N, _ = x.shape
    x1, y1, ws0, w_ds0 = pruning_block_forward(params['ds_0'], x, y,
                                               predict=False, sr=sr)
    w0d = jnp.maximum(jnp.tanh(w_ds0[0]), 0.0).reshape(B, 1, -1, 1)
    w1d = jnp.maximum(jnp.tanh(w_ds0[1]), 0.0).reshape(B, 1, -1, 1)
    x_ = jnp.concatenate([x1, w0d, w1d], axis=-1)           # (B, 1, N//2, 6)
    x2, y2, ws1, w_ds1, e_hat = pruning_block_forward(params['ds_1'], x_, y1,
                                                      predict=True, sr=sr)
    y_hat = batch_episym(x[:, 0, :, :2], x[:, 0, :, 2:4], e_hat)
    return ws0 + ws1, [y, y, y1, y1, y2], [e_hat], y_hat


# --------------------------------------------------------------------------
# Deterministic parameter init (synthetic, torch-like Conv2d/BN defaults)
# --------------------------------------------------------------------------
def _conv_init(key, cin, cout):
    kw, kb = jax.random.split(key)
    bound = 1.0 / math.sqrt(cin)
    w = jax.random.uniform(kw, (cout, cin), jnp.float32, -bound, bound)
    b = jax.random.uniform(kb, (cout, 1), jnp.float32, -bound, bound)
    return w, b


def _conv_bn_fold(key, cin, cout):
    # Conv2d followed by BatchNorm2d in eval mode with default stats:
    # scale = 1/sqrt(1+eps), shift = 0  ->  fold into weight and bias.
    w, b = _conv_init(key, cin, cout)
    return w * BN_SCALE, b * BN_SCALE


def _heads_init(k0, k1, cin):
    w0, b0 = _conv_init(k0, cin, 1)
    w1, b1 = _conv_init(k1, cin, 1)
    return jnp.concatenate([w0, w1], axis=0), jnp.concatenate([b0, b1], axis=0)


def init_params(key):
    ks = jax.random.split(key, 9)
    p = {}
    p['ds_0'] = dict(conv=_conv_bn_fold(ks[0], 4, 128),
                     lin01=_heads_init(ks[1], ks[2], 128))
    r1w, r1b = _conv_init(ks[6], 128, 128)
    r2w, r2b = _conv_init(ks[7], 128, 128)
    l2w, l2b = _conv_init(ks[8], 128, 2)
    p['ds_1'] = dict(conv=_conv_bn_fold(ks[3], 6, 128),
                     lin01=_heads_init(ks[4], ks[5], 128),
                     res=dict(w1=r1w, b1=r1b, w2=r2w, b2=r2b,
                              hw=l2w, hb=l2b))
    return p


# --------------------------------------------------------------------------
if __name__ == "__main__":
    B, N = 2, 512
    key = jax.random.PRNGKey(0)
    kx, ky, kp = jax.random.split(key, 3)
    x = jax.random.normal(kx, (B, 1, N, 4), jnp.float32)    # correspondences
    y = jax.random.normal(ky, (B, N), jnp.float32)          # per-point labels
    params = init_params(kp)

    fwd = jax.jit(ptcnet_forward)
    outs = fwd(params, x, y)
    jax.block_until_ready(outs)
    print("KERNEL_OK")
</pallas_src>

<mosaic_0001>
module attributes {stable_mosaic.version = 11 : i64} {
  func.func private @main(%arg0: i32) attributes {dimension_semantics = [#tpu.dimension_semantics<core_parallel>], iteration_bounds = array<i64: 2>, tpu.core_type = #tpu.core_type<sc_scalar_subcore>, window_params = []} {
    return
  }
}

module attributes {stable_mosaic.version = 11 : i64} {
  func.func private @main(%arg0: i32) attributes {dimension_semantics = [#tpu.dimension_semantics<core_parallel>], iteration_bounds = array<i64: 2>, tpu.core_type = #tpu.core_type<sc_scalar_subcore>, window_params = []} {
    return
  }
}

module attributes {stable_mosaic.version = 11 : i64} {
  func.func @_conv_heads_kernel(%arg0: i32, %arg1: i32, %arg2: memref<1x16x512xbf16, #tpu.memory_space<vmem>>, %arg3: memref<128x16xbf16, #tpu.memory_space<vmem>>, %arg4: memref<128x1xf32, #tpu.memory_space<vmem>>, %arg5: memref<2x128xbf16, #tpu.memory_space<vmem>>, %arg6: memref<2x1xf32, #tpu.memory_space<vmem>>, %arg7: memref<1x2x512xf32, #tpu.memory_space<vmem>>) attributes {dimension_semantics = [#tpu.dimension_semantics<parallel>, #tpu.dimension_semantics<parallel>], iteration_bounds = array<i64: 2, 1>, scalar_prefetch = 0 : i64, scratch_operands = 0 : i64, tpu.core_type = #tpu.core_type<tc>, window_params = [{transform_indices = @transform_0, window_bounds = array<i64: 1, 16, 512>}, {pipeline_mode = #tpu.pipeline_mode<synchronous>, transform_indices = @transform_1, window_bounds = array<i64: 128, 16>}, {pipeline_mode = #tpu.pipeline_mode<synchronous>, transform_indices = @transform_2, window_bounds = array<i64: 128, 1>}, {pipeline_mode = #tpu.pipeline_mode<synchronous>, transform_indices = @transform_3, window_bounds = array<i64: 2, 128>}, {pipeline_mode = #tpu.pipeline_mode<synchronous>, transform_indices = @transform_4, window_bounds = array<i64: 2, 1>}, {transform_indices = @transform_5, window_bounds = array<i64: 1, 2, 512>}]} {
    %c0 = arith.constant 0 : index
    %c0_0 = arith.constant 0 : index
    %0 = vector.load %arg3[%c0, %c0_0] : memref<128x16xbf16, #tpu.memory_space<vmem>>, vector<128x16xbf16>
    %c0_1 = arith.constant 0 : index
    %c0_2 = arith.constant 0 : index
    %c0_3 = arith.constant 0 : index
    %1 = vector.load %arg2[%c0_1, %c0_2, %c0_3] : memref<1x16x512xbf16, #tpu.memory_space<vmem>>, vector<1x16x512xbf16>
    %2 = vector.shape_cast %1 : vector<1x16x512xbf16> to vector<16x512xbf16>
    %cst = arith.constant dense<0.000000e+00> : vector<128x512xf32>
    %3 = tpu.matmul %0, %2, %cst {dimension_numbers = #tpu.dot_dimension_numbers<[1], [0], [0], [1], [0, 0, 1, 1], [], []>} : vector<128x16xbf16>, vector<16x512xbf16>, vector<128x512xf32> -> vector<128x512xf32>
    %c0_4 = arith.constant 0 : index
    %c0_5 = arith.constant 0 : index
    %4 = vector.load %arg4[%c0_4, %c0_5] : memref<128x1xf32, #tpu.memory_space<vmem>>, vector<128x1xf32>
    %5 = vector.broadcast %4 : vector<128x1xf32> to vector<128x512xf32>
    %6 = arith.addf %3, %5 : vector<128x512xf32>
    %cst_6 = arith.constant 0.000000e+00 : f32
    %7 = vector.broadcast %cst_6 : f32 to vector<128x512xf32>
    %8 = arith.maximumf %6, %7 : vector<128x512xf32>
    %c0_7 = arith.constant 0 : index
    %c0_8 = arith.constant 0 : index
    %9 = vector.load %arg5[%c0_7, %c0_8] : memref<2x128xbf16, #tpu.memory_space<vmem>>, vector<2x128xbf16>
    %10 = arith.truncf %8 : vector<128x512xf32> to vector<128x512xbf16>
    %cst_9 = arith.constant dense<0.000000e+00> : vector<2x512xf32>
    %11 = tpu.matmul %9, %10, %cst_9 {dimension_numbers = #tpu.dot_dimension_numbers<[1], [0], [0], [1], [0, 0, 1, 1], [], []>} : vector<2x128xbf16>, vector<128x512xbf16>, vector<2x512xf32> -> vector<2x512xf32>
    %c0_10 = arith.constant 0 : index
    %c0_11 = arith.constant 0 : index
    %12 = vector.load %arg6[%c0_10, %c0_11] : memref<2x1xf32, #tpu.memory_space<vmem>>, vector<2x1xf32>
    %13 = vector.broadcast %12 : vector<2x1xf32> to vector<2x512xf32>
    %14 = arith.addf %11, %13 : vector<2x512xf32>
    %c0_12 = arith.constant 0 : index
    %c0_13 = arith.constant 0 : index
    %c0_14 = arith.constant 0 : index
    %15 = vector.load %arg7[%c0_12, %c0_13, %c0_14] : memref<1x2x512xf32, #tpu.memory_space<vmem>>, vector<1x2x512xf32>
    %16 = vector.shape_cast %15 : vector<1x2x512xf32> to vector<2x512xf32>
    %17 = vector.shape_cast %14 : vector<2x512xf32> to vector<1x2x512xf32>
    tpu.vector_store %arg7[%c0_12, %c0_13, %c0_14], %17 {strides = array<i32>} : memref<1x2x512xf32, #tpu.memory_space<vmem>>, vector<1x2x512xf32>,
    return
  }
  func.func @transform_0(%arg0: i32, %arg1: i32) -> (i32, i32, i32) {
    %c0_i32 = arith.constant 0 : i32
    %c0_i32_0 = arith.constant 0 : i32
    return %arg0, %c0_i32, %arg1 : i32, i32, i32
  }
  func.func @transform_1(%arg0: i32, %arg1: i32) -> (i32, i32) {
    %c0_i32 = arith.constant 0 : i32
    %c0_i32_0 = arith.constant 0 : i32
    %c0_i32_1 = arith.constant 0 : i32
    return %c0_i32, %c0_i32_0 : i32, i32
  }
  func.func @transform_2(%arg0: i32, %arg1: i32) -> (i32, i32) {
    %c0_i32 = arith.constant 0 : i32
    %c0_i32_0 = arith.constant 0 : i32
    %c0_i32_1 = arith.constant 0 : i32
    return %c0_i32, %c0_i32_0 : i32, i32
  }
  func.func @transform_3(%arg0: i32, %arg1: i32) -> (i32, i32) {
    %c0_i32 = arith.constant 0 : i32
    %c0_i32_0 = arith.constant 0 : i32
    %c0_i32_1 = arith.constant 0 : i32
    return %c0_i32, %c0_i32_0 : i32, i32
  }
  func.func @transform_4(%arg0: i32, %arg1: i32) -> (i32, i32) {
    %c0_i32 = arith.constant 0 : i32
    %c0_i32_0 = arith.constant 0 : i32
    %c0_i32_1 = arith.constant 0 : i32
    return %c0_i32, %c0_i32_0 : i32, i32
  }
  func.func @transform_5(%arg0: i32, %arg1: i32) -> (i32, i32, i32) {
    %c0_i32 = arith.constant 0 : i32
    %c0_i32_0 = arith.constant 0 : i32
    return %arg0, %c0_i32, %arg1 : i32, i32, i32
  }
}

module attributes {stable_mosaic.version = 11 : i64} {
  func.func @_conv_heads_kernel(%arg0: i32, %arg1: i32, %arg2: memref<1x16x256xbf16, #tpu.memory_space<vmem>>, %arg3: memref<128x16xbf16, #tpu.memory_space<vmem>>, %arg4: memref<128x1xf32, #tpu.memory_space<vmem>>, %arg5: memref<2x128xbf16, #tpu.memory_space<vmem>>, %arg6: memref<2x1xf32, #tpu.memory_space<vmem>>, %arg7: memref<1x2x256xf32, #tpu.memory_space<vmem>>) attributes {dimension_semantics = [#tpu.dimension_semantics<parallel>, #tpu.dimension_semantics<parallel>], iteration_bounds = array<i64: 2, 1>, scalar_prefetch = 0 : i64, scratch_operands = 0 : i64, tpu.core_type = #tpu.core_type<tc>, window_params = [{transform_indices = @transform_0, window_bounds = array<i64: 1, 16, 256>}, {pipeline_mode = #tpu.pipeline_mode<synchronous>, transform_indices = @transform_1, window_bounds = array<i64: 128, 16>}, {pipeline_mode = #tpu.pipeline_mode<synchronous>, transform_indices = @transform_2, window_bounds = array<i64: 128, 1>}, {pipeline_mode = #tpu.pipeline_mode<synchronous>, transform_indices = @transform_3, window_bounds = array<i64: 2, 128>}, {pipeline_mode = #tpu.pipeline_mode<synchronous>, transform_indices = @transform_4, window_bounds = array<i64: 2, 1>}, {transform_indices = @transform_5, window_bounds = array<i64: 1, 2, 256>}]} {
    %c0 = arith.constant 0 : index
    %c0_0 = arith.constant 0 : index
    %0 = vector.load %arg3[%c0, %c0_0] : memref<128x16xbf16, #tpu.memory_space<vmem>>, vector<128x16xbf16>
    %c0_1 = arith.constant 0 : index
    %c0_2 = arith.constant 0 : index
    %c0_3 = arith.constant 0 : index
    %1 = vector.load %arg2[%c0_1, %c0_2, %c0_3] : memref<1x16x256xbf16, #tpu.memory_space<vmem>>, vector<1x16x256xbf16>
    %2 = vector.shape_cast %1 : vector<1x16x256xbf16> to vector<16x256xbf16>
    %cst = arith.constant dense<0.000000e+00> : vector<128x256xf32>
    %3 = tpu.matmul %0, %2, %cst {dimension_numbers = #tpu.dot_dimension_numbers<[1], [0], [0], [1], [0, 0, 1, 1], [], []>} : vector<128x16xbf16>, vector<16x256xbf16>, vector<128x256xf32> -> vector<128x256xf32>
    %c0_4 = arith.constant 0 : index
    %c0_5 = arith.constant 0 : index
    %4 = vector.load %arg4[%c0_4, %c0_5] : memref<128x1xf32, #tpu.memory_space<vmem>>, vector<128x1xf32>
    %5 = vector.broadcast %4 : vector<128x1xf32> to vector<128x256xf32>
    %6 = arith.addf %3, %5 : vector<128x256xf32>
    %cst_6 = arith.constant 0.000000e+00 : f32
    %7 = vector.broadcast %cst_6 : f32 to vector<128x256xf32>
    %8 = arith.maximumf %6, %7 : vector<128x256xf32>
    %c0_7 = arith.constant 0 : index
    %c0_8 = arith.constant 0 : index
    %9 = vector.load %arg5[%c0_7, %c0_8] : memref<2x128xbf16, #tpu.memory_space<vmem>>, vector<2x128xbf16>
    %10 = arith.truncf %8 : vector<128x256xf32> to vector<128x256xbf16>
    %cst_9 = arith.constant dense<0.000000e+00> : vector<2x256xf32>
    %11 = tpu.matmul %9, %10, %cst_9 {dimension_numbers = #tpu.dot_dimension_numbers<[1], [0], [0], [1], [0, 0, 1, 1], [], []>} : vector<2x128xbf16>, vector<128x256xbf16>, vector<2x256xf32> -> vector<2x256xf32>
    %c0_10 = arith.constant 0 : index
    %c0_11 = arith.constant 0 : index
    %12 = vector.load %arg6[%c0_10, %c0_11] : memref<2x1xf32, #tpu.memory_space<vmem>>, vector<2x1xf32>
    %13 = vector.broadcast %12 : vector<2x1xf32> to vector<2x256xf32>
    %14 = arith.addf %11, %13 : vector<2x256xf32>
    %c0_12 = arith.constant 0 : index
    %c0_13 = arith.constant 0 : index
    %c0_14 = arith.constant 0 : index
    %15 = vector.load %arg7[%c0_12, %c0_13, %c0_14] : memref<1x2x256xf32, #tpu.memory_space<vmem>>, vector<1x2x256xf32>
    %16 = vector.shape_cast %15 : vector<1x2x256xf32> to vector<2x256xf32>
    %17 = vector.shape_cast %14 : vector<2x256xf32> to vector<1x2x256xf32>
    tpu.vector_store %arg7[%c0_12, %c0_13, %c0_14], %17 {strides = array<i32>} : memref<1x2x256xf32, #tpu.memory_space<vmem>>, vector<1x2x256xf32>,
    return
  }
  func.func @transform_0(%arg0: i32, %arg1: i32) -> (i32, i32, i32) {
    %c0_i32 = arith.constant 0 : i32
    %c0_i32_0 = arith.constant 0 : i32
    return %arg0, %c0_i32, %arg1 : i32, i32, i32
  }
  func.func @transform_1(%arg0: i32, %arg1: i32) -> (i32, i32) {
    %c0_i32 = arith.constant 0 : i32
    %c0_i32_0 = arith.constant 0 : i32
    %c0_i32_1 = arith.constant 0 : i32
    return %c0_i32, %c0_i32_0 : i32, i32
  }
  func.func @transform_2(%arg0: i32, %arg1: i32) -> (i32, i32) {
    %c0_i32 = arith.constant 0 : i32
    %c0_i32_0 = arith.constant 0 : i32
    %c0_i32_1 = arith.constant 0 : i32
    return %c0_i32, %c0_i32_0 : i32, i32
  }
  func.func @transform_3(%arg0: i32, %arg1: i32) -> (i32, i32) {
    %c0_i32 = arith.constant 0 : i32
    %c0_i32_0 = arith.constant 0 : i32
    %c0_i32_1 = arith.constant 0 : i32
    return %c0_i32, %c0_i32_0 : i32, i32
  }
  func.func @transform_4(%arg0: i32, %arg1: i32) -> (i32, i32) {
    %c0_i32 = arith.constant 0 : i32
    %c0_i32_0 = arith.constant 0 : i32
    %c0_i32_1 = arith.constant 0 : i32
    return %c0_i32, %c0_i32_0 : i32, i32
  }
  func.func @transform_5(%arg0: i32, %arg1: i32) -> (i32, i32, i32) {
    %c0_i32 = arith.constant 0 : i32
    %c0_i32_0 = arith.constant 0 : i32
    return %arg0, %c0_i32, %arg1 : i32, i32, i32
  }
}

module attributes {stable_mosaic.version = 11 : i64} {
  func.func @_resnet_w8_kernel(%arg0: i32, %arg1: memref<1x16x128xbf16, #tpu.memory_space<vmem>>, %arg2: memref<1x4x128xf32, #tpu.memory_space<vmem>>, %arg3: memref<128x16xbf16, #tpu.memory_space<vmem>>, %arg4: memref<128x1xf32, #tpu.memory_space<vmem>>, %arg5: memref<128x128xbf16, #tpu.memory_space<vmem>>, %arg6: memref<128x1xf32, #tpu.memory_space<vmem>>, %arg7: memref<128x128xbf16, #tpu.memory_space<vmem>>, %arg8: memref<128x1xf32, #tpu.memory_space<vmem>>, %arg9: memref<2x128xbf16, #tpu.memory_space<vmem>>, %arg10: memref<2x1xf32, #tpu.memory_space<vmem>>, %arg11: memref<1x2x128xf32, #tpu.memory_space<vmem>>, %arg12: memref<1x9x9xf32, #tpu.memory_space<vmem>>) attributes {dimension_semantics = [#tpu.dimension_semantics<parallel>], iteration_bounds = array<i64: 2>, scalar_prefetch = 0 : i64, scratch_operands = 0 : i64, tpu.core_type = #tpu.core_type<tc>, window_params = [{transform_indices = @transform_0, window_bounds = array<i64: 1, 16, 128>}, {transform_indices = @transform_1, window_bounds = array<i64: 1, 4, 128>}, {pipeline_mode = #tpu.pipeline_mode<synchronous>, transform_indices = @transform_2, window_bounds = array<i64: 128, 16>}, {pipeline_mode = #tpu.pipeline_mode<synchronous>, transform_indices = @transform_3, window_bounds = array<i64: 128, 1>}, {pipeline_mode = #tpu.pipeline_mode<synchronous>, transform_indices = @transform_4, window_bounds = array<i64: 128, 128>}, {pipeline_mode = #tpu.pipeline_mode<synchronous>, transform_indices = @transform_5, window_bounds = array<i64: 128, 1>}, {pipeline_mode = #tpu.pipeline_mode<synchronous>, transform_indices = @transform_6, window_bounds = array<i64: 128, 128>}, {pipeline_mode = #tpu.pipeline_mode<synchronous>, transform_indices = @transform_7, window_bounds = array<i64: 128, 1>}, {pipeline_mode = #tpu.pipeline_mode<synchronous>, transform_indices = @transform_8, window_bounds = array<i64: 2, 128>}, {pipeline_mode = #tpu.pipeline_mode<synchronous>, transform_indices = @transform_9, window_bounds = array<i64: 2, 1>}, {transform_indices = @transform_10, window_bounds = array<i64: 1, 2, 128>}, {transform_indices = @transform_11, window_bounds = array<i64: 1, 9, 9>}]} {
    %c0 = arith.constant 0 : index
    %c0_0 = arith.constant 0 : index
    %0 = vector.load %arg3[%c0, %c0_0] : memref<128x16xbf16, #tpu.memory_space<vmem>>, vector<128x16xbf16>
    %c0_1 = arith.constant 0 : index
    %c0_2 = arith.constant 0 : index
    %c0_3 = arith.constant 0 : index
    %1 = vector.load %arg1[%c0_1, %c0_2, %c0_3] : memref<1x16x128xbf16, #tpu.memory_space<vmem>>, vector<1x16x128xbf16>
    %2 = vector.shape_cast %1 : vector<1x16x128xbf16> to vector<16x128xbf16>
    %cst = arith.constant dense<0.000000e+00> : vector<128x128xf32>
    %3 = tpu.matmul %0, %2, %cst {dimension_numbers = #tpu.dot_dimension_numbers<[1], [0], [0], [1], [0, 0, 1, 1], [], []>} : vector<128x16xbf16>, vector<16x128xbf16>, vector<128x128xf32> -> vector<128x128xf32>
    %c0_4 = arith.constant 0 : index
    %c0_5 = arith.constant 0 : index
    %4 = vector.load %arg4[%c0_4, %c0_5] : memref<128x1xf32, #tpu.memory_space<vmem>>, vector<128x1xf32>
    %5 = vector.broadcast %4 : vector<128x1xf32> to vector<128x128xf32>
    %6 = arith.addf %3, %5 : vector<128x128xf32>
    %cst_6 = arith.constant 0.000000e+00 : f32
    %7 = vector.broadcast %cst_6 : f32 to vector<128x128xf32>
    %8 = arith.maximumf %6, %7 : vector<128x128xf32>
    %c0_7 = arith.constant 0 : index
    %c0_8 = arith.constant 0 : index
    %9 = vector.load %arg5[%c0_7, %c0_8] : memref<128x128xbf16, #tpu.memory_space<vmem>>, vector<128x128xbf16>
    %10 = arith.truncf %8 : vector<128x128xf32> to vector<128x128xbf16>
    %cst_9 = arith.constant dense<0.000000e+00> : vector<128x128xf32>
    %11 = tpu.matmul %9, %10, %cst_9 {dimension_numbers = #tpu.dot_dimension_numbers<[1], [0], [0], [1], [0, 0, 1, 1], [], []>} : vector<128x128xbf16>, vector<128x128xbf16>, vector<128x128xf32> -> vector<128x128xf32>
    %c0_10 = arith.constant 0 : index
    %c0_11 = arith.constant 0 : index
    %12 = vector.load %arg6[%c0_10, %c0_11] : memref<128x1xf32, #tpu.memory_space<vmem>>, vector<128x1xf32>
    %13 = vector.broadcast %12 : vector<128x1xf32> to vector<128x128xf32>
    %14 = arith.addf %11, %13 : vector<128x128xf32>
    %cst_12 = arith.constant dense<0.000000e+00> : vector<128xf32>
    %15 = vector.multi_reduction <add>, %14, %cst_12 [1] : vector<128x128xf32> to vector<128xf32>
    %16 = vector.shape_cast %15 : vector<128xf32> to vector<128x1xf32>
    %cst_13 = arith.constant 1.280000e+02 : f32
    %17 = vector.broadcast %cst_13 : f32 to vector<128x1xf32>
    %18 = arith.divf %16, %17 : vector<128x1xf32>
    %19 = vector.broadcast %18 : vector<128x1xf32> to vector<128x128xf32>
    %20 = arith.subf %14, %19 : vector<128x128xf32>
    %21 = arith.mulf %20, %20 : vector<128x128xf32>
    %cst_14 = arith.constant dense<0.000000e+00> : vector<128xf32>
    %22 = vector.multi_reduction <add>, %21, %cst_14 [1] : vector<128x128xf32> to vector<128xf32>
    %23 = vector.shape_cast %22 : vector<128xf32> to vector<128x1xf32>
    %cst_15 = arith.constant 1.280000e+02 : f32
    %24 = vector.broadcast %cst_15 : f32 to vector<128x1xf32>
    %25 = arith.divf %23, %24 : vector<128x1xf32>
    %26 = vector.broadcast %18 : vector<128x1xf32> to vector<128x128xf32>
    %27 = arith.subf %14, %26 : vector<128x128xf32>
    %cst_16 = arith.constant 9.99999974E-6 : f32
    %28 = vector.broadcast %cst_16 : f32 to vector<128x1xf32>
    %29 = arith.addf %25, %28 : vector<128x1xf32>
    %30 = math.rsqrt %29 : vector<128x1xf32>
    %31 = vector.broadcast %30 : vector<128x1xf32> to vector<128x128xf32>
    %32 = arith.mulf %27, %31 : vector<128x128xf32>
    %cst_17 = arith.constant 0.999994993 : f32
    %33 = vector.broadcast %cst_17 : f32 to vector<128x128xf32>
    %34 = arith.mulf %32, %33 : vector<128x128xf32>
    %cst_18 = arith.constant 0.000000e+00 : f32
    %35 = vector.broadcast %cst_18 : f32 to vector<128x128xf32>
    %36 = arith.maximumf %34, %35 : vector<128x128xf32>
    %c0_19 = arith.constant 0 : index
    %c0_20 = arith.constant 0 : index
    %37 = vector.load %arg7[%c0_19, %c0_20] : memref<128x128xbf16, #tpu.memory_space<vmem>>, vector<128x128xbf16>
    %38 = arith.truncf %36 : vector<128x128xf32> to vector<128x128xbf16>
    %cst_21 = arith.constant dense<0.000000e+00> : vector<128x128xf32>
    %39 = tpu.matmul %37, %38, %cst_21 {dimension_numbers = #tpu.dot_dimension_numbers<[1], [0], [0], [1], [0, 0, 1, 1], [], []>} : vector<128x128xbf16>, vector<128x128xbf16>, vector<128x128xf32> -> vector<128x128xf32>
    %c0_22 = arith.constant 0 : index
    %c0_23 = arith.constant 0 : index
    %40 = vector.load %arg8[%c0_22, %c0_23] : memref<128x1xf32, #tpu.memory_space<vmem>>, vector<128x1xf32>
    %41 = vector.broadcast %40 : vector<128x1xf32> to vector<128x128xf32>
    %42 = arith.addf %39, %41 : vector<128x128xf32>
    %cst_24 = arith.constant dense<0.000000e+00> : vector<128xf32>
    %43 = vector.multi_reduction <add>, %42, %cst_24 [1] : vector<128x128xf32> to vector<128xf32>
    %44 = vector.shape_cast %43 : vector<128xf32> to vector<128x1xf32>
    %cst_25 = arith.constant 1.280000e+02 : f32
    %45 = vector.broadcast %cst_25 : f32 to vector<128x1xf32>
    %46 = arith.divf %44, %45 : vector<128x1xf32>
    %47 = vector.broadcast %46 : vector<128x1xf32> to vector<128x128xf32>
    %48 = arith.subf %42, %47 : vector<128x128xf32>
    %49 = arith.mulf %48, %48 : vector<128x128xf32>
    %cst_26 = arith.constant dense<0.000000e+00> : vector<128xf32>
    %50 = vector.multi_reduction <add>, %49, %cst_26 [1] : vector<128x128xf32> to vector<128xf32>
    %51 = vector.shape_cast %50 : vector<128xf32> to vector<128x1xf32>
    %cst_27 = arith.constant 1.280000e+02 : f32
    %52 = vector.broadcast %cst_27 : f32 to vector<128x1xf32>
    %53 = arith.divf %51, %52 : vector<128x1xf32>
    %54 = vector.broadcast %46 : vector<128x1xf32> to vector<128x128xf32>
    %55 = arith.subf %42, %54 : vector<128x128xf32>
    %cst_28 = arith.constant 9.99999974E-6 : f32
    %56 = vector.broadcast %cst_28 : f32 to vector<128x1xf32>
    %57 = arith.addf %53, %56 : vector<128x1xf32>
    %58 = math.rsqrt %57 : vector<128x1xf32>
    %59 = vector.broadcast %58 : vector<128x1xf32> to vector<128x128xf32>
    %60 = arith.mulf %55, %59 : vector<128x128xf32>
    %cst_29 = arith.constant 0.999994993 : f32
    %61 = vector.broadcast %cst_29 : f32 to vector<128x128xf32>
    %62 = arith.mulf %60, %61 : vector<128x128xf32>
    %63 = arith.addf %62, %8 : vector<128x128xf32>
    %cst_30 = arith.constant 0.000000e+00 : f32
    %64 = vector.broadcast %cst_30 : f32 to vector<128x128xf32>
    %65 = arith.maximumf %63, %64 : vector<128x128xf32>
    %c0_31 = arith.constant 0 : index
    %c0_32 = arith.constant 0 : index
    %66 = vector.load %arg9[%c0_31, %c0_32] : memref<2x128xbf16, #tpu.memory_space<vmem>>, vector<2x128xbf16>
    %67 = arith.truncf %65 : vector<128x128xf32> to vector<128x128xbf16>
    %cst_33 = arith.constant dense<0.000000e+00> : vector<2x128xf32>
    %68 = tpu.matmul %66, %67, %cst_33 {dimension_numbers = #tpu.dot_dimension_numbers<[1], [0], [0], [1], [0, 0, 1, 1], [], []>} : vector<2x128xbf16>, vector<128x128xbf16>, vector<2x128xf32> -> vector<2x128xf32>
    %c0_34 = arith.constant 0 : index
    %c0_35 = arith.constant 0 : index
    %69 = vector.load %arg10[%c0_34, %c0_35] : memref<2x1xf32, #tpu.memory_space<vmem>>, vector<2x1xf32>
    %70 = vector.broadcast %69 : vector<2x1xf32> to vector<2x128xf32>
    %71 = arith.addf %68, %70 : vector<2x128xf32>
    %c0_36 = arith.constant 0 : index
    %c0_37 = arith.constant 0 : index
    %c0_38 = arith.constant 0 : index
    %72 = vector.load %arg11[%c0_36, %c0_37, %c0_38] : memref<1x2x128xf32, #tpu.memory_space<vmem>>, vector<1x2x128xf32>
    %73 = vector.shape_cast %72 : vector<1x2x128xf32> to vector<2x128xf32>
    %74 = vector.shape_cast %71 : vector<2x128xf32> to vector<1x2x128xf32>
    tpu.vector_store %arg11[%c0_36, %c0_37, %c0_38], %74 {strides = array<i32>} : memref<1x2x128xf32, #tpu.memory_space<vmem>>, vector<1x2x128xf32>,
    %c0_39 = arith.constant 0 : index
    %c0_40 = arith.constant 0 : index
    %c0_41 = arith.constant 0 : index
    %75 = vector.load %arg2[%c0_39, %c0_40, %c0_41] : memref<1x4x128xf32, #tpu.memory_space<vmem>>, vector<1x4x128xf32>
    %76 = vector.shape_cast %75 : vector<1x4x128xf32> to vector<4x128xf32>
    %77 = vector.extract_strided_slice %71 {offsets = [0, 0], sizes = [1, 128], strides = [1, 1]} : vector<2x128xf32> to vector<1x128xf32>
    %78 = arith.negf %77 : vector<1x128xf32>
    %79 = math.exp %78 : vector<1x128xf32>
    %cst_42 = arith.constant 1.000000e+00 : f32
    %80 = vector.broadcast %cst_42 : f32 to vector<1x128xf32>
    %81 = arith.addf %80, %79 : vector<1x128xf32>
    %82 = arith.divf %80, %81 : vector<1x128xf32>
    %83 = vector.extract_strided_slice %71 {offsets = [1, 0], sizes = [1, 128], strides = [1, 1]} : vector<2x128xf32> to vector<1x128xf32>
    %84 = math.exp %83 : vector<1x128xf32>
    %85 = arith.mulf %84, %82 : vector<1x128xf32>
    %cst_43 = arith.constant dense<0.000000e+00> : vector<1xf32>
    %86 = vector.multi_reduction <add>, %85, %cst_43 [1] : vector<1x128xf32> to vector<1xf32>
    %87 = vector.shape_cast %86 : vector<1xf32> to vector<1x1xf32>
    %cst_44 = arith.constant 9.99999974E-6 : f32
    %88 = vector.broadcast %cst_44 : f32 to vector<1x1xf32>
    %89 = arith.addf %87, %88 : vector<1x1xf32>
    %90 = vector.broadcast %89 : vector<1x1xf32> to vector<1x128xf32>
    %91 = arith.divf %85, %90 : vector<1x128xf32>
    %92 = vector.extract_strided_slice %76 {offsets = [0, 0], sizes = [1, 128], strides = [1, 1]} : vector<4x128xf32> to vector<1x128xf32>
    %93 = vector.extract_strided_slice %76 {offsets = [1, 0], sizes = [1, 128], strides = [1, 1]} : vector<4x128xf32> to vector<1x128xf32>
    %94 = vector.extract_strided_slice %76 {offsets = [2, 0], sizes = [1, 128], strides = [1, 1]} : vector<4x128xf32> to vector<1x128xf32>
    %95 = vector.extract_strided_slice %76 {offsets = [3, 0], sizes = [1, 128], strides = [1, 1]} : vector<4x128xf32> to vector<1x128xf32>
    %96 = arith.mulf %94, %92 : vector<1x128xf32>
    %97 = arith.mulf %94, %93 : vector<1x128xf32>
    %98 = arith.mulf %95, %92 : vector<1x128xf32>
    %99 = arith.mulf %95, %93 : vector<1x128xf32>
    %cst_45 = arith.constant 1.000000e+00 : f32
    %100 = vector.broadcast %cst_45 : f32 to vector<1x128xf32>
    %101 = tpu.concatenate %96, %97, %94, %98, %99, %95, %92, %93, %100 in 0 : vector<1x128xf32>, vector<1x128xf32>, vector<1x128xf32>, vector<1x128xf32>, vector<1x128xf32>, vector<1x128xf32>, vector<1x128xf32>, vector<1x128xf32>, vector<1x128xf32> -> vector<9x128xf32>
    %102 = vector.broadcast %91 : vector<1x128xf32> to vector<9x128xf32>
    %103 = arith.mulf %102, %101 : vector<9x128xf32>
    %cst_46 = arith.constant dense<0.000000e+00> : vector<9x9xf32>
    %104 = tpu.matmul %103, %101, %cst_46 {dimension_numbers = #tpu.dot_dimension_numbers<[1], [1], [0], [0], [0, 0, 1, 0], [], []>} : vector<9x128xf32>, vector<9x128xf32>, vector<9x9xf32> -> vector<9x9xf32>
    %c0_47 = arith.constant 0 : index
    %c0_48 = arith.constant 0 : index
    %c0_49 = arith.constant 0 : index
    %105 = vector.load %arg12[%c0_47, %c0_48, %c0_49] : memref<1x9x9xf32, #tpu.memory_space<vmem>>, vector<1x9x9xf32>
    %106 = vector.shape_cast %105 : vector<1x9x9xf32> to vector<9x9xf32>
    %107 = vector.shape_cast %104 : vector<9x9xf32> to vector<1x9x9xf32>
    tpu.vector_store %arg12[%c0_47, %c0_48, %c0_49], %107 {strides = array<i32>} : memref<1x9x9xf32, #tpu.memory_space<vmem>>, vector<1x9x9xf32>,
    return
  }
  func.func @transform_0(%arg0: i32) -> (i32, i32, i32) {
    %c0_i32 = arith.constant 0 : i32
    %c0_i32_0 = arith.constant 0 : i32
    %c0_i32_1 = arith.constant 0 : i32
    return %arg0, %c0_i32, %c0_i32_0 : i32, i32, i32
  }
  func.func @transform_1(%arg0: i32) -> (i32, i32, i32) {
    %c0_i32 = arith.constant 0 : i32
    %c0_i32_0 = arith.constant 0 : i32
    %c0_i32_1 = arith.constant 0 : i32
    return %arg0, %c0_i32, %c0_i32_0 : i32, i32, i32
  }
  func.func @transform_2(%arg0: i32) -> (i32, i32) {
    %c0_i32 = arith.constant 0 : i32
    %c0_i32_0 = arith.constant 0 : i32
    %c0_i32_1 = arith.constant 0 : i32
    return %c0_i32, %c0_i32_0 : i32, i32
  }
  func.func @transform_3(%arg0: i32) -> (i32, i32) {
    %c0_i32 = arith.constant 0 : i32
    %c0_i32_0 = arith.constant 0 : i32
    %c0_i32_1 = arith.constant 0 : i32
    return %c0_i32, %c0_i32_0 : i32, i32
  }
  func.func @transform_4(%arg0: i32) -> (i32, i32) {
    %c0_i32 = arith.constant 0 : i32
    %c0_i32_0 = arith.constant 0 : i32
    %c0_i32_1 = arith.constant 0 : i32
    return %c0_i32, %c0_i32_0 : i32, i32
  }
  func.func @transform_5(%arg0: i32) -> (i32, i32) {
    %c0_i32 = arith.constant 0 : i32
    %c0_i32_0 = arith.constant 0 : i32
    %c0_i32_1 = arith.constant 0 : i32
    return %c0_i32, %c0_i32_0 : i32, i32
  }
  func.func @transform_6(%arg0: i32) -> (i32, i32) {
    %c0_i32 = arith.constant 0 : i32
    %c0_i32_0 = arith.constant 0 : i32
    %c0_i32_1 = arith.constant 0 : i32
    return %c0_i32, %c0_i32_0 : i32, i32
  }
  func.func @transform_7(%arg0: i32) -> (i32, i32) {
    %c0_i32 = arith.constant 0 : i32
    %c0_i32_0 = arith.constant 0 : i32
    %c0_i32_1 = arith.constant 0 : i32
    return %c0_i32, %c0_i32_0 : i32, i32
  }
  func.func @transform_8(%arg0: i32) -> (i32, i32) {
    %c0_i32 = arith.constant 0 : i32
    %c0_i32_0 = arith.constant 0 : i32
    %c0_i32_1 = arith.constant 0 : i32
    return %c0_i32, %c0_i32_0 : i32, i32
  }
  func.func @transform_9(%arg0: i32) -> (i32, i32) {
    %c0_i32 = arith.constant 0 : i32
    %c0_i32_0 = arith.constant 0 : i32
    %c0_i32_1 = arith.constant 0 : i32
    return %c0_i32, %c0_i32_0 : i32, i32
  }
  func.func @transform_10(%arg0: i32) -> (i32, i32, i32) {
    %c0_i32 = arith.constant 0 : i32
    %c0_i32_0 = arith.constant 0 : i32
    %c0_i32_1 = arith.constant 0 : i32
    return %arg0, %c0_i32, %c0_i32_0 : i32, i32, i32
  }
  func.func @transform_11(%arg0: i32) -> (i32, i32, i32) {
    %c0_i32 = arith.constant 0 : i32
    %c0_i32_0 = arith.constant 0 : i32
    %c0_i32_1 = arith.constant 0 : i32
    return %arg0, %c0_i32, %c0_i32_0 : i32, i32, i32
  }
}

module attributes {stable_mosaic.version = 11 : i64} {
  func.func @_episym_kernel(%arg0: i32, %arg1: memref<1x2x512xf32, #tpu.memory_space<vmem>>, %arg2: memref<1x2x512xf32, #tpu.memory_space<vmem>>, %arg3: memref<1x1x9xf32, #tpu.memory_space<vmem>>, %arg4: memref<1x1x512xf32, #tpu.memory_space<vmem>>) attributes {dimension_semantics = [#tpu.dimension_semantics<parallel>], iteration_bounds = array<i64: 2>, scalar_prefetch = 0 : i64, scratch_operands = 0 : i64, tpu.core_type = #tpu.core_type<tc>, window_params = [{transform_indices = @transform_0, window_bounds = array<i64: 1, 2, 512>}, {transform_indices = @transform_1, window_bounds = array<i64: 1, 2, 512>}, {transform_indices = @transform_2, window_bounds = array<i64: 1, 1, 9>}, {transform_indices = @transform_3, window_bounds = array<i64: 1, 1, 512>}]} {
    %c0 = arith.constant 0 : index
    %c0_0 = arith.constant 0 : index
    %c0_1 = arith.constant 0 : index
    %0 = vector.load %arg1[%c0, %c0_0, %c0_1] : memref<1x2x512xf32, #tpu.memory_space<vmem>>, vector<1x2x512xf32>
    %1 = vector.shape_cast %0 : vector<1x2x512xf32> to vector<2x512xf32>
    %c0_2 = arith.constant 0 : index
    %c0_3 = arith.constant 0 : index
    %c0_4 = arith.constant 0 : index
    %2 = vector.load %arg2[%c0_2, %c0_3, %c0_4] : memref<1x2x512xf32, #tpu.memory_space<vmem>>, vector<1x2x512xf32>
    %3 = vector.shape_cast %2 : vector<1x2x512xf32> to vector<2x512xf32>
    %c0_5 = arith.constant 0 : index
    %c0_6 = arith.constant 0 : index
    %c0_7 = arith.constant 0 : index
    %4 = vector.load %arg3[%c0_5, %c0_6, %c0_7] : memref<1x1x9xf32, #tpu.memory_space<vmem>>, vector<1x1x9xf32>
    %5 = vector.shape_cast %4 : vector<1x1x9xf32> to vector<1x9xf32>
    %6 = vector.extract_strided_slice %1 {offsets = [0, 0], sizes = [1, 512], strides = [1, 1]} : vector<2x512xf32> to vector<1x512xf32>
    %7 = vector.extract_strided_slice %1 {offsets = [1, 0], sizes = [1, 512], strides = [1, 1]} : vector<2x512xf32> to vector<1x512xf32>
    %8 = vector.extract_strided_slice %3 {offsets = [0, 0], sizes = [1, 512], strides = [1, 1]} : vector<2x512xf32> to vector<1x512xf32>
    %9 = vector.extract_strided_slice %3 {offsets = [1, 0], sizes = [1, 512], strides = [1, 1]} : vector<2x512xf32> to vector<1x512xf32>
    %10 = vector.extract_strided_slice %5 {offsets = [0, 0], sizes = [1, 1], strides = [1, 1]} : vector<1x9xf32> to vector<1x1xf32>
    %11 = vector.extract_strided_slice %5 {offsets = [0, 1], sizes = [1, 1], strides = [1, 1]} : vector<1x9xf32> to vector<1x1xf32>
    %12 = vector.extract_strided_slice %5 {offsets = [0, 2], sizes = [1, 1], strides = [1, 1]} : vector<1x9xf32> to vector<1x1xf32>
    %13 = vector.extract_strided_slice %5 {offsets = [0, 3], sizes = [1, 1], strides = [1, 1]} : vector<1x9xf32> to vector<1x1xf32>
    %14 = vector.extract_strided_slice %5 {offsets = [0, 4], sizes = [1, 1], strides = [1, 1]} : vector<1x9xf32> to vector<1x1xf32>
    %15 = vector.extract_strided_slice %5 {offsets = [0, 5], sizes = [1, 1], strides = [1, 1]} : vector<1x9xf32> to vector<1x1xf32>
    %16 = vector.extract_strided_slice %5 {offsets = [0, 6], sizes = [1, 1], strides = [1, 1]} : vector<1x9xf32> to vector<1x1xf32>
    %17 = vector.extract_strided_slice %5 {offsets = [0, 7], sizes = [1, 1], strides = [1, 1]} : vector<1x9xf32> to vector<1x1xf32>
    %18 = vector.extract_strided_slice %5 {offsets = [0, 8], sizes = [1, 1], strides = [1, 1]} : vector<1x9xf32> to vector<1x1xf32>
    %19 = vector.broadcast %10 : vector<1x1xf32> to vector<1x512xf32>
    %20 = arith.mulf %19, %6 : vector<1x512xf32>
    %21 = vector.broadcast %11 : vector<1x1xf32> to vector<1x512xf32>
    %22 = arith.mulf %21, %7 : vector<1x512xf32>
    %23 = arith.addf %20, %22 : vector<1x512xf32>
    %24 = vector.broadcast %12 : vector<1x1xf32> to vector<1x512xf32>
    %25 = arith.addf %23, %24 : vector<1x512xf32>
    %26 = vector.broadcast %13 : vector<1x1xf32> to vector<1x512xf32>
    %27 = arith.mulf %26, %6 : vector<1x512xf32>
    %28 = vector.broadcast %14 : vector<1x1xf32> to vector<1x512xf32>
    %29 = arith.mulf %28, %7 : vector<1x512xf32>
    %30 = arith.addf %27, %29 : vector<1x512xf32>
    %31 = vector.broadcast %15 : vector<1x1xf32> to vector<1x512xf32>
    %32 = arith.addf %30, %31 : vector<1x512xf32>
    %33 = vector.broadcast %16 : vector<1x1xf32> to vector<1x512xf32>
    %34 = arith.mulf %33, %6 : vector<1x512xf32>
    %35 = vector.broadcast %17 : vector<1x1xf32> to vector<1x512xf32>
    %36 = arith.mulf %35, %7 : vector<1x512xf32>
    %37 = arith.addf %34, %36 : vector<1x512xf32>
    %38 = vector.broadcast %18 : vector<1x1xf32> to vector<1x512xf32>
    %39 = arith.addf %37, %38 : vector<1x512xf32>
    %40 = vector.broadcast %10 : vector<1x1xf32> to vector<1x512xf32>
    %41 = arith.mulf %40, %8 : vector<1x512xf32>
    %42 = vector.broadcast %13 : vector<1x1xf32> to vector<1x512xf32>
    %43 = arith.mulf %42, %9 : vector<1x512xf32>
    %44 = arith.addf %41, %43 : vector<1x512xf32>
    %45 = vector.broadcast %16 : vector<1x1xf32> to vector<1x512xf32>
    %46 = arith.addf %44, %45 : vector<1x512xf32>
    %47 = vector.broadcast %11 : vector<1x1xf32> to vector<1x512xf32>
    %48 = arith.mulf %47, %8 : vector<1x512xf32>
    %49 = vector.broadcast %14 : vector<1x1xf32> to vector<1x512xf32>
    %50 = arith.mulf %49, %9 : vector<1x512xf32>
    %51 = arith.addf %48, %50 : vector<1x512xf32>
    %52 = vector.broadcast %17 : vector<1x1xf32> to vector<1x512xf32>
    %53 = arith.addf %51, %52 : vector<1x512xf32>
    %54 = arith.mulf %8, %25 : vector<1x512xf32>
    %55 = arith.mulf %9, %32 : vector<1x512xf32>
    %56 = arith.addf %54, %55 : vector<1x512xf32>
    %57 = arith.addf %56, %39 : vector<1x512xf32>
    %58 = arith.mulf %57, %57 : vector<1x512xf32>
    %59 = arith.mulf %25, %25 : vector<1x512xf32>
    %60 = arith.mulf %32, %32 : vector<1x512xf32>
    %61 = arith.addf %59, %60 : vector<1x512xf32>
    %cst = arith.constant 1.000000e-15 : f32
    %62 = vector.broadcast %cst : f32 to vector<1x512xf32>
    %63 = arith.addf %61, %62 : vector<1x512xf32>
    %cst_8 = arith.constant 1.000000e+00 : f32
    %64 = vector.broadcast %cst_8 : f32 to vector<1x512xf32>
    %65 = arith.divf %64, %63 : vector<1x512xf32>
    %66 = arith.mulf %46, %46 : vector<1x512xf32>
    %67 = arith.mulf %53, %53 : vector<1x512xf32>
    %68 = arith.addf %66, %67 : vector<1x512xf32>
    %cst_9 = arith.constant 1.000000e-15 : f32
    %69 = vector.broadcast %cst_9 : f32 to vector<1x512xf32>
    %70 = arith.addf %68, %69 : vector<1x512xf32>
    %cst_10 = arith.constant 1.000000e+00 : f32
    %71 = vector.broadcast %cst_10 : f32 to vector<1x512xf32>
    %72 = arith.divf %71, %70 : vector<1x512xf32>
    %73 = arith.addf %65, %72 : vector<1x512xf32>
    %74 = arith.mulf %58, %73 : vector<1x512xf32>
    %c0_11 = arith.constant 0 : index
    %c0_12 = arith.constant 0 : index
    %c0_13 = arith.constant 0 : index
    %75 = vector.load %arg4[%c0_11, %c0_12, %c0_13] : memref<1x1x512xf32, #tpu.memory_space<vmem>>, vector<1x1x512xf32>
    %76 = vector.shape_cast %75 : vector<1x1x512xf32> to vector<1x512xf32>
    %77 = vector.shape_cast %74 : vector<1x512xf32> to vector<1x1x512xf32>
    tpu.vector_store %arg4[%c0_11, %c0_12, %c0_13], %77 {strides = array<i32>} : memref<1x1x512xf32, #tpu.memory_space<vmem>>, vector<1x1x512xf32>,
    return
  }
  func.func @transform_0(%arg0: i32) -> (i32, i32, i32) {
    %c0_i32 = arith.constant 0 : i32
    %c0_i32_0 = arith.constant 0 : i32
    %c0_i32_1 = arith.constant 0 : i32
    return %arg0, %c0_i32, %c0_i32_0 : i32, i32, i32
  }
  func.func @transform_1(%arg0: i32) -> (i32, i32, i32) {
    %c0_i32 = arith.constant 0 : i32
    %c0_i32_0 = arith.constant 0 : i32
    %c0_i32_1 = arith.constant 0 : i32
    return %arg0, %c0_i32, %c0_i32_0 : i32, i32, i32
  }
  func.func @transform_2(%arg0: i32) -> (i32, i32, i32) {
    %c0_i32 = arith.constant 0 : i32
    %c0_i32_0 = arith.constant 0 : i32
    %c0_i32_1 = arith.constant 0 : i32
    return %arg0, %c0_i32, %c0_i32_0 : i32, i32, i32
  }
  func.func @transform_3(%arg0: i32) -> (i32, i32, i32) {
    %c0_i32 = arith.constant 0 : i32
    %c0_i32_0 = arith.constant 0 : i32
    %c0_i32_1 = arith.constant 0 : i32
    return %arg0, %c0_i32, %c0_i32_0 : i32, i32, i32
  }
}

</mosaic_0001>

<bundles_post_ra>
// kernel: ptcnet_forward.4
= control target key start
LH: loop header
LB: loop body
LE: loop exit
PB: predicated region body
PF: predicated region fallthrough
CT: control target
= control target key end

     0   :  { %s1126_s18 = smov 0   ;;  %s1128_s19 = smov 0   ;;  %s1277_s0 = inlined_call_operand.vmem [shape: bf16[2,16,512], index: 0, kind: input, shape index: {}]   ;;  %s1278_s1 = inlined_call_operand.vmem [shape: bf16[128,16], index: 1, kind: input, shape index: {}]   ;;  %s1279_s2 = inlined_call_operand.vmem [shape: f32[128,1], index: 2, kind: input, shape index: {}]   ;;  %s1280_s3 = inlined_call_operand.vmem [shape: bf16[2,128], index: 3, kind: input, shape index: {}]   ;;  %s1281_s4 = inlined_call_operand.vmem [shape: f32[2,1], index: 4, kind: input, shape index: {}]   ;;  %s1282_s5 = inlined_call_operand.vmem [shape: f32[2,2,512], index: 5, kind: output, shape index: {}]  }
   0x1   :  { %s1130_s20 = smov 0  }
   0x2 LB: > { %s27_s21 = sadd.s32 1, %s1088_s19  ;;  %p991_p0 = scmp.ge.s32.totalorder %s1092_s20, 1  ;;  %s1092_s20 = sphi %s1130_s20, %s15_s20   ;;  %s1088_s19 = sphi %s1128_s19, %s1284_s19   ;;  %s1084_s18 = sphi %s1126_s18, %s1283_s18  }
   0x3   : > { %p29_p1 = scmp.ge.s32.totalorder %s27_s21, 2  ;;  %p208_p2 = scmp.lt.s32.totalorder %s1092_s20, 3 }
   0x5   : > { %s1286_s21 = smov (%p29_p1, %s27_s21), 0  ;;  %p209_p3 = pnand %p991_p0, %p208_p2 }
   0x6   : > { %p245_p4 = scmp.lt.s32.totalorder (!%p209_p3), %s1084_s18, 1  ;;  %v1094_v0 = vmov (!%p209_p3), 0   ;;  %v1062_v5 = vld [vmem:[%s1278_s1] sm:$0xff] (!%p209_p3)   ;;  %vm441_vm0 = vcmask (!%p209_p3), 130048   ;;  %v286_v7 = vld [vmem:[%s1279_s2 + $0x8] sm:$0xff] (!%p209_p3)  ;;  %v287_v8 = vld [vmem:[%s1279_s2 + $0x10] sm:$0xff] (!%p209_p3) }
   0x7   : > { %212 = sbr.rel (%p209_p3) target bundleno = 525 (0x20d), region = 40  ;;  %498 = vmatprep.mubr.bf16.mxu0 (!%p209_p3), %v1094_v0  ;;  %611 = vmatprep.mubr.bf16.mxu1 (!%p209_p3), %v1094_v0  ;;  %v285_v6 = vld [vmem:[%s1279_s2] sm:$0xff] (!%p209_p3)  ;;  %v288_v10 = vld [vmem:[%s1279_s2 + $0x18] sm:$0xff] (!%p209_p3)  ;;  %v1063_v11 = vld [vmem:[%s1278_s1 + $0x8] sm:$0xff] (!%p209_p3)  }
   0x8   : > { %1054 = vset.pattern.permute.xlu0 (!%p209_p3), %v1094_v0  ;;  %1055 = vset.pattern.permute.xlu1 (!%p209_p3), %v1094_v0  ;;  %v289_v9 = vld [vmem:[%s1279_s2 + $0x20] sm:$0xff] (!%p209_p3)  ;;  %v291_v12 = vld [vmem:[%s1279_s2 + $0x30] sm:$0xff] (!%p209_p3)  ;;  %v290_v13 = vld [vmem:[%s1279_s2 + $0x28] sm:$0xff] (!%p209_p3) }
   0x9   : > { %303 = vperm.xlu0 (!%p209_p3), %1054, %v285_v6   ;;  %313 = vperm.xlu1 (!%p209_p3), %1055, %v287_v8   ;;  %v293_v14 = vld [vmem:[%s1279_s2 + $0x40] sm:$0xff] (!%p209_p3)  ;;  %v292_v15 = vld [vmem:[%s1279_s2 + $0x38] sm:$0xff] (!%p209_p3)  ;;  %v1064_v16 = vld [vmem:[%s1278_s1 + $0x10] sm:$0xff] (!%p209_p3)  }
   0xa   : > { %v295_v17 = vld [vmem:[%s1279_s2 + $0x50] sm:$0xff] (!%p209_p3)  ;;  %v294_v18 = vld [vmem:[%s1279_s2 + $0x48] sm:$0xff] (!%p209_p3)  ;;  %v297_v19 = vld [vmem:[%s1279_s2 + $0x60] sm:$0xff] (!%p209_p3) }
   0xb   : > { %v296_v20 = vld [vmem:[%s1279_s2 + $0x58] sm:$0xff] (!%p209_p3)  ;;  %v299_v22 = vld [vmem:[%s1279_s2 + $0x70] sm:$0xff] (!%p209_p3)  ;;  %v298_v23 = vld [vmem:[%s1279_s2 + $0x68] sm:$0xff] (!%p209_p3) }
   0xc   : > { %v1065_v21 = vld [vmem:[%s1278_s1 + $0x18] sm:$0xff] (!%p209_p3)   ;;  %v789_v24 = vld [vmem:[%s1281_s4] sm:$0x3] (!%p209_p3)  ;;  %v1067_v27 = vld [vmem:[%s1278_s1 + $0x28] sm:$0xff] (!%p209_p3)  }
   0xd   : > { %308 = vperm.xlu0 (!%p209_p3), %1054, %v286_v7   ;;  %318 = vperm.xlu1 (!%p209_p3), %1055, %v288_v10   ;;  %v300_v25 = vld [vmem:[%s1279_s2 + $0x78] sm:$0xff] (!%p209_p3)  ;;  %v1066_v26 = vld [vmem:[%s1278_s1 + $0x20] sm:$0xff] (!%p209_p3)   ;;  %v1068_v28 = vld [vmem:[%s1278_s1 + $0x30] sm:$0xff] (!%p209_p3)  }
   0xe   : > { %s1288_s18 = smov (!%p245_p4, %s1084_s18), 1  ;;  %v1069_v29 = vld [vmem:[%s1278_s1 + $0x38] sm:$0xff]  }
   0xf   : > { %s1026_s22 = sshll.u32 %s1288_s18, 5  ;;  %s1027_s11 = sshll.u32 %s1288_s18, 3 }
  0x10   : > { %s252_s25 = scalar_lea.vmem %s1277_s0, %s1026_s22  ;;  %s262_s14 = scalar_lea.vmem %s1282_s5, %s1027_s11 }
  0x11   : > { %v1056_v1 = vld [vmem:[%s252_s25 + $0x4] ss:$16 sps:$4 sm:$0xff]   ;;  %v1058_v2 = vld [vmem:[%s252_s25 + $0xc] ss:$16 sps:$4 sm:$0xff]   ;;  %v1060_v3 = vld [vmem:[%s252_s25] ss:$16 sps:$4 sm:$0xff]   ;;  %323 = vperm.xlu0 %1054, %v289_v9   ;;  %328 = vperm.xlu1 %1055, %v290_v13  }
  0x12   : > { %466 = vmatprep.subr.bf16.mxu0 %v1056_v1  ;;  %v1061_v4 = vld [vmem:[%s252_s25 + $0x8] ss:$16 sps:$4 sm:$0xff]   ;;  %579 = vmatprep.subr.bf16.mxu1 %v1058_v2 }
  0x13   : > { %467 = vmatpush1.bf16.msra.mxu0 %v1060_v3  ;;  %580 = vmatpush1.bf16.msra.mxu1 %v1061_v4 }
  0x15   : > { %333 = vperm.xlu0 %1054, %v291_v12   ;;  %338 = vperm.xlu1 %1055, %v292_v15  }
  0x16   : > { %1008 = vmatmul.mubr.msk.bf16.vlgmr.msra.gmra.mrb[0].mxu0 %vm441_vm0, %v1062_v5  ;;  %1016 = vmatmul.mubr.msk.bf16.vlgmr.msra.gmra.mrb[0].mxu1 %vm441_vm0, %v1062_v5 }
  0x17   : > { %508 = vmatprep.mubr.bf16.mxu0 %v1094_v0  ;;  %621 = vmatprep.mubr.bf16.mxu1 %v1094_v0 }
  0x19   : > { %343 = vperm.xlu0 %1054, %v293_v14   ;;  %348 = vperm.xlu1 %1055, %v294_v18  }
  0x1d   : > { %353 = vperm.xlu0 %1054, %v295_v17   ;;  %358 = vperm.xlu1 %1055, %v296_v20  }
  0x1e   : > { %1009 = vmatmul.mubr.msk.bf16.gmra.mrb[4].mxu0 %vm441_vm0, %v1063_v11  ;;  %1017 = vmatmul.mubr.msk.bf16.gmra.mrb[4].mxu1 %vm441_vm0, %v1063_v11 }
  0x1f   : > { %518 = vmatprep.mubr.bf16.mxu0 %v1094_v0  ;;  %631 = vmatprep.mubr.bf16.mxu1 %v1094_v0 }
  0x21   : > { %363 = vperm.xlu0 %1054, %v297_v19   ;;  %368 = vperm.xlu1 %1055, %v298_v23  }
  0x25   : > { %373 = vperm.xlu0 %1054, %v299_v22   ;;  %378 = vperm.xlu1 %1055, %v300_v25  }
  0x26   : > { %1010 = vmatmul.mubr.msk.bf16.gmra.mrb[8].mxu0 %vm441_vm0, %v1064_v16  ;;  %1018 = vmatmul.mubr.msk.bf16.gmra.mrb[8].mxu1 %vm441_vm0, %v1064_v16 }
  0x27   : > { %528 = vmatprep.mubr.bf16.mxu0 %v1094_v0  ;;  %641 = vmatprep.mubr.bf16.mxu1 %v1094_v0 }
  0x29   : > { %792 = vperm.xlu0 %1054, %v789_v24  }
  0x2e   : > { %1011 = vmatmul.mubr.msk.bf16.gmra.mrb[12].mxu0 %vm441_vm0, %v1065_v21  ;;  %1019 = vmatmul.mubr.msk.bf16.gmra.mrb[12].mxu1 %vm441_vm0, %v1065_v21 }
  0x2f   : > { %538 = vmatprep.mubr.bf16.mxu0 %v1094_v0  ;;  %651 = vmatprep.mubr.bf16.mxu1 %v1094_v0 }
  0x36   : > { %1012 = vmatmul.mubr.msk.bf16.gmra.mrb[16].mxu0 %vm441_vm0, %v1066_v26  ;;  %1020 = vmatmul.mubr.msk.bf16.gmra.mrb[16].mxu1 %vm441_vm0, %v1066_v26 }
  0x37   : > { %548 = vmatprep.mubr.bf16.mxu0 %v1094_v0  ;;  %661 = vmatprep.mubr.bf16.mxu1 %v1094_v0 }
  0x3e   : > { %1013 = vmatmul.mubr.msk.bf16.gmra.mrb[20].mxu0 %vm441_vm0, %v1067_v27  ;;  %1021 = vmatmul.mubr.msk.bf16.gmra.mrb[20].mxu1 %vm441_vm0, %v1067_v27 }
  0x3f   : > { %558 = vmatprep.mubr.bf16.mxu0 %v1094_v0  ;;  %671 = vmatprep.mubr.bf16.mxu1 %v1094_v0 }
  0x46   : > { %1014 = vmatmul.mubr.msk.bf16.gmra.mrb[24].mxu0 %vm441_vm0, %v1068_v28  ;;  %1022 = vmatmul.mubr.msk.bf16.gmra.mrb[24].mxu1 %vm441_vm0, %v1068_v28 }
  0x47   : > { %568 = vmatprep.mubr.bf16.mxu0 %v1094_v0  ;;  %681 = vmatprep.mubr.bf16.mxu1 %v1094_v0 }
  0x4e   : > { %1015 = vmatmul.mubr.msk.bf16.gmra.mrb[28].mxu0 %vm441_vm0, %v1069_v29  ;;  %1023 = vmatmul.mubr.msk.bf16.gmra.mrb[28].mxu1 %vm441_vm0, %v1069_v29 }
  0x4f   : > { %827 = vmatprep.mubr.bf16.mxu0 %v1094_v0  ;;  %868 = vmatprep.mubr.bf16.mxu1 %v1094_v0 }
  0x88   : > { %v304_v30 = vpop.permute.xlu0 %303  ;;  %v314_v32 = vpop.permute.xlu1 %313 }
  0x8c   : > { %v309_v31 = vpop.permute.xlu0 %308  ;;  %v319_v57 = vpop.permute.xlu1 %318 }
  0x90   : > { %v324_v22 = vpop.permute.xlu0 %323  ;;  %v329_v23 = vpop.permute.xlu1 %328 }
  0xe9   : > { %v500_v33 = vpop.f32.mrb[0].mxu0  ;;  %v613_v34 = vpop.f32.mrb[0].mxu1 }
  0xea   : > { %v501_v35 = vadd.f32 %v500_v33, %v304_v30  ;;  %v614_v36 = vadd.f32 %v613_v34, %v304_v30  ;;  %v502_v37 = vpop.f32.mrb[1].mxu0  ;;  %v615_v38 = vpop.f32.mrb[1].mxu1 }
  0xeb   : > { %v503_v39 = vadd.f32 %v502_v37, %v304_v30  ;;  %v616_v40 = vadd.f32 %v615_v38, %v304_v30  ;;  %v504_v41 = vpop.f32.mrb[2].mxu0  ;;  %v617_v42 = vpop.f32.mrb[2].mxu1 }
  0xec   : > { %v505_v43 = vadd.f32 %v504_v41, %v309_v31  ;;  %v618_v44 = vadd.f32 %v617_v42, %v309_v31  ;;  %v506_v45 = vpop.f32.mrb[3].mxu0  ;;  %v619_v46 = vpop.f32.mrb[3].mxu1  ;;  %v692_v49 = vmax.f32 %v501_v35, 0.0  ;;  %v694_v50 = vmax.f32 %v614_v36, 0.0 }
  0xed   : > { %v507_v47 = vadd.f32 %v506_v45, %v309_v31  ;;  %v620_v48 = vadd.f32 %v619_v46, %v309_v31  ;;  %v693_v53 = vmax.f32 %v503_v39, 0.0  ;;  %v695_v54 = vmax.f32 %v616_v40, 0.0 }
  0xee   : > { %v696_v51 = vmax.f32 %v505_v43, 0.0  ;;  %v698_v52 = vmax.f32 %v618_v44, 0.0 }
  0xef   : > { %v697_v55 = vmax.f32 %v507_v47, 0.0  ;;  %v699_v56 = vmax.f32 %v620_v48, 0.0 }
  0xf0   : > { %v757_v58 = vpack.c.bf16 %v696_v51, %v692_v49  ;;  %v759_v59 = vpack.c.bf16 %v698_v52, %v694_v50  ;;  %v334_v52 = vpop.permute.xlu0 %333 }
  0xf1   : > { %v758_v60 = vpack.c.bf16 %v697_v55, %v693_v53  ;;  %v760_v61 = vpack.c.bf16 %v699_v56, %v695_v54  ;;  %v510_v62 = vpop.f32.mrb[4].mxu0  ;;  %v623_v63 = vpop.f32.mrb[4].mxu1 }
  0xf2   : > { %v511_v0 = vadd.f32 %v510_v62, %v314_v32  ;;  %v624_v1 = vadd.f32 %v623_v63, %v314_v32  ;;  %v512_v2 = vpop.f32.mrb[5].mxu0  ;;  %v625_v3 = vpop.f32.mrb[5].mxu1 }
  0xf3   : > { %v513_v4 = vadd.f32 %v512_v2, %v314_v32  ;;  %v626_v5 = vadd.f32 %v625_v3, %v314_v32  ;;  %v514_v6 = vpop.f32.mrb[6].mxu0  ;;  %v627_v7 = vpop.f32.mrb[6].mxu1  ;;  %795 = vmatprep.subr.bf16.mxu0 %v758_v60  ;;  %836 = vmatprep.subr.bf16.mxu1 %v760_v61 }
  0xf4   : > { %v515_v8 = vadd.f32 %v514_v6, %v319_v57  ;;  %v628_v9 = vadd.f32 %v627_v7, %v319_v57  ;;  %v516_v10 = vpop.f32.mrb[7].mxu0  ;;  %v629_v11 = vpop.f32.mrb[7].mxu1  ;;  %796 = vmatpush1.bf16.msra.mxu0 %v757_v58  ;;  %837 = vmatpush1.bf16.msra.mxu1 %v759_v59  ;;  %v700_v14 = vmax.f32 %v511_v0, 0.0  ;;  %v702_v15 = vmax.f32 %v624_v1, 0.0 }
  0xf5   : > { %v517_v12 = vadd.f32 %v516_v10, %v319_v57  ;;  %v630_v13 = vadd.f32 %v629_v11, %v319_v57  ;;  %v701_v18 = vmax.f32 %v513_v4, 0.0  ;;  %v703_v19 = vmax.f32 %v626_v5, 0.0  ;;  %v339_v53 = vpop.permute.xlu1 %338 }
  0xf6   : > { %v704_v16 = vmax.f32 %v515_v8, 0.0  ;;  %v706_v17 = vmax.f32 %v628_v9, 0.0 }
  0xf7   : > { %v705_v20 = vmax.f32 %v517_v12, 0.0  ;;  %v707_v21 = vmax.f32 %v630_v13, 0.0 }
  0xf8   : > { %v761_v24 = vpack.c.bf16 %v704_v16, %v700_v14  ;;  %v763_v25 = vpack.c.bf16 %v706_v17, %v702_v15 }
  0xf9   : > { %v762_v26 = vpack.c.bf16 %v705_v20, %v701_v18  ;;  %v764_v27 = vpack.c.bf16 %v707_v21, %v703_v19  ;;  %v520_v28 = vpop.f32.mrb[8].mxu0  ;;  %v633_v29 = vpop.f32.mrb[8].mxu1 }
  0xfa   : > { %v521_v30 = vadd.f32 %v520_v28, %v324_v22  ;;  %v634_v31 = vadd.f32 %v633_v29, %v324_v22  ;;  %v522_v32 = vpop.f32.mrb[9].mxu0  ;;  %v635_v33 = vpop.f32.mrb[9].mxu1 }
  0xfb   : > { %v523_v34 = vadd.f32 %v522_v32, %v324_v22  ;;  %v636_v35 = vadd.f32 %v635_v33, %v324_v22  ;;  %v524_v36 = vpop.f32.mrb[10].mxu0  ;;  %v637_v37 = vpop.f32.mrb[10].mxu1  ;;  %797 = vmatprep.subr.bf16.mxu0 %v762_v26  ;;  %838 = vmatprep.subr.bf16.mxu1 %v764_v27 }
  0xfc   : > { %v525_v38 = vadd.f32 %v524_v36, %v329_v23  ;;  %v638_v39 = vadd.f32 %v637_v37, %v329_v23  ;;  %v526_v40 = vpop.f32.mrb[11].mxu0  ;;  %v639_v41 = vpop.f32.mrb[11].mxu1  ;;  %798 = vmatpush1.bf16.msra.mxu0 %v761_v24  ;;  %839 = vmatpush1.bf16.msra.mxu1 %v763_v25  ;;  %v708_v44 = vmax.f32 %v521_v30, 0.0  ;;  %v710_v45 = vmax.f32 %v634_v31, 0.0 }
  0xfd   : > { %v527_v42 = vadd.f32 %v526_v40, %v329_v23  ;;  %v640_v43 = vadd.f32 %v639_v41, %v329_v23  ;;  %v709_v48 = vmax.f32 %v523_v34, 0.0  ;;  %v711_v49 = vmax.f32 %v636_v35, 0.0  ;;  %v344_v18 = vpop.permute.xlu0 %343  ;;  %v349_v19 = vpop.permute.xlu1 %348 }
  0xfe   : > { %v712_v46 = vmax.f32 %v525_v38, 0.0  ;;  %v714_v47 = vmax.f32 %v638_v39, 0.0 }
  0xff   : > { %v713_v50 = vmax.f32 %v527_v42, 0.0  ;;  %v715_v51 = vmax.f32 %v640_v43, 0.0 }
 0x100   : > { %v765_v54 = vpack.c.bf16 %v712_v46, %v708_v44  ;;  %v767_v55 = vpack.c.bf16 %v714_v47, %v710_v45 }
 0x101   : > { %v766_v56 = vpack.c.bf16 %v713_v50, %v709_v48  ;;  %v768_v57 = vpack.c.bf16 %v715_v51, %v711_v49  ;;  %v530_v58 = vpop.f32.mrb[12].mxu0  ;;  %v643_v59 = vpop.f32.mrb[12].mxu1 }
 0x102   : > { %v531_v60 = vadd.f32 %v530_v58, %v334_v52  ;;  %v644_v61 = vadd.f32 %v643_v59, %v334_v52  ;;  %v532_v62 = vpop.f32.mrb[13].mxu0  ;;  %v645_v63 = vpop.f32.mrb[13].mxu1 }
 0x103   : > { %v533_v0 = vadd.f32 %v532_v62, %v334_v52  ;;  %v646_v1 = vadd.f32 %v645_v63, %v334_v52  ;;  %v534_v2 = vpop.f32.mrb[14].mxu0  ;;  %v647_v3 = vpop.f32.mrb[14].mxu1  ;;  %799 = vmatprep.subr.bf16.mxu0 %v766_v56  ;;  %840 = vmatprep.subr.bf16.mxu1 %v768_v57 }
 0x104   : > { %v535_v4 = vadd.f32 %v534_v2, %v339_v53  ;;  %v648_v5 = vadd.f32 %v647_v3, %v339_v53  ;;  %v536_v6 = vpop.f32.mrb[15].mxu0  ;;  %v649_v7 = vpop.f32.mrb[15].mxu1  ;;  %800 = vmatpush1.bf16.msra.mxu0 %v765_v54  ;;  %841 = vmatpush1.bf16.msra.mxu1 %v767_v55  ;;  %v716_v10 = vmax.f32 %v531_v60, 0.0  ;;  %v718_v11 = vmax.f32 %v644_v61, 0.0 }
 0x105   : > { %v537_v8 = vadd.f32 %v536_v6, %v339_v53  ;;  %v650_v9 = vadd.f32 %v649_v7, %v339_v53  ;;  %v717_v14 = vmax.f32 %v533_v0, 0.0  ;;  %v719_v15 = vmax.f32 %v646_v1, 0.0  ;;  %v354_v48 = vpop.permute.xlu0 %353  ;;  %v359_v49 = vpop.permute.xlu1 %358 }
 0x106   : > { %v720_v12 = vmax.f32 %v535_v4, 0.0  ;;  %v722_v13 = vmax.f32 %v648_v5, 0.0 }
 0x107   : > { %v721_v16 = vmax.f32 %v537_v8, 0.0  ;;  %v723_v17 = vmax.f32 %v650_v9, 0.0 }
 0x108   : > { %v769_v20 = vpack.c.bf16 %v720_v12, %v716_v10  ;;  %v771_v21 = vpack.c.bf16 %v722_v13, %v718_v11 }
 0x109   : > { %v770_v22 = vpack.c.bf16 %v721_v16, %v717_v14  ;;  %v772_v23 = vpack.c.bf16 %v723_v17, %v719_v15  ;;  %v540_v24 = vpop.f32.mrb[16].mxu0  ;;  %v653_v25 = vpop.f32.mrb[16].mxu1 }
 0x10a   : > { %v541_v26 = vadd.f32 %v540_v24, %v344_v18  ;;  %v654_v27 = vadd.f32 %v653_v25, %v344_v18  ;;  %v542_v28 = vpop.f32.mrb[17].mxu0  ;;  %v655_v29 = vpop.f32.mrb[17].mxu1 }
 0x10b   : > { %v543_v30 = vadd.f32 %v542_v28, %v344_v18  ;;  %v656_v31 = vadd.f32 %v655_v29, %v344_v18  ;;  %v544_v32 = vpop.f32.mrb[18].mxu0  ;;  %v657_v33 = vpop.f32.mrb[18].mxu1  ;;  %801 = vmatprep.subr.bf16.mxu0 %v770_v22  ;;  %842 = vmatprep.subr.bf16.mxu1 %v772_v23 }
 0x10c   : > { %v545_v34 = vadd.f32 %v544_v32, %v349_v19  ;;  %v658_v35 = vadd.f32 %v657_v33, %v349_v19  ;;  %v546_v36 = vpop.f32.mrb[19].mxu0  ;;  %v659_v37 = vpop.f32.mrb[19].mxu1  ;;  %802 = vmatpush1.bf16.msra.mxu0 %v769_v20  ;;  %843 = vmatpush1.bf16.msra.mxu1 %v771_v21  ;;  %v724_v40 = vmax.f32 %v541_v26, 0.0  ;;  %v726_v41 = vmax.f32 %v654_v27, 0.0 }
 0x10d   : > { %v547_v38 = vadd.f32 %v546_v36, %v349_v19  ;;  %v660_v39 = vadd.f32 %v659_v37, %v349_v19  ;;  %v725_v44 = vmax.f32 %v543_v30, 0.0  ;;  %v727_v45 = vmax.f32 %v656_v31, 0.0  ;;  %v364_v14 = vpop.permute.xlu0 %363  ;;  %v369_v15 = vpop.permute.xlu1 %368 }
 0x10e   : > { %v728_v42 = vmax.f32 %v545_v34, 0.0  ;;  %v730_v43 = vmax.f32 %v658_v35, 0.0 }
 0x10f   : > { %v729_v46 = vmax.f32 %v547_v38, 0.0  ;;  %v731_v47 = vmax.f32 %v660_v39, 0.0 }
 0x110   : > { %v773_v50 = vpack.c.bf16 %v728_v42, %v724_v40  ;;  %v775_v51 = vpack.c.bf16 %v730_v43, %v726_v41 }
 0x111   : > { %v774_v52 = vpack.c.bf16 %v729_v46, %v725_v44  ;;  %v776_v53 = vpack.c.bf16 %v731_v47, %v727_v45  ;;  %v550_v54 = vpop.f32.mrb[20].mxu0  ;;  %v663_v55 = vpop.f32.mrb[20].mxu1 }
 0x112   : > { %v551_v56 = vadd.f32 %v550_v54, %v354_v48  ;;  %v664_v57 = vadd.f32 %v663_v55, %v354_v48  ;;  %v552_v58 = vpop.f32.mrb[21].mxu0  ;;  %v665_v59 = vpop.f32.mrb[21].mxu1 }
 0x113   : > { %v553_v60 = vadd.f32 %v552_v58, %v354_v48  ;;  %v666_v61 = vadd.f32 %v665_v59, %v354_v48  ;;  %v554_v62 = vpop.f32.mrb[22].mxu0  ;;  %v667_v63 = vpop.f32.mrb[22].mxu1  ;;  %803 = vmatprep.subr.bf16.mxu0 %v774_v52  ;;  %844 = vmatprep.subr.bf16.mxu1 %v776_v53 }
 0x114   : > { %v555_v0 = vadd.f32 %v554_v62, %v359_v49  ;;  %v668_v1 = vadd.f32 %v667_v63, %v359_v49  ;;  %v556_v2 = vpop.f32.mrb[23].mxu0  ;;  %v669_v3 = vpop.f32.mrb[23].mxu1  ;;  %804 = vmatpush1.bf16.msra.mxu0 %v773_v50  ;;  %845 = vmatpush1.bf16.msra.mxu1 %v775_v51  ;;  %v732_v6 = vmax.f32 %v551_v56, 0.0  ;;  %v734_v7 = vmax.f32 %v664_v57, 0.0 }
 0x115   : > { %v557_v4 = vadd.f32 %v556_v2, %v359_v49  ;;  %v670_v5 = vadd.f32 %v669_v3, %v359_v49  ;;  %v733_v10 = vmax.f32 %v553_v60, 0.0  ;;  %v735_v11 = vmax.f32 %v666_v61, 0.0  ;;  %v374_v44 = vpop.permute.xlu0 %373  ;;  %v379_v45 = vpop.permute.xlu1 %378 }
 0x116   : > { %v736_v8 = vmax.f32 %v555_v0, 0.0  ;;  %v738_v9 = vmax.f32 %v668_v1, 0.0 }
 0x117   : > { %v737_v12 = vmax.f32 %v557_v4, 0.0  ;;  %v739_v13 = vmax.f32 %v670_v5, 0.0 }
 0x118   : > { %v777_v16 = vpack.c.bf16 %v736_v8, %v732_v6  ;;  %v779_v17 = vpack.c.bf16 %v738_v9, %v734_v7 }
 0x119   : > { %v778_v18 = vpack.c.bf16 %v737_v12, %v733_v10  ;;  %v780_v19 = vpack.c.bf16 %v739_v13, %v735_v11  ;;  %v560_v20 = vpop.f32.mrb[24].mxu0  ;;  %v673_v21 = vpop.f32.mrb[24].mxu1 }
 0x11a   : > { %v561_v22 = vadd.f32 %v560_v20, %v364_v14  ;;  %v674_v23 = vadd.f32 %v673_v21, %v364_v14  ;;  %v562_v24 = vpop.f32.mrb[25].mxu0  ;;  %v675_v25 = vpop.f32.mrb[25].mxu1 }
 0x11b   : > { %v563_v26 = vadd.f32 %v562_v24, %v364_v14  ;;  %v676_v27 = vadd.f32 %v675_v25, %v364_v14  ;;  %v564_v28 = vpop.f32.mrb[26].mxu0  ;;  %v677_v29 = vpop.f32.mrb[26].mxu1  ;;  %805 = vmatprep.subr.bf16.mxu0 %v778_v18  ;;  %846 = vmatprep.subr.bf16.mxu1 %v780_v19  ;;  %v756_v14 = vld [vmem:[%s1280_s3] sm:$0x1] }
 0x11c   : > { %v565_v30 = vadd.f32 %v564_v28, %v369_v15  ;;  %v678_v31 = vadd.f32 %v677_v29, %v369_v15  ;;  %v566_v32 = vpop.f32.mrb[27].mxu0  ;;  %v679_v33 = vpop.f32.mrb[27].mxu1  ;;  %806 = vmatpush1.bf16.msra.mxu0 %v777_v16  ;;  %847 = vmatpush1.bf16.msra.mxu1 %v779_v17  ;;  %v740_v36 = vmax.f32 %v561_v22, 0.0  ;;  %v742_v37 = vmax.f32 %v674_v23, 0.0 }
 0x11d   : > { %v567_v34 = vadd.f32 %v566_v32, %v369_v15  ;;  %v680_v35 = vadd.f32 %v679_v33, %v369_v15  ;;  %v741_v40 = vmax.f32 %v563_v26, 0.0  ;;  %v743_v41 = vmax.f32 %v676_v27, 0.0  ;;  %v793_v20 = vpop.permute.xlu0 %792 }
 0x11e   : > { %v744_v38 = vmax.f32 %v565_v30, 0.0  ;;  %v746_v39 = vmax.f32 %v678_v31, 0.0  ;;  %v1095_v15 = vmov 1983009808   ;;  %v886_v17 = vlaneseq }
 0x11f   : > { %v745_v42 = vmax.f32 %v567_v34, 0.0  ;;  %v747_v43 = vmax.f32 %v680_v35, 0.0  ;;  %v884_v16 = vunpack.c.l.s4 %v1095_v15 }
 0x120   : > { %v781_v46 = vpack.c.bf16 %v744_v38, %v740_v36  ;;  %v783_v47 = vpack.c.bf16 %v746_v39, %v742_v37  ;;  %v887_v19 = vshrl.u32 %v886_v17, 7 }
 0x121   : > { %v782_v48 = vpack.c.bf16 %v745_v42, %v741_v40  ;;  %v784_v49 = vpack.c.bf16 %v747_v43, %v743_v41  ;;  %v570_v50 = vpop.f32.mrb[28].mxu0  ;;  %v683_v51 = vpop.f32.mrb[28].mxu1  ;;  %v885_v18 = vunpack.c.0.s8 %v884_v16 }
 0x122   : > { %v571_v52 = vadd.f32 %v570_v50, %v374_v44  ;;  %v684_v53 = vadd.f32 %v683_v51, %v374_v44  ;;  %v572_v54 = vpop.f32.mrb[29].mxu0  ;;  %v685_v55 = vpop.f32.mrb[29].mxu1 }
 0x123   : > { %v573_v56 = vadd.f32 %v572_v54, %v374_v44  ;;  %v686_v57 = vadd.f32 %v685_v55, %v374_v44  ;;  %v574_v58 = vpop.f32.mrb[30].mxu0  ;;  %v687_v59 = vpop.f32.mrb[30].mxu1  ;;  %807 = vmatprep.subr.bf16.mxu0 %v782_v48  ;;  %848 = vmatprep.subr.bf16.mxu1 %v784_v49  ;;  %v888_v28 = vsub.s32 %v885_v18, %v887_v19 }
 0x124   : > { %v575_v60 = vadd.f32 %v574_v58, %v379_v45  ;;  %v688_v61 = vadd.f32 %v687_v59, %v379_v45  ;;  %v576_v62 = vpop.f32.mrb[31].mxu0  ;;  %v689_v63 = vpop.f32.mrb[31].mxu1  ;;  %808 = vmatpush1.bf16.msra.mxu0 %v781_v46  ;;  %849 = vmatpush1.bf16.msra.mxu1 %v783_v47  ;;  %v748_v2 = vmax.f32 %v571_v52, 0.0  ;;  %v750_v3 = vmax.f32 %v684_v53, 0.0 }
 0x125   : > { %v577_v0 = vadd.f32 %v576_v62, %v379_v45  ;;  %v690_v1 = vadd.f32 %v689_v63, %v379_v45  ;;  %v749_v6 = vmax.f32 %v573_v56, 0.0  ;;  %v751_v7 = vmax.f32 %v686_v57, 0.0 }
 0x126   : > { %v752_v4 = vmax.f32 %v575_v60, 0.0  ;;  %v754_v5 = vmax.f32 %v688_v61, 0.0 }
 0x127   : > { %v753_v8 = vmax.f32 %v577_v0, 0.0  ;;  %v755_v9 = vmax.f32 %v690_v1, 0.0 }
 0x128   : > { %v785_v10 = vpack.c.bf16 %v752_v4, %v748_v2  ;;  %v787_v11 = vpack.c.bf16 %v754_v5, %v750_v3 }
 0x129   : > { %v786_v12 = vpack.c.bf16 %v753_v8, %v749_v6  ;;  %v788_v13 = vpack.c.bf16 %v755_v9, %v751_v7 }
 0x12b   : > { %809 = vmatprep.subr.bf16.mxu0 %v786_v12  ;;  %850 = vmatprep.subr.bf16.mxu1 %v788_v13 }
 0x12c   : > { %810 = vmatpush1.bf16.msra.mxu0 %v785_v10  ;;  %851 = vmatpush1.bf16.msra.mxu1 %v787_v11 }
 0x12f   : > { %828 = vmatmul.mubr.bf16.vlgmr.msra.gmra.mrb[32].mxu0 %v756_v14  ;;  %869 = vmatmul.mubr.bf16.vlgmr.msra.gmra.mrb[32].mxu1 %v756_v14 }
 0x202   : > { %v829_v21 = vpop.f32.mrb[32].mxu0  ;;  %v870_v22 = vpop.f32.mrb[32].mxu1 }
 0x203   : > { %v830_v23 = vadd.f32 %v829_v21, %v793_v20  ;;  %v871_v24 = vadd.f32 %v870_v22, %v793_v20  ;;  %v831_v25 = vpop.f32.mrb[33].mxu0  ;;  %v872_v26 = vpop.f32.mrb[33].mxu1 }
 0x204   : > { %v832_v27 = vadd.f32 %v831_v25, %v793_v20  ;;  %v873_v29 = vadd.f32 %v872_v26, %v793_v20  ;;  %v833_v30 = vpop.f32.mrb[34].mxu0  ;;  %v874_v31 = vpop.f32.mrb[34].mxu1 }
 0x205   : > { %v834_v32 = vpop.f32.mrb[35].mxu0  ;;  %v875_v33 = vpop.f32.mrb[35].mxu1 }
 0x206   : > { %v881_v34 = vcombine.low %v830_v23, %v832_v27  ;;  %v882_v35 = vcombine.low %v871_v24, %v873_v29 }
 0x208   : > { %v889_v36 = vrot.slane %v881_v34, %v888_v28  ;;  %v896_v37 = vrot.slane %v882_v35, %v888_v28 }
 0x20a   : > { %v897_v38 = vcombine.low %v889_v36, %v896_v37 }
 0x20c   : > { %899 = vst [vmem:[%s262_s14] sm:$0xff] %v897_v38 }
 0x20d PF: > { %s15_s20 = sadd.s32 1, %s1092_s20   ;;  %s1283_s18 = smov %s1088_s19 }
 0x20e   : > { %p12_p5 = scmp.ge.s32.totalorder %s15_s20, 4   ;;  %s1284_s19 = smov %s1286_s21 }
 0x210   :  { %14 = sbr.rel (!%p12_p5) target bundleno = 2 (0x2), region = 70 }

// kernel: ptcnet_forward.5
= control target key start
LH: loop header
LB: loop body
LE: loop exit
PB: predicated region body
PF: predicated region fallthrough
CT: control target
= control target key end

     0   :  { %s887_s18 = smov 0   ;;  %s889_s19 = smov 0   ;;  %s1021_s0 = inlined_call_operand.vmem [shape: bf16[2,16,256], index: 0, kind: input, shape index: {}]   ;;  %s1022_s1 = inlined_call_operand.vmem [shape: bf16[128,16], index: 1, kind: input, shape index: {}]   ;;  %s1023_s2 = inlined_call_operand.vmem [shape: f32[128,1], index: 2, kind: input, shape index: {}]   ;;  %s1024_s3 = inlined_call_operand.vmem [shape: bf16[2,128], index: 3, kind: input, shape index: {}]   ;;  %s1025_s4 = inlined_call_operand.vmem [shape: f32[2,1], index: 4, kind: input, shape index: {}]   ;;  %s1026_s5 = inlined_call_operand.vmem [shape: f32[2,2,256], index: 5, kind: output, shape index: {}]  }
   0x1   :  { %s891_s20 = smov 0  }
   0x2 LB: > { %s27_s21 = sadd.s32 1, %s850_s19  ;;  %p766_p0 = scmp.ge.s32.totalorder %s854_s20, 1  ;;  %s854_s20 = sphi %s891_s20, %s15_s20   ;;  %s850_s19 = sphi %s889_s19, %s1028_s19   ;;  %s846_s18 = sphi %s887_s18, %s1027_s18  }
   0x3   : > { %p29_p1 = scmp.ge.s32.totalorder %s27_s21, 2  ;;  %p208_p2 = scmp.lt.s32.totalorder %s854_s20, 3 }
   0x5   : > { %s1030_s21 = smov (%p29_p1, %s27_s21), 0  ;;  %p209_p3 = pnand %p766_p0, %p208_p2 }
   0x6   : > { %p245_p4 = scmp.lt.s32.totalorder (!%p209_p3), %s846_s18, 1  ;;  %v856_v0 = vmov (!%p209_p3), 0   ;;  %v824_v3 = vld [vmem:[%s1022_s1] sm:$0xff] (!%p209_p3)   ;;  %vm429_vm0 = vcmask (!%p209_p3), 130048   ;;  %v285_v5 = vld [vmem:[%s1023_s2 + $0x10] sm:$0xff] (!%p209_p3)  ;;  %v284_v6 = vld [vmem:[%s1023_s2 + $0x8] sm:$0xff] (!%p209_p3) }
   0x7   : > { %212 = sbr.rel (%p209_p3) target bundleno = 521 (0x209), region = 40  ;;  %486 = vmatprep.mubr.bf16.mxu0 (!%p209_p3), %v856_v0  ;;  %819 = vset.pattern.permute.xlu0 (!%p209_p3), %v856_v0  ;;  %v283_v4 = vld [vmem:[%s1023_s2] sm:$0xff] (!%p209_p3)  ;;  %v286_v7 = vld [vmem:[%s1023_s2 + $0x18] sm:$0xff] (!%p209_p3)  ;;  %v825_v9 = vld [vmem:[%s1022_s1 + $0x8] sm:$0xff] (!%p209_p3)  }
   0x8   : > { %820 = vset.pattern.permute.xlu1 (!%p209_p3), %v856_v0  ;;  %654 = vmatprep.mubr.bf16.mxu1 (!%p209_p3), %v856_v0  ;;  %v287_v8 = vld [vmem:[%s1023_s2 + $0x20] sm:$0xff] (!%p209_p3)  ;;  %v288_v10 = vld [vmem:[%s1023_s2 + $0x28] sm:$0xff] (!%p209_p3)  ;;  %v289_v11 = vld [vmem:[%s1023_s2 + $0x30] sm:$0xff] (!%p209_p3) }
   0x9   : > { %301 = vperm.xlu0 (!%p209_p3), %819, %v283_v4   ;;  %311 = vperm.xlu1 (!%p209_p3), %820, %v285_v5   ;;  %v290_v12 = vld [vmem:[%s1023_s2 + $0x38] sm:$0xff] (!%p209_p3)  ;;  %v291_v13 = vld [vmem:[%s1023_s2 + $0x40] sm:$0xff] (!%p209_p3)  ;;  %v826_v14 = vld [vmem:[%s1022_s1 + $0x10] sm:$0xff] (!%p209_p3)  }
   0xa   : > { %v292_v15 = vld [vmem:[%s1023_s2 + $0x48] sm:$0xff] (!%p209_p3)  ;;  %v293_v16 = vld [vmem:[%s1023_s2 + $0x50] sm:$0xff] (!%p209_p3)  ;;  %v294_v17 = vld [vmem:[%s1023_s2 + $0x58] sm:$0xff] (!%p209_p3) }
   0xb   : > { %v295_v18 = vld [vmem:[%s1023_s2 + $0x60] sm:$0xff] (!%p209_p3)  ;;  %v827_v19 = vld [vmem:[%s1022_s1 + $0x18] sm:$0xff] (!%p209_p3)   ;;  %v296_v20 = vld [vmem:[%s1023_s2 + $0x68] sm:$0xff] (!%p209_p3) }
   0xc   : > { %v297_v21 = vld [vmem:[%s1023_s2 + $0x70] sm:$0xff] (!%p209_p3)  ;;  %v298_v22 = vld [vmem:[%s1023_s2 + $0x78] sm:$0xff] (!%p209_p3)  ;;  %v616_v23 = vld [vmem:[%s1025_s4] sm:$0x3] (!%p209_p3) }
   0xd   : > { %306 = vperm.xlu0 (!%p209_p3), %819, %v284_v6   ;;  %316 = vperm.xlu1 (!%p209_p3), %820, %v286_v7   ;;  %v828_v24 = vld [vmem:[%s1022_s1 + $0x20] sm:$0xff] (!%p209_p3)   ;;  %v829_v25 = vld [vmem:[%s1022_s1 + $0x28] sm:$0xff] (!%p209_p3)   ;;  %v830_v26 = vld [vmem:[%s1022_s1 + $0x30] sm:$0xff] (!%p209_p3)  }
   0xe   : > { %s1032_s18 = smov (!%p245_p4, %s846_s18), 1  ;;  %v831_v27 = vld [vmem:[%s1022_s1 + $0x38] sm:$0xff]  }
   0xf   : > { %s792_s22 = sshll.u32 %s1032_s18, 4  ;;  %s793_s11 = sshll.u32 %s1032_s18, 2 }
  0x10   : > { %s252_s25 = scalar_lea.vmem %s1021_s0, %s792_s22  ;;  %s262_s14 = scalar_lea.vmem %s1026_s5, %s793_s11 }
  0x11   : > { %v821_v1 = vld [vmem:[%s252_s25 + $0x4] ss:$8 sps:$4 sm:$0xff]   ;;  %v823_v2 = vld [vmem:[%s252_s25] ss:$8 sps:$4 sm:$0xff]   ;;  %321 = vperm.xlu0 %819, %v287_v8   ;;  %326 = vperm.xlu1 %820, %v288_v10  }
  0x12   : > { %454 = vmatprep.subr.bf16.mxu0 %v821_v1 }
  0x13   : > { %455 = vmatpush1.bf16.msra.mxu0 %v823_v2 }
  0x15   : > { %331 = vperm.xlu0 %819, %v289_v11   ;;  %336 = vperm.xlu1 %820, %v290_v12  }
  0x16   : > { %781 = vmatmul.mubr.msk.bf16.vlgmr.msra.gmra.mrb[0].mxu0 %vm429_vm0, %v824_v3 }
  0x17   : > { %496 = vmatprep.mubr.bf16.mxu0 %v856_v0 }
  0x19   : > { %341 = vperm.xlu0 %819, %v291_v13   ;;  %346 = vperm.xlu1 %820, %v292_v15  }
  0x1d   : > { %351 = vperm.xlu0 %819, %v293_v16   ;;  %356 = vperm.xlu1 %820, %v294_v17  }
  0x1e   : > { %782 = vmatmul.mubr.msk.bf16.gmra.mrb[4].mxu0 %vm429_vm0, %v825_v9 }
  0x1f   : > { %506 = vmatprep.mubr.bf16.mxu0 %v856_v0 }
  0x21   : > { %361 = vperm.xlu0 %819, %v295_v18   ;;  %366 = vperm.xlu1 %820, %v296_v20  }
  0x25   : > { %371 = vperm.xlu0 %819, %v297_v21   ;;  %376 = vperm.xlu1 %820, %v298_v22  }
  0x26   : > { %783 = vmatmul.mubr.msk.bf16.gmra.mrb[8].mxu0 %vm429_vm0, %v826_v14 }
  0x27   : > { %516 = vmatprep.mubr.bf16.mxu0 %v856_v0 }
  0x29   : > { %619 = vperm.xlu0 %819, %v616_v23  }
  0x2e   : > { %784 = vmatmul.mubr.msk.bf16.gmra.mrb[12].mxu0 %vm429_vm0, %v827_v19 }
  0x2f   : > { %526 = vmatprep.mubr.bf16.mxu0 %v856_v0 }
  0x36   : > { %785 = vmatmul.mubr.msk.bf16.gmra.mrb[16].mxu0 %vm429_vm0, %v828_v24 }
  0x37   : > { %536 = vmatprep.mubr.bf16.mxu0 %v856_v0 }
  0x3e   : > { %786 = vmatmul.mubr.msk.bf16.gmra.mrb[20].mxu0 %vm429_vm0, %v829_v25 }
  0x3f   : > { %546 = vmatprep.mubr.bf16.mxu0 %v856_v0 }
  0x46   : > { %787 = vmatmul.mubr.msk.bf16.gmra.mrb[24].mxu0 %vm429_vm0, %v830_v26 }
  0x47   : > { %556 = vmatprep.mubr.bf16.mxu0 %v856_v0 }
  0x4e   : > { %788 = vmatmul.mubr.msk.bf16.gmra.mrb[28].mxu0 %vm429_vm0, %v831_v27 }
  0x88   : > { %v302_v28 = vpop.permute.xlu0 %301  ;;  %v312_v37 = vpop.permute.xlu1 %311 }
  0x8c   : > { %v307_v32 = vpop.permute.xlu0 %306  ;;  %v317_v48 = vpop.permute.xlu1 %316 }
  0x90   : > { %v322_v59 = vpop.permute.xlu0 %321  ;;  %v327_v0 = vpop.permute.xlu1 %326 }
  0x94   : > { %v332_v11 = vpop.permute.xlu0 %331  ;;  %v337_v16 = vpop.permute.xlu1 %336 }
  0x98   : > { %v342_v27 = vpop.permute.xlu0 %341 }
  0xe9   : > { %v488_v29 = vpop.f32.mrb[0].mxu0 }
  0xea   : > { %v489_v30 = vadd.f32 %v488_v29, %v302_v28  ;;  %v490_v31 = vpop.f32.mrb[1].mxu0 }
  0xeb   : > { %v491_v33 = vadd.f32 %v490_v31, %v302_v28  ;;  %v492_v34 = vpop.f32.mrb[2].mxu0 }
  0xec   : > { %v493_v35 = vadd.f32 %v492_v34, %v307_v32  ;;  %v494_v36 = vpop.f32.mrb[3].mxu0  ;;  %v567_v39 = vmax.f32 %v489_v30, 0.0 }
  0xed   : > { %v495_v38 = vadd.f32 %v494_v36, %v307_v32  ;;  %v568_v41 = vmax.f32 %v491_v33, 0.0  ;;  %v347_v32 = vpop.permute.xlu1 %346 }
  0xee   : > { %v569_v40 = vmax.f32 %v493_v35, 0.0 }
  0xef   : > { %v570_v42 = vmax.f32 %v495_v38, 0.0 }
  0xf0   : > { %v600_v43 = vpack.c.bf16 %v569_v40, %v567_v39 }
  0xf1   : > { %v498_v44 = vpop.f32.mrb[4].mxu0  ;;  %v601_v45 = vpack.c.bf16 %v570_v42, %v568_v41 }
  0xf2   : > { %v499_v46 = vadd.f32 %v498_v44, %v312_v37  ;;  %v500_v47 = vpop.f32.mrb[5].mxu0 }
  0xf3   : > { %v501_v49 = vadd.f32 %v500_v47, %v312_v37  ;;  %v502_v50 = vpop.f32.mrb[6].mxu0  ;;  %622 = vmatprep.subr.bf16.mxu1 %v601_v45 }
  0xf4   : > { %v503_v51 = vadd.f32 %v502_v50, %v317_v48  ;;  %v504_v52 = vpop.f32.mrb[7].mxu0  ;;  %623 = vmatpush1.bf16.msra.mxu1 %v600_v43  ;;  %v571_v54 = vmax.f32 %v499_v46, 0.0  ;;  %v352_v43 = vpop.permute.xlu0 %351 }
  0xf5   : > { %v505_v53 = vadd.f32 %v504_v52, %v317_v48  ;;  %v572_v56 = vmax.f32 %v501_v49, 0.0  ;;  %v357_v48 = vpop.permute.xlu1 %356 }
  0xf6   : > { %v573_v55 = vmax.f32 %v503_v51, 0.0 }
  0xf7   : > { %v574_v57 = vmax.f32 %v505_v53, 0.0 }
  0xf8   : > { %v602_v58 = vpack.c.bf16 %v573_v55, %v571_v54 }
  0xf9   : > { %v603_v60 = vpack.c.bf16 %v574_v57, %v572_v56  ;;  %v508_v61 = vpop.f32.mrb[8].mxu0 }
  0xfa   : > { %v509_v62 = vadd.f32 %v508_v61, %v322_v59  ;;  %v510_v63 = vpop.f32.mrb[9].mxu0 }
  0xfb   : > { %v511_v1 = vadd.f32 %v510_v63, %v322_v59  ;;  %v512_v2 = vpop.f32.mrb[10].mxu0  ;;  %624 = vmatprep.subr.bf16.mxu1 %v603_v60  ;;  %v362_v59 = vpop.permute.xlu0 %361 }
  0xfc   : > { %v513_v3 = vadd.f32 %v512_v2, %v327_v0  ;;  %v514_v4 = vpop.f32.mrb[11].mxu0  ;;  %625 = vmatpush1.bf16.msra.mxu1 %v602_v58  ;;  %v575_v6 = vmax.f32 %v509_v62, 0.0 }
  0xfd   : > { %v515_v5 = vadd.f32 %v514_v4, %v327_v0  ;;  %v576_v8 = vmax.f32 %v511_v1, 0.0  ;;  %v367_v0 = vpop.permute.xlu1 %366 }
  0xfe   : > { %v577_v7 = vmax.f32 %v513_v3, 0.0 }
  0xff   : > { %v578_v9 = vmax.f32 %v515_v5, 0.0 }
 0x100   : > { %v604_v10 = vpack.c.bf16 %v577_v7, %v575_v6 }
 0x101   : > { %v605_v12 = vpack.c.bf16 %v578_v9, %v576_v8  ;;  %v518_v13 = vpop.f32.mrb[12].mxu0 }
 0x102   : > { %v519_v14 = vadd.f32 %v518_v13, %v332_v11  ;;  %v520_v15 = vpop.f32.mrb[13].mxu0 }
 0x103   : > { %v521_v17 = vadd.f32 %v520_v15, %v332_v11  ;;  %v522_v18 = vpop.f32.mrb[14].mxu0  ;;  %626 = vmatprep.subr.bf16.mxu1 %v605_v12  ;;  %v372_v11 = vpop.permute.xlu0 %371 }
 0x104   : > { %v523_v19 = vadd.f32 %v522_v18, %v337_v16  ;;  %v524_v20 = vpop.f32.mrb[15].mxu0  ;;  %627 = vmatpush1.bf16.msra.mxu1 %v604_v10  ;;  %v579_v22 = vmax.f32 %v519_v14, 0.0 }
 0x105   : > { %v525_v21 = vadd.f32 %v524_v20, %v337_v16  ;;  %v580_v24 = vmax.f32 %v521_v17, 0.0  ;;  %v377_v16 = vpop.permute.xlu1 %376 }
 0x106   : > { %v581_v23 = vmax.f32 %v523_v19, 0.0 }
 0x107   : > { %v582_v25 = vmax.f32 %v525_v21, 0.0 }
 0x108   : > { %v606_v26 = vpack.c.bf16 %v581_v23, %v579_v22 }
 0x109   : > { %v607_v28 = vpack.c.bf16 %v582_v25, %v580_v24  ;;  %v528_v29 = vpop.f32.mrb[16].mxu0 }
 0x10a   : > { %v529_v30 = vadd.f32 %v528_v29, %v342_v27  ;;  %v530_v31 = vpop.f32.mrb[17].mxu0  ;;  %v620_v29 = vpop.permute.xlu0 %619 }
 0x10b   : > { %v531_v33 = vadd.f32 %v530_v31, %v342_v27  ;;  %v532_v34 = vpop.f32.mrb[18].mxu0  ;;  %628 = vmatprep.subr.bf16.mxu1 %v607_v28  ;;  %v599_v28 = vld [vmem:[%s1024_s3] sm:$0x1] }
 0x10c   : > { %v533_v35 = vadd.f32 %v532_v34, %v347_v32  ;;  %v534_v36 = vpop.f32.mrb[19].mxu0  ;;  %629 = vmatpush1.bf16.msra.mxu1 %v606_v26  ;;  %v583_v38 = vmax.f32 %v529_v30, 0.0 }
 0x10d   : > { %v535_v37 = vadd.f32 %v534_v36, %v347_v32  ;;  %v584_v40 = vmax.f32 %v531_v33, 0.0 }
 0x10e   : > { %v585_v39 = vmax.f32 %v533_v35, 0.0 }
 0x10f   : > { %v586_v41 = vmax.f32 %v535_v37, 0.0 }
 0x110   : > { %v608_v42 = vpack.c.bf16 %v585_v39, %v583_v38 }
 0x111   : > { %v609_v44 = vpack.c.bf16 %v586_v41, %v584_v40  ;;  %v538_v45 = vpop.f32.mrb[20].mxu0 }
 0x112   : > { %v539_v46 = vadd.f32 %v538_v45, %v352_v43  ;;  %v540_v47 = vpop.f32.mrb[21].mxu0 }
 0x113   : > { %v541_v49 = vadd.f32 %v540_v47, %v352_v43  ;;  %v542_v50 = vpop.f32.mrb[22].mxu0  ;;  %630 = vmatprep.subr.bf16.mxu1 %v609_v44 }
 0x114   : > { %v543_v51 = vadd.f32 %v542_v50, %v357_v48  ;;  %v544_v52 = vpop.f32.mrb[23].mxu0  ;;  %631 = vmatpush1.bf16.msra.mxu1 %v608_v42  ;;  %v587_v54 = vmax.f32 %v539_v46, 0.0 }
 0x115   : > { %v545_v53 = vadd.f32 %v544_v52, %v357_v48  ;;  %v588_v56 = vmax.f32 %v541_v49, 0.0 }
 0x116   : > { %v589_v55 = vmax.f32 %v543_v51, 0.0 }
 0x117   : > { %v590_v57 = vmax.f32 %v545_v53, 0.0 }
 0x118   : > { %v610_v58 = vpack.c.bf16 %v589_v55, %v587_v54 }
 0x119   : > { %v611_v60 = vpack.c.bf16 %v590_v57, %v588_v56  ;;  %v548_v61 = vpop.f32.mrb[24].mxu0 }
 0x11a   : > { %v549_v62 = vadd.f32 %v548_v61, %v362_v59  ;;  %v550_v63 = vpop.f32.mrb[25].mxu0 }
 0x11b   : > { %v551_v1 = vadd.f32 %v550_v63, %v362_v59  ;;  %v552_v2 = vpop.f32.mrb[26].mxu0  ;;  %632 = vmatprep.subr.bf16.mxu1 %v611_v60 }
 0x11c   : > { %v553_v3 = vadd.f32 %v552_v2, %v367_v0  ;;  %v554_v4 = vpop.f32.mrb[27].mxu0  ;;  %633 = vmatpush1.bf16.msra.mxu1 %v610_v58  ;;  %v591_v6 = vmax.f32 %v549_v62, 0.0 }
 0x11d   : > { %v555_v5 = vadd.f32 %v554_v4, %v367_v0  ;;  %v592_v8 = vmax.f32 %v551_v1, 0.0 }
 0x11e   : > { %v593_v7 = vmax.f32 %v553_v3, 0.0 }
 0x11f   : > { %v594_v9 = vmax.f32 %v555_v5, 0.0 }
 0x120   : > { %v612_v10 = vpack.c.bf16 %v593_v7, %v591_v6 }
 0x121   : > { %v613_v12 = vpack.c.bf16 %v594_v9, %v592_v8  ;;  %v558_v13 = vpop.f32.mrb[28].mxu0 }
 0x122   : > { %v559_v14 = vadd.f32 %v558_v13, %v372_v11  ;;  %v560_v15 = vpop.f32.mrb[29].mxu0 }
 0x123   : > { %v561_v17 = vadd.f32 %v560_v15, %v372_v11  ;;  %v562_v18 = vpop.f32.mrb[30].mxu0  ;;  %634 = vmatprep.subr.bf16.mxu1 %v613_v12 }
 0x124   : > { %v563_v19 = vadd.f32 %v562_v18, %v377_v16  ;;  %v564_v20 = vpop.f32.mrb[31].mxu0  ;;  %635 = vmatpush1.bf16.msra.mxu1 %v612_v10  ;;  %v595_v22 = vmax.f32 %v559_v14, 0.0 }
 0x125   : > { %v565_v21 = vadd.f32 %v564_v20, %v377_v16  ;;  %v596_v24 = vmax.f32 %v561_v17, 0.0 }
 0x126   : > { %v597_v23 = vmax.f32 %v563_v19, 0.0 }
 0x127   : > { %v598_v25 = vmax.f32 %v565_v21, 0.0 }
 0x128   : > { %v614_v26 = vpack.c.bf16 %v597_v23, %v595_v22 }
 0x129   : > { %v615_v27 = vpack.c.bf16 %v598_v25, %v596_v24 }
 0x12b   : > { %636 = vmatprep.subr.bf16.mxu1 %v615_v27 }
 0x12c   : > { %637 = vmatpush1.bf16.msra.mxu1 %v614_v26 }
 0x12f   : > { %655 = vmatmul.mubr.bf16.vlgmr.msra.gmra.mrb[0].mxu1 %v599_v28 }
 0x202   : > { %v656_v30 = vpop.f32.mrb[0].mxu1 }
 0x203   : > { %v657_v31 = vadd.f32 %v656_v30, %v620_v29  ;;  %v658_v32 = vpop.f32.mrb[1].mxu1 }
 0x204   : > { %v659_v33 = vadd.f32 %v658_v32, %v620_v29  ;;  %v660_v34 = vpop.f32.mrb[2].mxu1 }
 0x205   : > { %v661_v35 = vpop.f32.mrb[3].mxu1 }
 0x206   : > { %v665_v36 = vcombine.low %v657_v31, %v659_v33 }
 0x208   : > { %789 = vst.sshfl [vmem:[%s262_s14] sm:$0x33 pattern:$0x76325410] %v665_v36 }
 0x209 PF: > { %s15_s20 = sadd.s32 1, %s854_s20   ;;  %s1027_s18 = smov %s850_s19 }
 0x20a   : > { %p12_p5 = scmp.ge.s32.totalorder %s15_s20, 4   ;;  %s1028_s19 = smov %s1030_s21 }
 0x20c   :  { %14 = sbr.rel (!%p12_p5) target bundleno = 2 (0x2), region = 70 }

// kernel: custom-call.2
= control target key start
LH: loop header
LB: loop body
LE: loop exit
PB: predicated region body
PF: predicated region fallthrough
CT: control target
= control target key end

     0   :  { %s1672_s30 = smov 0   ;;  %s1674_s10 = smov 0   ;;  %s1999_s0 = inlined_call_operand.vmem [shape: f32[2,5,5], index: 0, kind: input, shape index: {}]   ;;  %s2000_s1 = inlined_call_operand.vmem [shape: f32[2,5,5], index: 1, kind: input, shape index: {}]   ;;  %s2001_s2 = inlined_call_operand.vmem [shape: f32[2,5,5], index: 2, kind: input, shape index: {}]   ;;  %s2002_s3 = inlined_call_operand.vmem [shape: f32[2,5,5], index: 3, kind: input, shape index: {}]   ;;  %s2003_s4 = inlined_call_operand.vmem [shape: f32[2,5], index: 4, kind: output, shape index: {0}]   ;;  %s2004_s5 = inlined_call_operand.vmem [shape: f32[2,5], index: 5, kind: output, shape index: {1}]   ;;  %s2005_s6 = inlined_call_operand.vmem [shape: f32[2,5,5], index: 6, kind: output, shape index: {2}]   ;;  %s2006_s7 = inlined_call_operand.vmem [shape: f32[2,5,5], index: 7, kind: output, shape index: {3}]   ;;  %s2007_s8 = inlined_call_operand.vmem [shape: f32[2,5,5], index: 8, kind: output, shape index: {4}]   ;;  %s2008_s9 = inlined_call_operand.vmem [shape: f32[2,5,5], index: 9, kind: output, shape index: {5}]  }
   0x1   :  { %s1676_s11 = smov 0  }
   0x2 LB: > { %s1688_s12 = sadd.s32 4294967295, %s1609_s11   ;;  %s1691_s13 = sadd.s32 1, %s1609_s11   ;;  %s1609_s11 = sphi %s1676_s11, %s2017_s11   ;;  %s1605_s10 = sphi %s1674_s10, %s2016_s10   ;;  %s1601_s30 = sphi %s1672_s30, %s2015_s30  }
   0x3   : > { %s20_s14 = sshrl.u32 %s1609_s11, 3  ;;  %s21_s15 = sshrl.u32 %s1691_s13, 3 }
   0x4   : > { %s22_s16 = ssub.s32 %s20_s14, %s21_s15  ;;  %s25_s17 = sadd.s32 1, %s1605_s10 }
   0x5   : > { %p23_p0 = scmp.eq.s32.totalorder %s22_s16, 0  ;;  %p35_p1 = scmp.ne.s32.totalorder %s1605_s10, %s1601_s30 }
   0x6   : > { %p36_p2 = scmp.eq.s32.totalorder %s1688_s12, 1  ;;  %p1470_p4 = scmp.ge.s32.totalorder %s1609_s11, 2 }
   0x7   : > { %s1700_s18 = scalar_select %p23_p0, %s1605_s10, %s25_s17  }
   0x8   : > { %p1702_p3 = por %p36_p2, %p35_p1  ;;  %86 = sbr.rel (%p1470_p4) target bundleno = 17 (0x11), region = 16 }
   0x9   : > { %2009 = sst [smem:[#allocation25_spill]] %s1700_s18  ;;  %s88_s20 = sand.u32 (!%p1470_p4), 1, %s1609_s11  }
   0xa   : > { %s1472_s21 = sshll.u32 (!%p1470_p4), %s1609_s11, 3  ;;  %s1471_s22 = sshll.u32 (!%p1470_p4), %s88_s20, 3 }
   0xb   : > { %s92_s25 = scalar_lea.vmem (!%p1470_p4), %s1999_s0, %s1472_s21  ;;  %s90_s26 = scalar_lea.vmem (!%p1470_p4), [#allocation0], %s1471_s22 }
   0xc   : > { %v120_v0 = vld [vmem:[%s92_s25] sm:$0xff] (!%p1470_p4)  ;;  %s130_s29 = scalar_lea.vmem (!%p1470_p4), %s2000_s1, %s1472_s21  ;;  %s168_s16 = scalar_lea.vmem (!%p1470_p4), %s2001_s2, %s1472_s21 }
   0xd   : > { %121 = vst [vmem:[%s90_s26] sm:$0xff] (!%p1470_p4), %v120_v0  ;;  %v158_v1 = vld [vmem:[%s130_s29] sm:$0xff] (!%p1470_p4)  ;;  %s128_s17 = scalar_lea.vmem (!%p1470_p4), [#allocation1], %s1471_s22  ;;  %s206_s23 = scalar_lea.vmem (!%p1470_p4), %s2002_s3, %s1472_s21 }
   0xe   : > { %159 = vst [vmem:[%s128_s17] sm:$0xff] (!%p1470_p4), %v158_v1  ;;  %v196_v2 = vld [vmem:[%s168_s16] sm:$0xff] (!%p1470_p4)  ;;  %s166_s24 = scalar_lea.vmem (!%p1470_p4), [#allocation2], %s1471_s22  ;;  %s204_s25 = scalar_lea.vmem (!%p1470_p4), [#allocation3], %s1471_s22 }
   0xf   : > { %197 = vst [vmem:[%s166_s24] sm:$0xff] %v196_v2  ;;  %v234_v3 = vld [vmem:[%s206_s23] sm:$0xff] }
  0x10   : > { %235 = vst [vmem:[%s204_s25] sm:$0xff] %v234_v3 }
  0x11 PF: > { %p1479_p5 = scmp.ge.s32.totalorder %s1609_s11, 1  ;;  %p240_p6 = scmp.lt.s32.totalorder %s1609_s11, 3 }
  0x13   : > { %p241_p7 = pnand %p1479_p5, %p240_p6 }
  0x15   : > { %244 = sbr.rel (%p241_p7) target bundleno = 992 (0x3e0), region = 156 }
  0x1c   : > { %s247_s26 = sand.u32 1, %s1688_s12   ;;  %s281_s27 = sand.u32 1, %s1601_s30   ;;  %v325_v4 = vlaneseq  ;;  %v1619_v11 = vmov 0.0  }
  0x1d   : > { %s1480_s28 = sshll.u32 %s247_s26, 3  ;;  %s1725_s18 = sshll.u32 %s281_s27, 1 }
  0x1e   : > { %v1727_v5 = vand.u32 127, %v325_v4  ;;  %v1729_v6 = vshrl.u32 %v325_v4, 7  ;;  %s249_s21 = scalar_lea.vmem [#allocation0], %s1480_s28  ;;  %s253_s22 = scalar_lea.vmem [#allocation1], %s1480_s28 }
  0x1f   : > { %v309_v7 = vld [vmem:[%s249_s21] sm:$0xff]  ;;  %v312_v8 = vld [vmem:[%s253_s22] sm:$0xff]  ;;  %s257_s29 = scalar_lea.vmem [#allocation2], %s1480_s28  ;;  %s261_s11 = scalar_lea.vmem [#allocation3], %s1480_s28 }
  0x20   : > { %v315_v9 = vld [vmem:[%s257_s29] sm:$0xff]  ;;  %v318_v10 = vld [vmem:[%s261_s11] sm:$0xff]  ;;  %s1731_s14 = scalar_lea.vmem [#allocation8], %s1480_s28  ;;  %s1734_s30 = scalar_lea.vmem [#allocation9], %s1480_s28  ;;  %v327_v5 = vmov %v1727_v5  ;;  %v330_v6 = vmov %v1729_v6  ;;  %vm1359_vm2 = vcmp.lt.s32.totalorder %v1727_v5, 5 }
  0x21   : > { %320 = vst [vmem:[%s1731_s14] sm:$0xff] %v1619_v11  ;;  %321 = vst [vmem:[%s1734_s30] sm:$0xff] %v1619_v11  ;;  %s308_s15 = smov [#allocation12]  ;;  %s311_s16 = smov [#allocation13]  ;;  %v340_v5 = vmov %v1727_v5  ;;  %v343_v6 = vmov %v1729_v6  ;;  %vm334_vm0 = vcmp.eq.s32.totalorder %v330_v6, %v327_v5 }
  0x22   : > { %s1737_s17 = scalar_lea.vmem [#allocation10], %s1480_s28  ;;  %s1740_s20 = scalar_lea.vmem [#allocation11], %s1480_s28  ;;  %310 = vst [vmem:[%s308_s15] sm:$0xff] %v309_v7  ;;  %313 = vst [vmem:[%s311_s16] sm:$0xff] %v312_v8  ;;  %vm347_vm1 = vcmp.eq.s32.totalorder %v343_v6, %v340_v5  ;;  %v1351_v5 = vmov %v1727_v5  ;;  %v1354_v6 = vmov %v1729_v6 }
  0x23   : > { %322 = vst [vmem:[%s1737_s17] sm:$0xff] %v1619_v11  ;;  %323 = vst [vmem:[%s1740_s20] sm:$0xff] %v1619_v11  ;;  %s314_s23 = smov [#allocation14]  ;;  %s317_s24 = smov [#allocation15]  ;;  %vm1364_vm3 = vcmp.eq.s32.totalorder %v1354_v6, %v1351_v5  ;;  %v1402_v5 = vmov %v1727_v5  ;;  %v1371_v6 = vmov %v1729_v6 }
  0x24   : > { %316 = vst [vmem:[%s314_s23] sm:$0xff] %v315_v9  ;;  %319 = vst [vmem:[%s317_s24] sm:$0xff] %v318_v10  ;;  %s324_s14 = smov %s1731_s14  ;;  %s337_s20 = smov %s1740_s20  ;;  %v1368_v5 = vmov %v1727_v5  ;;  %v1405_v6 = vmov %v1729_v6 }
  0x25   : > { %s283_s25 = scalar_lea.vmem [#allocation5], %s1725_s18  ;;  %s1355_s27 = smov [#allocation12]  ;;  %v1385_v5 = vmov %v1727_v5  ;;  %v1388_v6 = vmov %v1729_v6  ;;  %vm1415_vm4 = vcmp.eq.s32.totalorder %v1405_v6, %v1402_v5 }
  0x26   : > { %s1372_s28 = smov [#allocation13]  ;;  %s1389_s21 = smov [#allocation14] }
  0x27   : > { %s1406_s22 = smov [#allocation15] }
  0x28   : > { %v331_v12 = vld [vmem:[%s324_s14] sm:$0x1f] }
  0x29   : > { %v335_v13 = vsel %vm334_vm0, 1.0, %v331_v12  ;;  %v1361_v16 = vld [vmem:[%s1355_s27] sm:$0x1f] }
  0x2a   : > { %v344_v14 = vld [vmem:[%s337_s20] sm:$0x1f]  ;;  %336 = vst [vmem:[%s324_s14] sm:$0x1f] %v335_v13  ;;  %v1362_v18 = vsel %vm1359_vm2, %v1361_v16, 0.0 }
  0x2b   : > { %v348_v15 = vsel %vm347_vm1, 1.0, %v344_v14  ;;  %v1378_v17 = vld [vmem:[%s1372_s28] sm:$0x1f]  ;;  %v1363_v22 = vmul.f32 %v1362_v18, %v1362_v18 }
  0x2c   : > { %349 = vst [vmem:[%s337_s20] sm:$0x1f] %v348_v15  ;;  %v1379_v19 = vsel %vm1359_vm2, %v1378_v17, 0.0  ;;  %v1395_v20 = vld [vmem:[%s1389_s21] sm:$0x1f] }
  0x2d   : > { %v1412_v21 = vld [vmem:[%s1406_s22] sm:$0x1f]  ;;  %v1380_v23 = vmul.f32 %v1379_v19, %v1379_v19  ;;  %v1396_v24 = vsel %vm1359_vm2, %v1395_v20, 0.0  ;;  %v1365_v29 = vsel %vm1364_vm3, 0.0, %v1363_v22 }
  0x2e   : > { %v1413_v25 = vsel %vm1359_vm2, %v1412_v21, 0.0  ;;  %v1397_v26 = vmul.f32 %v1396_v24, %v1396_v24 }
  0x2f   : > { %v1382_v27 = vadd.f32 %v1380_v23, %v1363_v22  ;;  %v1414_v28 = vmul.f32 %v1413_v25, %v1413_v25  ;;  %v1381_v30 = vadd.f32 %v1380_v23, %v1365_v29 }
  0x31   : > { %v1399_v31 = vadd.f32 %v1397_v26, %v1382_v27  ;;  %v1398_v32 = vadd.f32 %v1397_v26, %v1381_v30  ;;  %v1416_v33 = vsel %vm1415_vm4, 0.0, %v1414_v28 }
  0x33   : > { %v1418_v34 = vadd.f32 %v1414_v28, %v1399_v31  ;;  %v1417_v35 = vadd.f32 %v1416_v33, %v1398_v32 }
  0x35   : > { %1419 = vadd.xlane.f32.xlu0 %v1418_v34 }
  0x39   : > { %1427 = vadd.xlane.f32.xlu0 %v1417_v35 }
  0xc2   : > { %v1420_v36 = vpop.xlane.xlu0 %1419 }
  0xc3   : > { %v1421_v37 = vrot.slane %v1420_v36, 4 }
  0xc5   : > { %v1422_v38 = vadd.f32 %v1421_v37, %v1420_v36 }
  0xc6   : > { %v1428_v39 = vpop.xlane.xlu0 %1427 }
  0xc7   : > { %v1423_v40 = vrot.slane %v1422_v38, 2  ;;  %v1429_v41 = vrot.slane %v1428_v39, 4 }
  0xc9   : > { %v1430_v42 = vadd.f32 %v1429_v41, %v1428_v39  ;;  %v1424_v43 = vadd.f32 %v1423_v40, %v1422_v38 }
  0xcb   : > { %v1431_v44 = vrot.slane %v1430_v42, 2  ;;  %v1425_v46 = vrot.slane %v1424_v43, 1 }
  0xcd   : > { %v1432_v45 = vadd.f32 %v1431_v44, %v1430_v42  ;;  %v1426_v49 = vadd.f32 %v1425_v46, %v1424_v43 }
  0xcf   : > { %v1433_v47 = vrot.slane %v1432_v45, 1 }
  0xd1   : > { %v1434_v48 = vadd.f32 %v1433_v47, %v1432_v45 }
  0xd3   : > { %1520 = vpush %v1434_v48 }
  0xd4   : > { %1522 = vpush %v1426_v49 }
 0x104   : > { %s1521_s29 = spop %1520 }
 0x105   : > { %s1523_s11 = spop %1522 }
 0x106   : > { %s1437_s15 = smul.f32 1e-10, %s1523_s11 }
 0x108   : > { %p1438_p8 = scmp.le.f32.partialorder %s1521_s29, %s1437_s15 }
 0x109   : > { %s1769_s16 = smov (!%p1438_p8), 0  }
 0x10a   : > { %1441 = sbr.rel (%p1438_p8) target bundleno = 948 (0x3b4), region = 499 }
 0x111 LB: >> { %s1774_s23 = smov 0   ;;  %s1613_s16 = sphi %s1769_s16, %s2011_s16  }
 0x112 LB: >>> { %s454_s24 = smov [#allocation12]  ;;  %v458_v5 = vmov %v1727_v5  ;;  %v461_v6 = vmov %v1729_v6  ;;  %s474_s27 = smov [#allocation13]  ;;  %vm777_vm14 = vcmp.eq.s32.totalorder %v1729_v6, 0  ;;  %vm789_vm15 = vcmp.eq.s32.totalorder %v1729_v6, 4  ;;  %s1617_s23 = sphi %s1774_s23, %s453_s23  }
 0x113   : >>> { %v478_v5 = vmov %v1727_v5  ;;  %v481_v6 = vmov %v1729_v6  ;;  %v462_v50 = vld [vmem:[%s454_s24] sm:$0x1f]  ;;  %vm465_vm5 = vcmp.eq.s32.totalorder %v461_v6, %v458_v5  ;;  %s494_s28 = smov [#allocation15]  ;;  %s455_s21 = smov [#allocation16] }
 0x114   : >>> { %vm485_vm6 = vcmp.eq.s32.totalorder %v481_v6, %v478_v5  ;;  %v498_v5 = vmov %v1727_v5  ;;  %v501_v6 = vmov %v1729_v6  ;;  %v466_v51 = vsel %vm465_vm5, %v462_v50, 0.0  ;;  %v482_v52 = vld [vmem:[%s474_s27] sm:$0x1f]  ;;  %s475_s22 = smov [#allocation17]  ;;  %s495_s29 = smov [#allocation18] }
 0x115   : >>> { %vm505_vm7 = vcmp.eq.s32.totalorder %v501_v6, %v498_v5  ;;  %v467_v53 = vrot.slane %v466_v51, 4  ;;  %v486_v54 = vsel %vm485_vm6, %v482_v52, 0.0  ;;  %v502_v55 = vld [vmem:[%s494_s28] sm:$0x1f]  ;;  %s518_s11 = smov [#allocation17]  ;;  %s516_s15 = smov [#allocation16]  ;;  %v567_v5 = vmov %v1727_v5 }
 0x116   : >>> { %v487_v56 = vrot.slane %v486_v54, 4  ;;  %v506_v57 = vsel %vm505_vm7, %v502_v55, 0.0  ;;  %s520_s24 = smov [#allocation18]  ;;  %s555_s27 = smov [#allocation19]  ;;  %v570_v6 = vmov %v1729_v6  ;;  %v582_v5 = vmov %v1727_v5 }
 0x117   : >>> { %v468_v58 = vadd.f32 %v467_v53, %v466_v51  ;;  %v507_v59 = vrot.slane %v506_v57, 4  ;;  %s557_s28 = smov [#allocation20]  ;;  %v585_v6 = vmov %v1729_v6  ;;  %vm572_vm12 = vcmp.eq.s32.totalorder %v570_v6, %v567_v5  ;;  %s1798_s14 = smov %s1731_s14 }
 0x118   : >>> { %v488_v60 = vadd.f32 %v487_v56, %v486_v54  ;;  %vm587_vm13 = vcmp.eq.s32.totalorder %v585_v6, %v582_v5  ;;  %s1801_s30 = smov %s1734_s30  ;;  %s1804_s17 = smov %s1737_s17  ;;  %v825_v53 = vld [vmem:[%s1798_s14] sm:$0x1f]  ;;  %v680_v5 = vmov %v1727_v5  ;;  %v683_v6 = vmov %v1729_v6 }
 0x119   : >>> { %v469_v61 = vrot.slane %v468_v58, 2  ;;  %v508_v62 = vadd.f32 %v507_v59, %v506_v57  ;;  %s1809_s20 = smov %s1740_s20  ;;  %v826_v54 = vld [vmem:[%s1801_s30] sm:$0x1f]  ;;  %s819_s26 = smov [#allocation24]  ;;  %v694_v5 = vmov %v1727_v5  ;;  %v697_v6 = vmov %v1729_v6 }
 0x11a   : >>> { %v489_v63 = vrot.slane %v488_v60, 2  ;;  %v827_v55 = vld [vmem:[%s1804_s17] sm:$0x1f]  ;;  %vm687_vm0 = vcmp.eq.s32.totalorder %v683_v6, %v680_v5  ;;  %v653_v5 = vmov %v1727_v5  ;;  %v656_v6 = vmov %v1729_v6  ;;  %s453_s23 = sadd.s32 1, %s1617_s23  }
 0x11b   : >>> { %v470_v0 = vadd.f32 %v469_v61, %v468_v58  ;;  %v509_v1 = vrot.slane %v508_v62, 2  ;;  %v828_v57 = vld [vmem:[%s1809_s20] sm:$0x1f]  ;;  %v667_v5 = vmov %v1727_v5  ;;  %v670_v6 = vmov %v1729_v6  ;;  %p450_p9 = scmp.ge.s32.totalorder %s453_s23, 9  }
 0x11c   : >>> { %v490_v2 = vadd.f32 %v489_v63, %v488_v60  ;;  %vm702_vm1 = vcmp.eq.s32.totalorder %v697_v6, %v694_v5  ;;  %vm661_vm3 = vcmp.eq.s32.totalorder %v656_v6, %v653_v5  ;;  %vm674_vm4 = vcmp.eq.s32.totalorder %v670_v6, %v667_v5 }
 0x11d   : >>> { %v471_v3 = vrot.slane %v470_v0, 1  ;;  %v510_v4 = vadd.f32 %v509_v1, %v508_v62  ;;  %vm716_vm5 = vcmp.eq.s32.totalorder %v1727_v5, 0  ;;  %vm720_vm6 = vcmp.eq.s32.totalorder %v1727_v5, 1 }
 0x11e   : >>> { %v491_v7 = vrot.slane %v490_v2, 1  ;;  %vm733_vm7 = vcmp.eq.s32.totalorder %v1727_v5, 4  ;;  %v354_v5 = vmov (%p450_p9), %v1727_v5  ;;  %v357_v6 = vmov (%p450_p9), %v1729_v6 }
 0x11f   : >>> { %v472_v8 = vadd.f32 %v471_v3, %v470_v0  ;;  %v511_v9 = vrot.slane %v510_v4, 1  ;;  %v407_v5 = vmov (%p450_p9), %v1727_v5 }
 0x120   : >>> { %v492_v10 = vadd.f32 %v491_v7, %v490_v2 }
 0x121   : >>> { %473 = vst [vmem:[%s455_s21] sm:$0x1] %v472_v8  ;;  %v512_v11 = vadd.f32 %v511_v9, %v510_v4  ;;  %s514_s21 = smov [#allocation21] }
 0x122   : >>> { %493 = vst [vmem:[%s475_s22] sm:$0x1] %v492_v10  ;;  %s515_s22 = smov [#allocation22]  ;;  %s559_s21 = smov %s514_s21 }
 0x123   : >>> { %513 = vst [vmem:[%s495_s29] sm:$0x1] %v512_v11  ;;  %s561_s22 = smov %s515_s22  ;;  %s563_s29 = smov [#allocation21] }
 0x128   : >>> { %v517_v14 = vld [vmem:[%s516_s15] sm:$0xff]  ;;  %s576_s15 = smov [#allocation23] }
 0x129   : >>> { %v519_v12 = vld [vmem:[%s518_s11] sm:$0xff]  ;;  %v540_v27 = vand.u32 2147483647, %v517_v14  ;;  %s578_s11 = smov [#allocation22] }
 0x12a   : >>> { %v523_v13 = vmul.f32 2.0, %v519_v12  ;;  %v521_v15 = vld [vmem:[%s520_s24] sm:$0xff]  ;;  %v541_v32 = vand.u32 2147483647, %v519_v12  ;;  %s593_s24 = smov [#allocation23] }
 0x12b   : >>> { %v522_v16 = vsub.f32 %v521_v15, %v517_v14  ;;  %v542_v28 = vand.u32 2147483647, %v521_v15 }
 0x12c   : >>> { %1571 = vrcp.f32 %v523_v13 }
 0x12d   : >>> { %v543_v31 = vmin.f32 %v540_v27, %v542_v28 }
 0x12f   : >>> { %v544_v33 = vmul.f32 1.1920929e-08, %v543_v31 }
 0x131   : >>> { %vm545_vm11 = vcmp.le.f32.partialorder %v541_v32, %v544_v33 }
 0x136   : >>> { %v1572_v17 = vpop.eup %1571 }
 0x137   : >>> { %v525_v18 = vmul.f32 %v1572_v17, %v522_v16 }
 0x139   : >>> { %v527_v19 = vmul.f32 %v525_v18, %v525_v18  ;;  %vm526_vm10 = vcmp.ge.f32.partialorder %v525_v18, 0.0 }
 0x13b   : >>> { %v528_v20 = vadd.f32 1.0, %v527_v19 }
 0x13d   : >>> { %1573 = vrsqrt.f32 %v528_v20  ;;  %vm531_vm8 = vcmp.eq.f32.partialorder %v528_v20, inf  ;;  %v534_v22 = vand.u32 2147483648, %v528_v20  ;;  %vm533_vm9 = vcmp.eq.f32.partialorder %v528_v20, 0.0 }
 0x147   : >>> { %v1574_v21 = vpop.eup %1573 }
 0x148   : >>> { %v530_v23 = vmul.f32 %v1574_v21, %v528_v20 }
 0x14a   : >>> { %v532_v24 = vsel %vm531_vm8, %v528_v20, %v530_v23  ;;  %vm369_vm8 = vcmp.eq.s32.totalorder (%p450_p9), %v357_v6, %v354_v5  ;;  %v410_v6 = vmov (%p450_p9), %v1729_v6  ;;  %v373_v5 = vmov (%p450_p9), %v1727_v5 }
 0x14b   : >>> { %v535_v25 = vsel %vm533_vm9, %v534_v22, %v532_v24  ;;  %v376_v6 = vmov (%p450_p9), %v1729_v6  ;;  %v390_v5 = vmov (%p450_p9), %v1727_v5  ;;  %vm422_vm9 = vcmp.eq.s32.totalorder (%p450_p9), %v410_v6, %v407_v5 }
 0x14c   : >>> { %v536_v26 = vxor.u32 2147483648, %v535_v25  ;;  %v393_v6 = vmov (%p450_p9), %v1729_v6 }
 0x14e   : >>> { %v537_v29 = vsel %vm526_vm10, %v535_v25, %v536_v26 }
 0x14f   : >>> { %v538_v30 = vadd.f32 %v537_v29, %v525_v18 }
 0x151   : >>> { %1575 = vrcp.f32 %v538_v30 }
 0x15b   : >>> { %v1576_v34 = vpop.eup %1575 }
 0x15c   : >>> { %v546_v35 = vsel %vm545_vm11, 0.0, %v1576_v34 }
 0x15d   : >>> { %v547_v36 = vmul.f32 %v546_v35, %v546_v35  ;;  %v551_v37 = vmul.f32 %v546_v35, %v519_v12 }
 0x15f   : >>> { %v548_v38 = vadd.f32 1.0, %v547_v36  ;;  %v552_v39 = vsub.f32 %v517_v14, %v551_v37  ;;  %v554_v40 = vadd.f32 %v551_v37, %v521_v15 }
 0x161   : >>> { %1577 = vrsqrt.f32 %v548_v38  ;;  %556 = vst [vmem:[%s555_s27] sm:$0xff] %v552_v39  ;;  %558 = vst [vmem:[%s557_s28] sm:$0xff] %v554_v40  ;;  %s1789_s27 = smov [#allocation12]  ;;  %s591_s28 = smov [#allocation24] }
 0x162   : >>> { %v601_v49 = vld [vmem:[%s1789_s27] sm:$0x1f] }
 0x16b   : >>> { %v1578_v41 = vpop.eup %1577 }
 0x16c   : >>> { %560 = vst [vmem:[%s559_s21] sm:$0xff] %v1578_v41  ;;  %v550_v42 = vmul.f32 %v1578_v41, %v546_v35  ;;  %s1791_s21 = smov [#allocation13] }
 0x16d   : >>> { %v602_v50 = vld [vmem:[%s1791_s21] sm:$0x1f] }
 0x16e   : >>> { %562 = vst [vmem:[%s561_s22] sm:$0xff] %v550_v42  ;;  %s1793_s22 = smov [#allocation14] }
 0x16f   : >>> { %v603_v51 = vld [vmem:[%s1793_s22] sm:$0x1f] }
 0x173   : >>> { %v564_v43 = vld [vmem:[%s563_s29] ss:$0 sm:$0xff]  ;;  %s1795_s29 = smov [#allocation15] }
 0x174   : >>> { %v573_v44 = vsel %vm572_vm12, %v564_v43, 0.0  ;;  %v604_v52 = vld [vmem:[%s1795_s29] sm:$0x1f] }
 0x175   : >>> { %574 = vadd.xlane.f32.xlu0 %v573_v44  ;;  %v579_v45 = vld [vmem:[%s578_s11] ss:$0 sm:$0xff]  ;;  %s817_s11 = smov [#allocation23] }
 0x176   : >>> { %v588_v46 = vsel %vm587_vm13, %v579_v45, 0.0 }
 0x179   : >>> { %589 = vadd.xlane.f32.xlu0 %v588_v46 }
 0x202   : >>> { %v575_v47 = vpop.xlane.xlu0 %574 }
 0x203   : >>> { %577 = vst [vmem:[%s576_s15] sm:$0xff] %v575_v47  ;;  %s595_s15 = smov [#allocation24] }
 0x206   : >>> { %v590_v48 = vpop.xlane.xlu0 %589 }
 0x207   : >>> { %592 = vst [vmem:[%s591_s28] sm:$0xff] %v590_v48  ;;  %s1825_s28 = smov [#allocation14] }
 0x20a   : >>> { %v594_v56 = vld [vmem:[%s593_s24] sm:$0xff]  ;;  %s623_s24 = smov [#allocation22] }
 0x20b   : >>> { %v818_v58 = vld [vmem:[%s817_s11] sm:$0xff]  ;;  %v605_v59 = vmul.f32 %v601_v49, %v594_v56  ;;  %v608_v60 = vmul.f32 %v602_v50, %v594_v56  ;;  %v612_v61 = vmul.f32 %v603_v51, %v594_v56  ;;  %v615_v62 = vmul.f32 %v604_v52, %v594_v56  ;;  %s1827_s11 = smov [#allocation15] }
 0x20c   : >>> { %v829_v63 = vmul.f32 %v825_v53, %v818_v58  ;;  %v832_v0 = vmul.f32 %v826_v54, %v818_v58  ;;  %v836_v1 = vmul.f32 %v827_v55, %v818_v58  ;;  %v839_v2 = vmul.f32 %v828_v57, %v818_v58  ;;  %v624_v24 = vld [vmem:[%s623_s24] ss:$0 sm:$0xff]  ;;  %s649_s24 = smov [#allocation12] }
 0x20e   : >>> { %v596_v3 = vld [vmem:[%s595_s15] sm:$0xff]  ;;  %s1829_s15 = smov [#allocation12] }
 0x20f   : >>> { %v820_v4 = vld [vmem:[%s819_s26] sm:$0xff]  ;;  %v606_v7 = vmul.f32 %v603_v51, %v596_v3  ;;  %v609_v8 = vmul.f32 %v604_v52, %v596_v3  ;;  %v611_v9 = vmul.f32 %v601_v49, %v596_v3  ;;  %v614_v10 = vmul.f32 %v602_v50, %v596_v3  ;;  %s621_s26 = smov [#allocation21] }
 0x210   : >>> { %v830_v11 = vmul.f32 %v827_v55, %v820_v4  ;;  %v833_v12 = vmul.f32 %v828_v57, %v820_v4  ;;  %v835_v13 = vmul.f32 %v825_v53, %v820_v4  ;;  %v838_v14 = vmul.f32 %v826_v54, %v820_v4  ;;  %v622_v23 = vld [vmem:[%s621_s26] ss:$0 sm:$0xff]  ;;  %s650_s26 = smov [#allocation19] }
 0x211   : >>> { %v607_v15 = vsub.f32 %v605_v59, %v606_v7  ;;  %v610_v16 = vsub.f32 %v608_v60, %v609_v8  ;;  %v613_v17 = vadd.f32 %v612_v61, %v611_v9  ;;  %v616_v18 = vadd.f32 %v615_v62, %v614_v10  ;;  %v657_v59 = vld [vmem:[%s650_s26] ss:$0 sm:$0xff]  ;;  %s769_s26 = smov [#allocation12] }
 0x212   : >>> { %v831_v19 = vsub.f32 %v829_v63, %v830_v11  ;;  %v834_v20 = vsub.f32 %v832_v0, %v833_v12  ;;  %v837_v21 = vadd.f32 %v836_v1, %v835_v13  ;;  %v840_v22 = vadd.f32 %v839_v2, %v838_v14 }
 0x213   : >>> { %618 = vst [vmem:[%s1791_s21] sm:$0x1f] %v610_v16  ;;  %620 = vst [vmem:[%s1795_s29] sm:$0x1f] %v616_v18  ;;  %s691_s21 = smov [#allocation20]  ;;  %s690_s29 = smov [#allocation15] }
 0x214   : >>> { %617 = vst [vmem:[%s1789_s27] sm:$0x1f] %v607_v15  ;;  %619 = vst [vmem:[%s1793_s22] sm:$0x1f] %v613_v17  ;;  %s1842_s27 = smov [#allocation13]  ;;  %s677_s22 = smov [#allocation14]  ;;  %v698_v55 = vld [vmem:[%s691_s21] ss:$0 sm:$0xff] }
 0x215   : >>> { %841 = vst [vmem:[%s1798_s14] sm:$0x1f] %v831_v19  ;;  %842 = vst [vmem:[%s1801_s30] sm:$0x1f] %v834_v20  ;;  %s1832_s14 = smov %s1731_s14  ;;  %s1840_s30 = smov %s1734_s30 }
 0x216   : >>> { %843 = vst [vmem:[%s1804_s17] sm:$0x1f] %v837_v21  ;;  %844 = vst [vmem:[%s1809_s20] sm:$0x1f] %v840_v22  ;;  %s1835_s17 = smov %s1737_s17  ;;  %s1845_s20 = smov %s1740_s20 }
 0x217   : >>> { %s706_s21 = smov [#allocation13] }
 0x21a   : >>> { %v632_v26 = vld [vmem:[%s1827_s11] sm:$0x1f] }
 0x21b   : >>> { %v631_v25 = vld [vmem:[%s1825_s28] sm:$0x1f]  ;;  %v640_v32 = vmul.f32 %v632_v26, %v624_v24  ;;  %v643_v38 = vmul.f32 %v632_v26, %v622_v23 }
 0x21c   : >>> { %v629_v27 = vld [vmem:[%s1829_s15] sm:$0x1f]  ;;  %v639_v31 = vmul.f32 %v631_v25, %v622_v23  ;;  %v642_v33 = vmul.f32 %v631_v25, %v624_v24 }
 0x21d   : >>> { %v847_v28 = vld [vmem:[%s1832_s14] ss:$0 sm:$0xff]  ;;  %v1499_v30 = vld [vmem:[%s1832_s14 + $0x4] ss:$0 sm:$0xff]  ;;  %v633_v44 = vmul.f32 %v629_v27, %v622_v23  ;;  %v636_v45 = vmul.f32 %v629_v27, %v624_v24 }
 0x21e   : >>> { %v1498_v29 = vld [vmem:[%s1832_s14 - $0x1] sm:$0x1e]  ;;  %v1503_v41 = vld [vmem:[%s1840_s30 + $0x4] ss:$0 sm:$0xff]  ;;  %v641_v43 = vsub.f32 %v639_v31, %v640_v32  ;;  %v644_v49 = vadd.f32 %v643_v38, %v642_v33 }
 0x21f   : >>> { %v854_v34 = vsel %vm777_vm14, %v847_v28, %v1498_v29  ;;  %v858_v35 = vld [vmem:[%s1835_s17] ss:$0 sm:$0xff]  ;;  %v1501_v36 = vld [vmem:[%s1835_s17 + $0x1] sm:$0xf] }
 0x220   : >>> { %v871_v37 = vld [vmem:[%s1840_s30] ss:$0 sm:$0xff]  ;;  %857 = vst [vmem:[%s1832_s14] sm:$0x1f] %v854_v34  ;;  %v866_v39 = vsel %vm789_vm15, %v1499_v30, %v1501_v36  ;;  %v1505_v47 = vld [vmem:[%s1845_s20 + $0x1] sm:$0xf]  ;;  %647 = vst [vmem:[%s1825_s28] sm:$0x1f] %v641_v43 }
 0x221   : >>> { %v1502_v40 = vld [vmem:[%s1840_s30 - $0x1] sm:$0x1e]  ;;  %1500 = vst [vmem:[%s1832_s14 + $0x1] sm:$0x1] %v858_v35  ;;  %868 = vst [vmem:[%s1835_s17] sm:$0x1f] %v866_v39  ;;  %v890_v50 = vsel %vm789_vm15, %v1503_v41, %v1505_v47  ;;  %s664_s28 = smov [#allocation13] }
 0x222   : >>> { %v882_v42 = vld [vmem:[%s1845_s20] ss:$0 sm:$0xff]  ;;  %v878_v46 = vsel %vm777_vm14, %v871_v37, %v1502_v40  ;;  %648 = vst [vmem:[%s1827_s11] sm:$0x1f] %v644_v49  ;;  %s1887_s11 = smov [#allocation14] }
 0x223   : >>> { %v630_v48 = vld [vmem:[%s1842_s27] sm:$0x1f]  ;;  %881 = vst [vmem:[%s1840_s30] sm:$0x1f] %v878_v46  ;;  %892 = vst [vmem:[%s1845_s20] sm:$0x1f] %v890_v50 }
 0x224   : >>> { %v634_v51 = vmul.f32 %v630_v48, %v624_v24  ;;  %v637_v52 = vmul.f32 %v630_v48, %v622_v23  ;;  %1504 = vst [vmem:[%s1840_s30 + $0x1] sm:$0x1] %v882_v42 }
 0x226   : >>> { %v635_v53 = vsub.f32 %v633_v44, %v634_v51  ;;  %v638_v54 = vadd.f32 %v637_v52, %v636_v45 }
 0x227   : >>> { %v684_v56 = vld [vmem:[%s677_s22] sm:$0x1f] }
 0x228   : >>> { %645 = vst [vmem:[%s1829_s15] sm:$0x1f] %v635_v53  ;;  %646 = vst [vmem:[%s1842_s27] sm:$0x1f] %v638_v54  ;;  %v688_v57 = vsel %vm687_vm0, 0.0, %v684_v56  ;;  %s1620_s15 = smov 1   ;;  %s705_s27 = smov [#allocation12] }
 0x229   : >>> { %v699_v58 = vld [vmem:[%s690_s29] sm:$0x1f]  ;;  %689 = vst [vmem:[%s677_s22] sm:$0x1f] %v688_v57  ;;  %s1621_s22 = smov 127  }
 0x22a   : >>> { %v703_v60 = vsel %vm702_vm1, %v698_v55, %v699_v58 }
 0x22b   : >>> { %704 = vst [vmem:[%s690_s29] sm:$0x1f] %v703_v60  ;;  %s1890_s29 = smov [#allocation15] }
 0x22f   : >>> { %v658_v61 = vld [vmem:[%s649_s24] sm:$0x1f] }
 0x230   : >>> { %v671_v62 = vld [vmem:[%s664_s28] sm:$0x1f]  ;;  %v662_v63 = vsel %vm661_vm3, %v657_v59, %v658_v61 }
 0x231   : >>> { %v675_v0 = vsel %vm674_vm4, 0.0, %v671_v62  ;;  %663 = vst [vmem:[%s649_s24] sm:$0x1f] %v662_v63  ;;  %v743_v1 = vld [vmem:[%s1887_s11] sm:$0x1f]  ;;  %s793_s24 = smov [#allocation13] }
 0x232   : >>> { %676 = vst [vmem:[%s664_s28] sm:$0x1f] %v675_v0  ;;  %744 = vrot.lane.b32.xlu0 %v743_v1, %s1620_s15  ;;  %v739_v7 = vld [vmem:[%s1890_s29] sm:$0x1f]  ;;  %s770_s28 = smov [#allocation14] }
 0x233   : >>> { %v760_v8 = vld [vmem:[%s1890_s29] sm:$0x1f] }
 0x234   : >>> { %v742_v26 = vld [vmem:[%s1887_s11] sm:$0x1f] }
 0x238   : >>> { %v711_v2 = vld [vmem:[%s705_s27] sm:$0x1f] }
 0x239   : >>> { %712 = vrot.lane.b32.xlu1 %v711_v2, %s1620_s15  ;;  %v707_v3 = vld [vmem:[%s706_s21] sm:$0x1f] }
 0x23a   : >>> { %v728_v4 = vld [vmem:[%s706_s21] sm:$0x1f] }
 0x23b   : >>> { %v710_v14 = vld [vmem:[%s705_s27] sm:$0x1f] }
 0x23d   : >>> { %708 = vrot.lane.b32.xlu1 %v707_v3, %s1620_s15 }
 0x241   : >>> { %729 = vrot.lane.b32.xlu1 %v728_v4, %s1621_s22 }
 0x245   : >>> { %740 = vrot.lane.b32.xlu1 %v739_v7, %s1620_s15  ;;  %s794_s15 = smov [#allocation15] }
 0x249   : >>> { %761 = vrot.lane.b32.xlu1 %v760_v8, %s1621_s22  ;;  %s394_s22 = smov (%p450_p9), [#allocation14] }
 0x2a4   : >>> { %v745_v16 = vpop.permute.xlu0 %744 }
 0x2a5   : >>> { %v749_v18 = vsel %vm716_vm5, %v743_v1, %v745_v16 }
 0x2ab   : >>> { %v713_v9 = vpop.permute.xlu1 %712 }
 0x2ac   : >>> { %v717_v10 = vsel %vm716_vm5, %v711_v2, %v713_v9 }
 0x2af   : >>> { %v709_v11 = vpop.permute.xlu1 %708 }
 0x2b0   : >>> { %v721_v12 = vsel %vm720_vm6, %v709_v11, %v717_v10 }
 0x2b1   : >>> { %v727_v13 = vsel %vm1359_vm2, %v721_v12, 0.0 }
 0x2b2   : >>> { %735 = vst [vmem:[%s705_s27] sm:$0x1f] %v727_v13  ;;  %s358_s27 = smov (%p450_p9), [#allocation12] }
 0x2b3   : >>> { %v730_v15 = vpop.permute.xlu1 %729 }
 0x2b4   : >>> { %v734_v17 = vsel %vm733_vm7, %v710_v14, %v730_v15 }
 0x2b5   : >>> { %736 = vst [vmem:[%s706_s21] sm:$0x1f] %v734_v17  ;;  %s377_s21 = smov (%p450_p9), [#allocation13] }
 0x2b7   : >>> { %v741_v19 = vpop.permute.xlu1 %740 }
 0x2b8   : >>> { %v753_v20 = vsel %vm720_vm6, %v741_v19, %v749_v18 }
 0x2b9   : >>> { %v771_v21 = vld [vmem:[%s769_s26] ss:$0 sm:$0xff]  ;;  %v1491_v23 = vld [vmem:[%s769_s26 + $0x4] ss:$0 sm:$0xff]  ;;  %v759_v25 = vsel %vm1359_vm2, %v753_v20, 0.0 }
 0x2ba   : >>> { %v1490_v22 = vld [vmem:[%s769_s26 - $0x1] sm:$0x1e]  ;;  %767 = vst [vmem:[%s1887_s11] sm:$0x1f] %v759_v25  ;;  %s893_s11 = sadd.s32 (%p450_p9), 1, %s1613_s16  }
 0x2bb   : >>> { %v778_v24 = vsel %vm777_vm14, %v771_v21, %v1490_v22  ;;  %v762_v27 = vpop.permute.xlu1 %761  ;;  %p446_p10 = scmp.ge.s32.totalorder (%p450_p9), %s893_s11, 15  ;;  %s2011_s16 = smov (%p450_p9), %s893_s11 }
 0x2bc   : >>> { %781 = vst [vmem:[%s769_s26] sm:$0x1f] %v778_v24  ;;  %v795_v28 = vld [vmem:[%s793_s24] ss:$0 sm:$0xff]  ;;  %v1495_v30 = vld [vmem:[%s793_s24 + $0x4] ss:$0 sm:$0xff]  ;;  %v766_v31 = vsel %vm733_vm7, %v742_v26, %v762_v27 }
 0x2bd   : >>> { %v1494_v29 = vld [vmem:[%s793_s24 - $0x1] sm:$0x1e]  ;;  %768 = vst [vmem:[%s1890_s29] sm:$0x1f] %v766_v31  ;;  %s411_s29 = smov (%p450_p9), [#allocation15] }
 0x2be   : >>> { %v802_v32 = vsel %vm777_vm14, %v795_v28, %v1494_v29 }
 0x2bf   : >>> { %805 = vst [vmem:[%s793_s24] sm:$0x1f] %v802_v32 }
 0x2c1   : >>> { %v782_v33 = vld [vmem:[%s770_s28] ss:$0 sm:$0xff]  ;;  %v1493_v34 = vld [vmem:[%s770_s28 + $0x1] sm:$0xf] }
 0x2c2   : >>> { %1492 = vst [vmem:[%s769_s26 + $0x1] sm:$0x1] %v782_v33  ;;  %v790_v35 = vsel %vm789_vm15, %v1491_v23, %v1493_v34  ;;  %452 = sbr.rel (!%p450_p9) target bundleno = 274 (0x112), region = 494 }
 0x2c3   : >>> { %792 = vst [vmem:[%s770_s28] sm:$0x1f] %v790_v35 }
 0x2c4   : >>> { %v806_v36 = vld [vmem:[%s794_s15] ss:$0 sm:$0xff]  ;;  %v1497_v37 = vld [vmem:[%s794_s15 + $0x1] sm:$0xf] }
 0x2c5   : >>> { %1496 = vst [vmem:[%s793_s24 + $0x1] sm:$0x1] %v806_v36  ;;  %v814_v38 = vsel %vm789_vm15, %v1495_v30, %v1497_v37 }
 0x2c6   : >>> { %816 = vst [vmem:[%s794_s15] sm:$0x1f] %v814_v38 }
 0x2c9   : >> { %v364_v39 = vld [vmem:[%s358_s27] sm:$0x1f] }
 0x2ca   : >> { %v365_v41 = vsel %vm1359_vm2, %v364_v39, 0.0  ;;  %v400_v43 = vld [vmem:[%s394_s22] sm:$0x1f] }
 0x2cb   : >> { %v366_v45 = vmul.f32 %v365_v41, %v365_v41  ;;  %v401_v47 = vsel %vm1359_vm2, %v400_v43, 0.0 }
 0x2cc   : >> { %v383_v40 = vld [vmem:[%s377_s21] sm:$0x1f]  ;;  %v402_v49 = vmul.f32 %v401_v47, %v401_v47 }
 0x2cd   : >> { %v384_v42 = vsel %vm1359_vm2, %v383_v40, 0.0  ;;  %v417_v44 = vld [vmem:[%s411_s29] sm:$0x1f]  ;;  %v370_v52 = vsel %vm369_vm8, 0.0, %v366_v45 }
 0x2ce   : >> { %v385_v46 = vmul.f32 %v384_v42, %v384_v42  ;;  %v418_v48 = vsel %vm1359_vm2, %v417_v44, 0.0 }
 0x2cf   : >> { %v419_v51 = vmul.f32 %v418_v48, %v418_v48 }
 0x2d0   : >> { %v387_v50 = vadd.f32 %v385_v46, %v366_v45  ;;  %v386_v53 = vadd.f32 %v385_v46, %v370_v52 }
 0x2d1   : >> { %v423_v56 = vsel %vm422_vm9, 0.0, %v419_v51 }
 0x2d2   : >> { %v404_v54 = vadd.f32 %v402_v49, %v387_v50  ;;  %v403_v55 = vadd.f32 %v402_v49, %v386_v53 }
 0x2d4   : >> { %v425_v57 = vadd.f32 %v419_v51, %v404_v54  ;;  %v424_v58 = vadd.f32 %v423_v56, %v403_v55 }
 0x2d6   : >> { %426 = vadd.xlane.f32.xlu0 %v425_v57 }
 0x2da   : >> { %434 = vadd.xlane.f32.xlu0 %v424_v58 }
 0x363   : >> { %v427_v59 = vpop.xlane.xlu0 %426 }
 0x364   : >> { %v428_v60 = vrot.slane %v427_v59, 4 }
 0x366   : >> { %v429_v61 = vadd.f32 %v428_v60, %v427_v59 }
 0x367   : >> { %v435_v62 = vpop.xlane.xlu0 %434 }
 0x368   : >> { %v430_v63 = vrot.slane %v429_v61, 2  ;;  %v436_v0 = vrot.slane %v435_v62, 4 }
 0x36a   : >> { %v437_v1 = vadd.f32 %v436_v0, %v435_v62  ;;  %v431_v2 = vadd.f32 %v430_v63, %v429_v61 }
 0x36c   : >> { %v438_v3 = vrot.slane %v437_v1, 2  ;;  %v432_v7 = vrot.slane %v431_v2, 1 }
 0x36e   : >> { %v439_v4 = vadd.f32 %v438_v3, %v437_v1  ;;  %v433_v10 = vadd.f32 %v432_v7, %v431_v2 }
 0x370   : >> { %v440_v8 = vrot.slane %v439_v4, 1 }
 0x372   : >> { %v441_v9 = vadd.f32 %v440_v8, %v439_v4 }
 0x374   : >> { %1524 = vpush %v441_v9 }
 0x375   : >> { %1526 = vpush %v433_v10 }
 0x3a5   : >> { %s1525_s23 = spop %1524 }
 0x3a6   : >> { %s1527_s26 = spop %1526 }
 0x3a7   : >> { %s444_s24 = smul.f32 1e-10, %s1527_s26 }
 0x3a9   : >> { %p445_p11 = scmp.le.f32.partialorder %s1525_s23, %s444_s24 }
 0x3ab   : >> { %p447_p12 = por %p446_p10, %p445_p11 }
 0x3ad   : > { %895 = sbr.rel (!%p447_p12) target bundleno = 273 (0x111), region = 505 }
 0x3b4 PF: > { %s900_s28 = smov [#allocation12]  ;;  %v904_v5 = vmov %v1727_v5  ;;  %v907_v6 = vmov %v1729_v6  ;;  %s920_s15 = smov [#allocation15] }
 0x3b5   : > { %v924_v5 = vmov %v1727_v5  ;;  %v927_v6 = vmov %v1729_v6  ;;  %v908_v11 = vld [vmem:[%s900_s28] sm:$0x1f]  ;;  %vm911_vm10 = vcmp.eq.s32.totalorder %v907_v6, %v904_v5  ;;  %s896_s16 = sand.u32 7, %s1688_s12   ;;  %s2012_s21 = scalar_lea.vmem [#allocation7], %s1725_s18 }
 0x3b6   : > { %vm931_vm11 = vcmp.eq.s32.totalorder %v927_v6, %v924_v5  ;;  %v912_v12 = vsel %vm911_vm10, %v908_v11, 0.0  ;;  %v928_v14 = vld [vmem:[%s920_s15] sm:$0x1f]  ;;  %s897_s11 = scalar_lea.vmem [#allocation4], %s896_s16  ;;  %s899_s27 = scalar_lea.vmem [#allocation6], %s896_s16 }
 0x3b7   : > { %v913_v13 = vrot.slane %v912_v12, 4  ;;  %v932_v15 = vsel %vm931_vm11, %v928_v14, 0.0  ;;  %s901_s11 = smov %s897_s11  ;;  %s921_s27 = smov %s899_s27 }
 0x3b8   : > { %v933_v17 = vrot.slane %v932_v15, 4  ;;  %s979_s22 = sshrl.u32 (%p1702_p3), %s1688_s12, 3 }
 0x3b9   : > { %v914_v16 = vadd.f32 %v913_v13, %v912_v12  ;;  %s1512_s29 = sshll.u32 (%p1702_p3), %s979_s22, 1 }
 0x3ba   : > { %v934_v19 = vadd.f32 %v933_v17, %v932_v15  ;;  %s981_s24 = scalar_lea.vmem (%p1702_p3), %s2003_s4, %s1512_s29 }
 0x3bb   : > { %v915_v18 = vrot.slane %v914_v16, 2 }
 0x3bc   : > { %v935_v21 = vrot.slane %v934_v19, 2 }
 0x3bd   : > { %v916_v20 = vadd.f32 %v915_v18, %v914_v16 }
 0x3be   : > { %v936_v23 = vadd.f32 %v935_v21, %v934_v19 }
 0x3bf   : > { %v917_v22 = vrot.slane %v916_v20, 1 }
 0x3c0   : > { %v937_v5 = vrot.slane %v936_v23, 1 }
 0x3c1   : > { %v918_v24 = vadd.f32 %v917_v22, %v916_v20 }
 0x3c2   : > { %v938_v6 = vadd.f32 %v937_v5, %v936_v23 }
 0x3c3   : > { %919 = vst [vmem:[%s901_s11] sm:$0x1] %v918_v24 }
 0x3c4   : > { %939 = vst [vmem:[%s921_s27] sm:$0x1] %v938_v6 }
 0x3c6   : > { %978 = sbr.rel (!%p1702_p3) target bundleno = 980 (0x3d4), region = 174 }
 0x3ca   : > { %v943_v25 = vld [vmem:[#allocation4] sm:$0x3] }
 0x3cb   : > { %945 = vst [vmem:[%s283_s25] sm:$0x3] %v943_v25  ;;  %v949_v26 = vld [vmem:[#allocation6] sm:$0x3] }
 0x3cc   : > { %951 = vst [vmem:[%s2012_s21] sm:$0x3] %v949_v26 }
 0x3d2   : > { %v997_v27 = vld [vmem:[%s283_s25] sm:$0x3] }
 0x3d3   : > { %998 = vst [vmem:[%s981_s24] sm:$0x3] %v997_v27 }
 0x3d4 PF: > { %1015 = sbr.rel (!%p1702_p3) target bundleno = 988 (0x3dc), region = 208  ;;  %s1016_s28 = sshrl.u32 (%p1702_p3), %s1688_s12, 3 }
 0x3d5   : > { %s2013_s15 = scalar_lea.vmem (%p1702_p3), [#allocation7], %s1725_s18  ;;  %s1513_s16 = sshll.u32 (%p1702_p3), %s1016_s28, 1 }
 0x3d6   : > { %s1018_s25 = scalar_lea.vmem (%p1702_p3), %s2004_s5, %s1513_s16 }
 0x3da   : > { %v1034_v28 = vld [vmem:[%s2013_s15] sm:$0x3] (%p1702_p3) }
 0x3db   : > { %1035 = vst [vmem:[%s1018_s25] sm:$0x3] %v1034_v28 }
 0x3dc PF: > { %s1514_s21 = sshll.u32 %s1688_s12, 3  ;;  %v1079_v29 = vld [vmem:[%s1731_s14] sm:$0xff]  ;;  %v1113_v30 = vld [vmem:[%s1734_s30] sm:$0xff] }
 0x3dd   : > { %v1147_v31 = vld [vmem:[%s1737_s17] sm:$0xff]  ;;  %s1051_s18 = scalar_lea.vmem %s2005_s6, %s1514_s21  ;;  %s1085_s26 = scalar_lea.vmem %s2006_s7, %s1514_s21  ;;  %v1181_v32 = vld [vmem:[%s1740_s20] sm:$0xff] }
 0x3de   : > { %1080 = vst [vmem:[%s1051_s18] sm:$0xff] %v1079_v29  ;;  %1114 = vst [vmem:[%s1085_s26] sm:$0xff] %v1113_v30  ;;  %s1119_s15 = scalar_lea.vmem %s2007_s8, %s1514_s21  ;;  %s1153_s14 = scalar_lea.vmem %s2008_s9, %s1514_s21 }
 0x3df   : > { %1148 = vst [vmem:[%s1119_s15] sm:$0xff] %v1147_v31  ;;  %1182 = vst [vmem:[%s1153_s14] sm:$0xff] %v1181_v32 }
 0x3e0 PF: > { %s2014_s17 = sld [smem:[#allocation25_spill]]  ;;  %p13_p13 = scmp.ge.s32.totalorder %s1691_s13, 4  }
 0x3e1   : > { %s2015_s30 = smov %s1605_s10  ;;  %s2017_s11 = smov %s1691_s13 }
 0x3e2   :  { %15 = sbr.rel (!%p13_p13) target bundleno = 2 (0x2), region = 516 }
 0x3e6   : > { %s2016_s10 = smov %s2014_s17 }

// kernel: ptcnet_forward.6
= control target key start
LH: loop header
LB: loop body
LE: loop exit
PB: predicated region body
PF: predicated region fallthrough
CT: control target
= control target key end

     0   :  { %s2368_s17 = smov 0   ;;  %s3004_s0 = inlined_call_operand.vmem [shape: bf16[2,16,128], index: 0, kind: input, shape index: {}]   ;;  %s3005_s1 = inlined_call_operand.vmem [shape: f32[2,4,128], index: 1, kind: input, shape index: {}]   ;;  %s3006_s2 = inlined_call_operand.vmem [shape: bf16[128,16], index: 2, kind: input, shape index: {}]   ;;  %s3007_s3 = inlined_call_operand.vmem [shape: f32[128,1], index: 3, kind: input, shape index: {}]   ;;  %s3008_s4 = inlined_call_operand.vmem [shape: bf16[128,128], index: 4, kind: input, shape index: {}]   ;;  %s3009_s5 = inlined_call_operand.vmem [shape: f32[128,1], index: 5, kind: input, shape index: {}]   ;;  %s3010_s6 = inlined_call_operand.vmem [shape: bf16[128,128], index: 6, kind: input, shape index: {}]   ;;  %s3011_s7 = inlined_call_operand.vmem [shape: f32[128,1], index: 7, kind: input, shape index: {}]   ;;  %s3012_s8 = inlined_call_operand.vmem [shape: bf16[2,128], index: 8, kind: input, shape index: {}]   ;;  %s3013_s9 = inlined_call_operand.vmem [shape: f32[2,1], index: 9, kind: input, shape index: {}]   ;;  %s3014_s10 = inlined_call_operand.vmem [shape: f32[2,2,128], index: 10, kind: output, shape index: {0}]   ;;  %s3015_s11 = inlined_call_operand.vmem [shape: f32[2,9,9], index: 11, kind: output, shape index: {1}]  }
   0x1 LB: > { %s1969_s18 = sadd.s32 4294967295, %s2302_s17   ;;  %p1973_p0 = scmp.ge.s32.totalorder %s2302_s17, 1  ;;  %s2302_s17 = sphi %s2368_s17, %s22_s17  }
   0x2   : > { %p349_p1 = scmp.lt.s32.totalorder %s2302_s17, 3 }
   0x4   : > { %p350_p2 = pnand %p1973_p0, %p349_p1 }
   0x5   : > { %p397_p3 = scmp.lt.s32.totalorder (!%p350_p2), %s1969_s18, 1  ;;  %v2200_v0 = vld [vmem:[%s3006_s2] sm:$0xff] (!%p350_p2)   ;;  %vm576_vm0 = vcmask (!%p350_p2), 130048   ;;  %v2304_v1 = vmov (!%p350_p2), 0   ;;  %v2201_v4 = vld [vmem:[%s3006_s2 + $0x8] sm:$0xff] (!%p350_p2)   ;;  %v2202_v5 = vld [vmem:[%s3006_s2 + $0x10] sm:$0xff] (!%p350_p2)  }
   0x6   : > { %353 = sbr.rel (%p350_p2) target bundleno = 2026 (0x7ea), region = 60  ;;  %2074 = vmatprep.mubr.msk.bf16.mxu0 (!%p350_p2), %vm576_vm0, %v2200_v0  ;;  %2197 = vset.pattern.permute.xlu0 (!%p350_p2), %v2304_v1  ;;  %v434_v3 = vld [vmem:[%s3007_s3] sm:$0xff] (!%p350_p2)  ;;  %v436_v6 = vld [vmem:[%s3007_s3 + $0x10] sm:$0xff] (!%p350_p2)  ;;  %v435_v7 = vld [vmem:[%s3007_s3 + $0x8] sm:$0xff] (!%p350_p2)  ;;  %vm2306_vm1 = vmmov (!%p350_p2), 0   ;;  %vm1773_vm2 = vcmask (!%p350_p2), 1040384  }
   0x7   : > { %2198 = vset.pattern.permute.xlu1 (!%p350_p2), %v2304_v1  ;;  %452 = vperm.xlu0 (!%p350_p2), %2197, %v434_v3   ;;  %v437_v8 = vld [vmem:[%s3007_s3 + $0x18] sm:$0xff] (!%p350_p2)  ;;  %v438_v9 = vld [vmem:[%s3007_s3 + $0x20] sm:$0xff] (!%p350_p2)  ;;  %v439_v11 = vld [vmem:[%s3007_s3 + $0x28] sm:$0xff] (!%p350_p2)  ;;  %vm1775_vm3 = vcmask (!%p350_p2), 1041408   ;;  %vm1777_vm4 = vcmask (!%p350_p2), 1042432   ;;  %vm1779_vm5 = vcmask (!%p350_p2), 1043456  }
   0x8   : > { %462 = vperm.xlu1 (!%p350_p2), %2198, %v436_v6   ;;  %v2203_v10 = vld [vmem:[%s3006_s2 + $0x18] sm:$0xff] (!%p350_p2)   ;;  %v2204_v12 = vld [vmem:[%s3006_s2 + $0x20] sm:$0xff] (!%p350_p2)   ;;  %v440_v13 = vld [vmem:[%s3007_s3 + $0x30] sm:$0xff] (!%p350_p2)  ;;  %vm1781_vm6 = vcmask (!%p350_p2), 1044480   ;;  %vm1783_vm7 = vcmask (!%p350_p2), 1045504   ;;  %vm1785_vm8 = vcmask (!%p350_p2), 1046528  }
   0x9   : > { %v441_v14 = vld [vmem:[%s3007_s3 + $0x38] sm:$0xff] (!%p350_p2)  ;;  %v442_v15 = vld [vmem:[%s3007_s3 + $0x40] sm:$0xff] (!%p350_p2)  ;;  %v2205_v16 = vld [vmem:[%s3006_s2 + $0x28] sm:$0xff] (!%p350_p2)   ;;  %vm1746_vm9 = vcmask (!%p350_p2), 1041409   ;;  %vm1869_vm10 = vcmask (!%p350_p2), 65536   ;;  %vm1867_vm11 = vcmask (!%p350_p2), 72704  }
   0xa   : > { %v443_v17 = vld [vmem:[%s3007_s3 + $0x48] sm:$0xff] (!%p350_p2)  ;;  %v2206_v18 = vld [vmem:[%s3006_s2 + $0x30] sm:$0xff] (!%p350_p2)   ;;  %v445_v20 = vld [vmem:[%s3007_s3 + $0x58] sm:$0xff] (!%p350_p2) }
   0xb   : > { %457 = vperm.xlu0 (!%p350_p2), %2197, %v435_v7   ;;  %v444_v19 = vld [vmem:[%s3007_s3 + $0x50] sm:$0xff] (!%p350_p2)  ;;  %v446_v21 = vld [vmem:[%s3007_s3 + $0x60] sm:$0xff] (!%p350_p2)  ;;  %v2207_v22 = vld [vmem:[%s3006_s2 + $0x38] sm:$0xff] (!%p350_p2)  }
   0xc   : > { %467 = vperm.xlu1 (!%p350_p2), %2198, %v437_v8   ;;  %v447_v23 = vld [vmem:[%s3007_s3 + $0x68] sm:$0xff] (!%p350_p2)  ;;  %v448_v24 = vld [vmem:[%s3007_s3 + $0x70] sm:$0xff] (!%p350_p2)  ;;  %v449_v25 = vld [vmem:[%s3007_s3 + $0x78] sm:$0xff] (!%p350_p2) }
   0xd   : > { %s3027_s18 = smov (!%p397_p3, %s1969_s18), 1  ;;  %v738_v26 = vld [vmem:[%s3009_s5] sm:$0xff]  ;;  %v739_v27 = vld [vmem:[%s3009_s5 + $0x8] sm:$0xff]  ;;  %v740_v28 = vld [vmem:[%s3009_s5 + $0x10] sm:$0xff] }
   0xe   : > { %s2016_s21 = sshll.u32 %s3027_s18, 3  ;;  %v741_v29 = vld [vmem:[%s3009_s5 + $0x18] sm:$0xff]  ;;  %v742_v30 = vld [vmem:[%s3009_s5 + $0x20] sm:$0xff]  ;;  %v743_v31 = vld [vmem:[%s3009_s5 + $0x28] sm:$0xff]  ;;  %s1976_s16 = sshll.u32 %s3027_s18, 2 }
   0xf   : > { %s401_s24 = scalar_lea.vmem %s3004_s0, %s2016_s21  ;;  %472 = vperm.xlu0 %2197, %v438_v9   ;;  %v744_v32 = vld [vmem:[%s3009_s5 + $0x30] sm:$0xff]  ;;  %v745_v33 = vld [vmem:[%s3009_s5 + $0x38] sm:$0xff]  ;;  %v746_v34 = vld [vmem:[%s3009_s5 + $0x40] sm:$0xff]  ;;  %s405_s21 = scalar_lea.vmem %s3005_s1, %s1976_s16 }
  0x10   : > { %v2199_v2 = vld [vmem:[%s401_s24] sm:$0xff]   ;;  %477 = vperm.xlu1 %2198, %v439_v11   ;;  %v747_v35 = vld [vmem:[%s3009_s5 + $0x48] sm:$0xff]  ;;  %v748_v36 = vld [vmem:[%s3009_s5 + $0x50] sm:$0xff]  ;;  %s1977_s22 = sshll.u32 %s3027_s18, 1  ;;  %s2017_s26 = sshll.u32 %s3027_s18, 4 }
  0x11   : > { %2072 = vmatprep.subr.bf16.mxu0 %v2199_v2  ;;  %v749_v37 = vld [vmem:[%s3009_s5 + $0x58] sm:$0xff]  ;;  %v750_v38 = vld [vmem:[%s3009_s5 + $0x60] sm:$0xff]  ;;  %v751_v39 = vld [vmem:[%s3009_s5 + $0x68] sm:$0xff]  ;;  %s409_s25 = scalar_lea.vmem %s3014_s10, %s1977_s22  ;;  %s414_s29 = scalar_lea.vmem %s3015_s11, %s2017_s26 }
  0x12   : > { %2073 = vmatpush3.bf16.msra.mxu0 %v2199_v2  ;;  %v752_v40 = vld [vmem:[%s3009_s5 + $0x70] sm:$0xff]  ;;  %v753_v41 = vld [vmem:[%s3009_s5 + $0x78] sm:$0xff]  ;;  %v2208_v42 = vld [vmem:[%s3008_s4] sm:$0xff]  }
  0x13   : > { %482 = vperm.xlu0 %2197, %v440_v13   ;;  %2106 = vmatprep.mubr.bf16.mxu1 %v2208_v42 }
  0x14   : > { %487 = vperm.xlu1 %2198, %v441_v14  }
  0x15   : > { %2075 = vmatmul.mubr.msk.bf16.vlgmr.msra.gmra.mrb[0].mxu0 %vm576_vm0, %v2201_v4 }
  0x16   : > { %2078 = vmatprep.mubr.msk.bf16.mxu0 %vm576_vm0, %v2202_v5 }
  0x17   : > { %492 = vperm.xlu0 %2197, %v442_v15  }
  0x18   : > { %497 = vperm.xlu1 %2198, %v443_v17  }
  0x1b   : > { %502 = vperm.xlu0 %2197, %v444_v19  }
  0x1c   : > { %507 = vperm.xlu1 %2198, %v445_v20  }
  0x1d   : > { %2079 = vmatmul.mubr.msk.bf16.gmra.mrb[4].mxu0 %vm576_vm0, %v2203_v10 }
  0x1e   : > { %2082 = vmatprep.mubr.msk.bf16.mxu0 %vm576_vm0, %v2204_v12 }
  0x1f   : > { %512 = vperm.xlu0 %2197, %v446_v21  }
  0x20   : > { %517 = vperm.xlu1 %2198, %v447_v23  }
  0x23   : > { %522 = vperm.xlu0 %2197, %v448_v24  }
  0x24   : > { %527 = vperm.xlu1 %2198, %v449_v25  }
  0x25   : > { %2083 = vmatmul.mubr.msk.bf16.gmra.mrb[8].mxu0 %vm576_vm0, %v2205_v16 }
  0x26   : > { %2086 = vmatprep.mubr.msk.bf16.mxu0 %vm576_vm0, %v2206_v18 }
  0x27   : > { %756 = vperm.xlu0 %2197, %v738_v26  }
  0x28   : > { %761 = vperm.xlu1 %2198, %v739_v27  }
  0x2b   : > { %766 = vperm.xlu0 %2197, %v740_v28  }
  0x2c   : > { %771 = vperm.xlu1 %2198, %v741_v29  }
  0x2d   : > { %2087 = vmatmul.mubr.msk.bf16.gmra.mrb[12].mxu0 %vm576_vm0, %v2207_v22 }
  0x2f   : > { %776 = vperm.xlu0 %2197, %v742_v30  }
  0x30   : > { %781 = vperm.xlu1 %2198, %v743_v31  }
  0x33   : > { %786 = vperm.xlu0 %2197, %v744_v32  }
  0x34   : > { %791 = vperm.xlu1 %2198, %v745_v33  }
  0x37   : > { %796 = vperm.xlu0 %2197, %v746_v34  }
  0x38   : > { %801 = vperm.xlu1 %2198, %v747_v35  }
  0x3b   : > { %806 = vperm.xlu0 %2197, %v748_v36  }
  0x3c   : > { %811 = vperm.xlu1 %2198, %v749_v37  }
  0x3f   : > { %816 = vperm.xlu0 %2197, %v750_v38  }
  0x40   : > { %821 = vperm.xlu1 %2198, %v751_v39  }
  0x43   : > { %826 = vperm.xlu0 %2197, %v752_v40  }
  0x44   : > { %831 = vperm.xlu1 %2198, %v753_v41  }
  0x86   : > { %v453_v44 = vpop.permute.xlu0 %452 }
  0x87   : > { %v463_v43 = vpop.permute.xlu1 %462 }
  0x8a   : > { %v458_v46 = vpop.permute.xlu0 %457 }
  0x8b   : > { %v468_v45 = vpop.permute.xlu1 %467 }
  0x8e   : > { %v473_v48 = vpop.permute.xlu0 %472 }
  0x8f   : > { %v478_v47 = vpop.permute.xlu1 %477 }
  0x92   : > { %v483_v54 = vpop.permute.xlu0 %482 }
  0x93   : > { %v488_v51 = vpop.permute.xlu1 %487 }
  0x96   : > { %v493_v2 = vpop.permute.xlu0 %492 }
  0x97   : > { %v498_v62 = vpop.permute.xlu1 %497 }
  0x9a   : > { %v503_v15 = vpop.permute.xlu0 %502 }
  0x9b   : > { %v508_v11 = vpop.permute.xlu1 %507 }
  0x9e   : > { %v513_v28 = vpop.permute.xlu0 %512 }
  0x9f   : > { %v518_v25 = vpop.permute.xlu1 %517 }
  0xa2   : > { %v523_v40 = vpop.permute.xlu0 %522 }
  0xa3   : > { %v528_v36 = vpop.permute.xlu1 %527 }
  0xe8   : > { %v2076_v49 = vpop.f32.mrb[0].mxu0 }
  0xe9   : > { %v635_v50 = vpop.f32.mrb[1].mxu0  ;;  %v2517_v57 = vadd.f32 %v2076_v49, %v463_v43 }
  0xea   : > { %v2513_v52 = vadd.f32 %v635_v50, %v453_v44  ;;  %v2077_v53 = vpop.f32.mrb[2].mxu0 }
  0xeb   : > { %v2515_v55 = vadd.f32 %v2077_v53, %v468_v45  ;;  %v638_v56 = vpop.f32.mrb[3].mxu0  ;;  %v700_v63 = vmax.f32 %v2517_v57, 0.0  ;;  %v2210_v53 = vld [vmem:[%s3008_s4 + $0x10] sm:$0xff]  }
  0xec   : > { %v2519_v58 = vadd.f32 %v638_v56, %v458_v46  ;;  %v698_v59 = vmax.f32 %v2513_v52, 0.0  ;;  %v2212_v56 = vld [vmem:[%s3008_s4 + $0x20] sm:$0xff]  }
  0xed   : > { %v701_v60 = vmax.f32 %v2515_v55, 0.0 }
  0xee   : > { %v699_v61 = vmax.f32 %v2519_v58, 0.0 }
  0xef   : > { %v731_v4 = vpack.c.bf16 %v701_v60, %v700_v63 }
  0xf0   : > { %v2080_v0 = vpop.f32.mrb[4].mxu0  ;;  %v730_v1 = vpack.c.bf16 %v699_v61, %v698_v59 }
  0xf1   : > { %v651_v3 = vpop.f32.mrb[5].mxu0  ;;  %v2537_v9 = vadd.f32 %v2080_v0, %v483_v54  ;;  %v2211_v54 = vld [vmem:[%s3008_s4 + $0x18] sm:$0xff]   ;;  %v2214_v0 = vld [vmem:[%s3008_s4 + $0x30] sm:$0xff]  }
  0xf2   : > { %v2533_v5 = vadd.f32 %v651_v3, %v473_v48  ;;  %v2081_v6 = vpop.f32.mrb[6].mxu0  ;;  %2090 = vmatprep.subr.bf16.mxu1 %v730_v1  ;;  %v762_v3 = vpop.permute.xlu1 %761 }
  0xf3   : > { %v2535_v7 = vadd.f32 %v2081_v6, %v488_v51  ;;  %v654_v8 = vpop.f32.mrb[7].mxu0  ;;  %2091 = vmatpush3.bf16.msra.mxu1 %v730_v1  ;;  %v704_v16 = vmax.f32 %v2537_v9, 0.0  ;;  %v2209_v51 = vld [vmem:[%s3008_s4 + $0x8] sm:$0xff]   ;;  %v2215_v1 = vld [vmem:[%s3008_s4 + $0x38] sm:$0xff]  }
  0xf4   : > { %v2539_v10 = vadd.f32 %v654_v8, %v478_v47  ;;  %2092 = vmatprep.subr.bf16.mxu1 %v731_v4  ;;  %v702_v12 = vmax.f32 %v2533_v5, 0.0 }
  0xf5   : > { %v705_v13 = vmax.f32 %v2535_v7, 0.0 }
  0xf6   : > { %v703_v14 = vmax.f32 %v2539_v10, 0.0  ;;  %v772_v6 = vpop.permute.xlu1 %771 }
  0xf7   : > { %2093 = vmatpush3.bf16.msra.mxu1 %v731_v4  ;;  %v733_v20 = vpack.c.bf16 %v705_v13, %v704_v16 }
  0xf8   : > { %v732_v17 = vpack.c.bf16 %v703_v14, %v702_v12  ;;  %v2084_v18 = vpop.f32.mrb[8].mxu0 }
  0xf9   : > { %v667_v19 = vpop.f32.mrb[9].mxu0  ;;  %v2557_v26 = vadd.f32 %v2084_v18, %v503_v15 }
  0xfa   : > { %v2553_v21 = vadd.f32 %v667_v19, %v493_v2  ;;  %v2085_v22 = vpop.f32.mrb[10].mxu0  ;;  %2094 = vmatprep.subr.bf16.mxu1 %v732_v17  ;;  %v757_v2 = vpop.permute.xlu0 %756 }
  0xfb   : > { %v2555_v23 = vadd.f32 %v2085_v22, %v508_v11  ;;  %v670_v24 = vpop.f32.mrb[11].mxu0  ;;  %2095 = vmatpush3.bf16.msra.mxu1 %v732_v17  ;;  %v708_v32 = vmax.f32 %v2557_v26, 0.0  ;;  %v782_v19 = vpop.permute.xlu1 %781 }
  0xfc   : > { %v2559_v27 = vadd.f32 %v670_v24, %v498_v62  ;;  %2096 = vmatprep.subr.bf16.mxu1 %v733_v20  ;;  %v706_v29 = vmax.f32 %v2553_v21, 0.0  ;;  %v2213_v62 = vld [vmem:[%s3008_s4 + $0x28] sm:$0xff]  }
  0xfd   : > { %v3020_v30 = vmax.f32 %v2555_v23, 0.0 }
  0xfe   : > { %v707_v31 = vmax.f32 %v2559_v27, 0.0  ;;  %v767_v4 = vpop.permute.xlu0 %766  ;;  %v3021_v27 = vmax.f32 %v2555_v23, 0.0 }
  0xff   : > { %2097 = vmatpush3.bf16.msra.mxu1 %v733_v20  ;;  %v735_v37 = vpack.c.bf16 %v3020_v30, %v708_v32 }
 0x100   : > { %v734_v33 = vpack.c.bf16 %v707_v31, %v706_v29  ;;  %v2088_v34 = vpop.f32.mrb[12].mxu0 }
 0x101   : > { %v683_v35 = vpop.f32.mrb[13].mxu0  ;;  %v2577_v43 = vadd.f32 %v2088_v34, %v523_v40 }
 0x102   : > { %v2573_v38 = vadd.f32 %v683_v35, %v513_v28  ;;  %v2089_v39 = vpop.f32.mrb[14].mxu0  ;;  %2098 = vmatprep.subr.bf16.mxu1 %v734_v33  ;;  %v777_v8 = vpop.permute.xlu0 %776 }
 0x103   : > { %v2575_v41 = vadd.f32 %v2089_v39, %v528_v36  ;;  %v686_v42 = vpop.f32.mrb[15].mxu0  ;;  %2099 = vmatpush3.bf16.msra.mxu1 %v734_v33  ;;  %v3017_v48 = vmax.f32 %v2577_v43, 0.0  ;;  %v792_v33 = vpop.permute.xlu1 %791 }
 0x104   : > { %v2579_v44 = vadd.f32 %v686_v42, %v518_v25  ;;  %2100 = vmatprep.subr.bf16.mxu1 %v735_v37  ;;  %v3019_v45 = vmax.f32 %v2573_v38, 0.0  ;;  %v3022_v26 = vmax.f32 %v2573_v38, 0.0 }
 0x105   : > { %v3016_v46 = vmax.f32 %v2575_v41, 0.0  ;;  %v3025_v38 = vmax.f32 %v2575_v41, 0.0  ;;  %v1733_v41 = vld [vmem:[%s405_s21] sm:$0xf] }
 0x106   : > { %v3018_v47 = vmax.f32 %v2579_v44, 0.0  ;;  %v787_v24 = vpop.permute.xlu0 %786 }
 0x107   : > { %2101 = vmatpush3.bf16.msra.mxu1 %v735_v37  ;;  %v737_v50 = vpack.c.bf16 %v3016_v46, %v3017_v48 }
 0x108   : > { %v736_v49 = vpack.c.bf16 %v3018_v47, %v3019_v45 }
 0x10a   : > { %2102 = vmatprep.subr.bf16.mxu1 %v736_v49  ;;  %v797_v39 = vpop.permute.xlu0 %796 }
 0x10b   : > { %2103 = vmatpush3.bf16.msra.mxu1 %v736_v49 }
 0x10c   : > { %2104 = vmatprep.subr.bf16.mxu1 %v737_v50 }
 0x10f   : > { %2105 = vmatpush3.bf16.msra.mxu1 %v737_v50  ;;  %v802_v50 = vpop.permute.xlu1 %801 }
 0x112   : > { %2107 = vmatmul.mubr.bf16.vlgmr.msra.gmra.mrb[0].mxu1 %v2209_v51 }
 0x113   : > { %2110 = vmatprep.mubr.bf16.mxu1 %v2210_v53  ;;  %v807_v53 = vpop.permute.xlu0 %806 }
 0x11a   : > { %2111 = vmatmul.mubr.bf16.gmra.mrb[4].mxu1 %v2211_v54 }
 0x11b   : > { %2114 = vmatprep.mubr.bf16.mxu1 %v2212_v56 }
 0x122   : > { %2115 = vmatmul.mubr.bf16.gmra.mrb[8].mxu1 %v2213_v62 }
 0x123   : > { %2118 = vmatprep.mubr.bf16.mxu1 %v2214_v0 }
 0x12a   : > { %2119 = vmatmul.mubr.bf16.gmra.mrb[12].mxu1 %v2215_v1 }
 0x1e5   : > { %v2108_v11 = vpop.f32.mrb[0].mxu1 }
 0x1e6   : > { %v916_v15 = vpop.f32.mrb[1].mxu1  ;;  %v925_v25 = vadd.f32 %v2108_v11, %v767_v4 }
 0x1e7   : > { %v917_v17 = vadd.f32 %v916_v15, %v757_v2  ;;  %v2109_v18 = vpop.f32.mrb[2].mxu1  ;;  %v812_v2 = vpop.permute.xlu1 %811 }
 0x1e8   : > { %v919_v20 = vpop.f32.mrb[3].mxu1  ;;  %v2614_v35 = vadd.f32 %v2109_v18, %v772_v6  ;;  %v817_v6 = vpop.permute.xlu0 %816 }
 0x1e9   : > { %v920_v22 = vadd.f32 %v919_v20, %v762_v3  ;;  %979 = vadd.xlane.f32.xlu0 %v917_v17 }
 0x1eb   : > { %981 = vadd.xlane.f32.xlu1 %v920_v22  ;;  %v822_v20 = vpop.permute.xlu1 %821 }
 0x1ed   : > { %v2112_v28 = vpop.f32.mrb[4].mxu1  ;;  %983 = vadd.xlane.f32.xlu0 %v925_v25 }
 0x1ee   : > { %v932_v34 = vpop.f32.mrb[5].mxu1  ;;  %v2617_v42 = vadd.f32 %v2112_v28, %v787_v24  ;;  %v827_v28 = vpop.permute.xlu0 %826 }
 0x1ef   : > { %v933_v36 = vadd.f32 %v932_v34, %v777_v8  ;;  %v2113_v37 = vpop.f32.mrb[6].mxu1 }
 0x1f0   : > { %v935_v40 = vpop.f32.mrb[7].mxu1  ;;  %v2623_v56 = vadd.f32 %v2113_v37, %v792_v33  ;;  %v832_v37 = vpop.permute.xlu1 %831 }
 0x1f1   : > { %987 = vadd.xlane.f32.xlu1 %v933_v36  ;;  %985 = vadd.xlane.f32.xlu0 %v2614_v35  ;;  %v2619_v49 = vadd.f32 %v935_v40, %v782_v19 }
 0x1f5   : > { %v2116_v51 = vpop.f32.mrb[8].mxu1  ;;  %991 = vadd.xlane.f32.xlu1 %v2617_v42  ;;  %989 = vadd.xlane.f32.xlu0 %v2619_v49 }
 0x1f6   : > { %v948_v54 = vpop.f32.mrb[9].mxu1  ;;  %v2629_v3 = vadd.f32 %v2116_v51, %v807_v53 }
 0x1f7   : > { %v2625_v62 = vadd.f32 %v948_v54, %v797_v39  ;;  %v2117_v0 = vpop.f32.mrb[10].mxu1 }
 0x1f8   : > { %v951_v1 = vpop.f32.mrb[11].mxu1  ;;  %v2635_v15 = vadd.f32 %v2117_v0, %v812_v2 }
 0x1f9   : > { %995 = vadd.xlane.f32.xlu1 %v2625_v62  ;;  %993 = vadd.xlane.f32.xlu0 %v2623_v56  ;;  %v2631_v4 = vadd.f32 %v951_v1, %v802_v50 }
 0x1fd   : > { %v2120_v8 = vpop.f32.mrb[12].mxu1  ;;  %999 = vadd.xlane.f32.xlu1 %v2629_v3  ;;  %997 = vadd.xlane.f32.xlu0 %v2631_v4 }
 0x1fe   : > { %v964_v11 = vpop.f32.mrb[13].mxu1  ;;  %v2641_v33 = vadd.f32 %v2120_v8, %v827_v28 }
 0x1ff   : > { %v2637_v18 = vadd.f32 %v964_v11, %v817_v6  ;;  %v2121_v19 = vpop.f32.mrb[14].mxu1 }
 0x200   : > { %v967_v24 = vpop.f32.mrb[15].mxu1  ;;  %v2647_v39 = vadd.f32 %v2121_v19, %v832_v37 }
 0x201   : > { %1003 = vadd.xlane.f32.xlu1 %v2637_v18  ;;  %1001 = vadd.xlane.f32.xlu0 %v2635_v15  ;;  %v2643_v34 = vadd.f32 %v967_v24, %v822_v20 }
 0x205   : > { %1007 = vadd.xlane.f32.xlu1 %v2641_v33  ;;  %1005 = vadd.xlane.f32.xlu0 %v2643_v34 }
 0x209   : > { %1009 = vadd.xlane.f32.xlu0 %v2647_v39 }
 0x276   : > { %v980_v40 = vpop.xlane.xlu0 %979 }
 0x277   : > { %v1012_v50 = vmul.f32 0.0078125, %v980_v40 }
 0x278   : > { %v982_v51 = vpop.xlane.xlu1 %981 }
 0x279   : > { %v2650_v53 = vsub.f32 %v917_v17, %v1012_v50  ;;  %v1013_v54 = vmul.f32 0.0078125, %v982_v51 }
 0x27a   : > { %v984_v0 = vpop.xlane.xlu0 %983 }
 0x27b   : > { %v2652_v1 = vsub.f32 %v920_v22, %v1013_v54  ;;  %v1014_v2 = vmul.f32 0.0078125, %v984_v0  ;;  %v1044_v6 = vmul.f32 %v2650_v53, %v2650_v53 }
 0x27d   : > { %v2656_v8 = vsub.f32 %v925_v25, %v1014_v2  ;;  %1060 = vadd.xlane.f32.xlu1 %v1044_v6  ;;  %v1045_v11 = vmul.f32 %v2652_v1, %v2652_v1 }
 0x27e   : > { %v988_v19 = vpop.xlane.xlu1 %987  ;;  %v986_v20 = vpop.xlane.xlu0 %985 }
 0x27f   : > { %v1016_v24 = vmul.f32 0.0078125, %v988_v19  ;;  %v1015_v28 = vmul.f32 0.0078125, %v986_v20  ;;  %1062 = vadd.xlane.f32.xlu0 %v1045_v11  ;;  %v1046_v17 = vmul.f32 %v2656_v8, %v2656_v8 }
 0x281   : > { %v2662_v22 = vsub.f32 %v933_v36, %v1016_v24  ;;  %v2665_v37 = vsub.f32 %v2614_v35, %v1015_v28  ;;  %1064 = vadd.xlane.f32.xlu1 %v1046_v17 }
 0x282   : > { %v992_v25 = vpop.xlane.xlu1 %991  ;;  %v990_v40 = vpop.xlane.xlu0 %989 }
 0x283   : > { %v1018_v50 = vmul.f32 0.0078125, %v992_v25  ;;  %v1017_v51 = vmul.f32 0.0078125, %v990_v40  ;;  %v1048_v54 = vmul.f32 %v2662_v22, %v2662_v22  ;;  %v1047_v0 = vmul.f32 %v2665_v37, %v2665_v37 }
 0x285   : > { %v2672_v2 = vsub.f32 %v2617_v42, %v1018_v50  ;;  %v2675_v36 = vsub.f32 %v2619_v49, %v1017_v51  ;;  %1068 = vadd.xlane.f32.xlu1 %v1048_v54  ;;  %1066 = vadd.xlane.f32.xlu0 %v1047_v0 }
 0x286   : > { %v996_v35 = vpop.xlane.xlu1 %995  ;;  %v994_v6 = vpop.xlane.xlu0 %993 }
 0x287   : > { %v1020_v11 = vmul.f32 0.0078125, %v996_v35  ;;  %v1019_v19 = vmul.f32 0.0078125, %v994_v6  ;;  %v1050_v20 = vmul.f32 %v2672_v2, %v2672_v2  ;;  %v1049_v24 = vmul.f32 %v2675_v36, %v2675_v36 }
 0x289   : > { %v2682_v28 = vsub.f32 %v2625_v62, %v1020_v11  ;;  %v2685_v42 = vsub.f32 %v2623_v56, %v1019_v19  ;;  %1072 = vadd.xlane.f32.xlu1 %v1050_v20  ;;  %1070 = vadd.xlane.f32.xlu0 %v1049_v24 }
 0x28a   : > { %v1000_v49 = vpop.xlane.xlu1 %999  ;;  %v998_v17 = vpop.xlane.xlu0 %997 }
 0x28b   : > { %v1022_v25 = vmul.f32 0.0078125, %v1000_v49  ;;  %v1021_v40 = vmul.f32 0.0078125, %v998_v17  ;;  %v1052_v50 = vmul.f32 %v2682_v28, %v2682_v28  ;;  %v1051_v51 = vmul.f32 %v2685_v42, %v2685_v42 }
 0x28d   : > { %v2692_v54 = vsub.f32 %v2629_v3, %v1022_v25  ;;  %v2695_v62 = vsub.f32 %v2631_v4, %v1021_v40  ;;  %1076 = vadd.xlane.f32.xlu1 %v1052_v50  ;;  %1074 = vadd.xlane.f32.xlu0 %v1051_v51 }
 0x28e   : > { %v1004_v56 = vpop.xlane.xlu1 %1003  ;;  %v1002_v0 = vpop.xlane.xlu0 %1001 }
 0x28f   : > { %v1024_v35 = vmul.f32 0.0078125, %v1004_v56  ;;  %v1023_v6 = vmul.f32 0.0078125, %v1002_v0  ;;  %v1054_v11 = vmul.f32 %v2692_v54, %v2692_v54  ;;  %v1053_v19 = vmul.f32 %v2695_v62, %v2695_v62 }
 0x291   : > { %v2702_v20 = vsub.f32 %v2637_v18, %v1024_v35  ;;  %v2705_v3 = vsub.f32 %v2635_v15, %v1023_v6  ;;  %1080 = vadd.xlane.f32.xlu1 %v1054_v11  ;;  %1078 = vadd.xlane.f32.xlu0 %v1053_v19  ;;  %v1214_v6 = vld [vmem:[%s3011_s7 + $0x10] sm:$0xff]  ;;  %v1213_v11 = vld [vmem:[%s3011_s7 + $0x8] sm:$0xff] }
 0x292   : > { %v1008_v4 = vpop.xlane.xlu1 %1007  ;;  %v1006_v24 = vpop.xlane.xlu0 %1005  ;;  %v1217_v19 = vld [vmem:[%s3011_s7 + $0x28] sm:$0xff] }
 0x293   : > { %v1026_v49 = vmul.f32 0.0078125, %v1008_v4  ;;  %v1025_v17 = vmul.f32 0.0078125, %v1006_v24  ;;  %v1056_v25 = vmul.f32 %v2702_v20, %v2702_v20  ;;  %v1055_v40 = vmul.f32 %v2705_v3, %v2705_v3  ;;  %v1216_v4 = vld [vmem:[%s3011_s7 + $0x20] sm:$0xff]  ;;  %v1219_v24 = vld [vmem:[%s3011_s7 + $0x38] sm:$0xff] }
 0x295   : > { %v2712_v50 = vsub.f32 %v2641_v33, %v1026_v49  ;;  %v2715_v18 = vsub.f32 %v2643_v34, %v1025_v17  ;;  %1084 = vadd.xlane.f32.xlu1 %v1056_v25  ;;  %1082 = vadd.xlane.f32.xlu0 %v1055_v40  ;;  %v1212_v34 = vld [vmem:[%s3011_s7] sm:$0xff]  ;;  %v1218_v49 = vld [vmem:[%s3011_s7 + $0x30] sm:$0xff]  ;;  %v1221_v17 = vld [vmem:[%s3011_s7 + $0x48] sm:$0xff] }
 0x296   : > { %v1010_v15 = vpop.xlane.xlu0 %1009  ;;  %v1220_v25 = vld [vmem:[%s3011_s7 + $0x40] sm:$0xff]  ;;  %v1223_v40 = vld [vmem:[%s3011_s7 + $0x58] sm:$0xff] }
 0x297   : > { %v1027_v51 = vmul.f32 0.0078125, %v1010_v15  ;;  %v1058_v56 = vmul.f32 %v2712_v50, %v2712_v50  ;;  %v1057_v0 = vmul.f32 %v2715_v18, %v2715_v18  ;;  %v1222_v15 = vld [vmem:[%s3011_s7 + $0x50] sm:$0xff] }
 0x299   : > { %v2722_v35 = vsub.f32 %v2647_v39, %v1027_v51  ;;  %1088 = vadd.xlane.f32.xlu1 %v1058_v56  ;;  %1086 = vadd.xlane.f32.xlu0 %v1057_v0  ;;  %v1215_v39 = vld [vmem:[%s3011_s7 + $0x18] sm:$0xff]  ;;  %v1225_v51 = vld [vmem:[%s3011_s7 + $0x68] sm:$0xff]  ;;  %v1224_v56 = vld [vmem:[%s3011_s7 + $0x60] sm:$0xff] }
 0x29a   : > { %v2216_v0 = vld [vmem:[%s3010_s6] sm:$0xff]  }
 0x29b   : > { %v1059_v33 = vmul.f32 %v2722_v35, %v2722_v35  ;;  %2138 = vmatprep.mubr.bf16.mxu0 %v2216_v0 }
 0x29d   : > { %1090 = vadd.xlane.f32.xlu0 %v1059_v33  ;;  %v1227_v33 = vld [vmem:[%s3011_s7 + $0x78] sm:$0xff] }
 0x2aa   : > { %1230 = vperm.xlu1 %2198, %v1212_v34   ;;  %v1226_v34 = vld [vmem:[%s3011_s7 + $0x70] sm:$0xff] }
 0x2ae   : > { %1240 = vperm.xlu1 %2198, %v1214_v6  }
 0x2b2   : > { %1245 = vperm.xlu1 %2198, %v1215_v39  }
 0x2b3   : > { %1235 = vperm.xlu0 %2197, %v1213_v11  }
 0x2b6   : > { %1255 = vperm.xlu1 %2198, %v1217_v19  }
 0x2b7   : > { %1250 = vperm.xlu0 %2197, %v1216_v4  }
 0x2ba   : > { %1265 = vperm.xlu1 %2198, %v1219_v24  }
 0x2bb   : > { %1260 = vperm.xlu0 %2197, %v1218_v49  }
 0x2be   : > { %1275 = vperm.xlu1 %2198, %v1221_v17  }
 0x2bf   : > { %1270 = vperm.xlu0 %2197, %v1220_v25  }
 0x2c2   : > { %1285 = vperm.xlu1 %2198, %v1223_v40  }
 0x2c3   : > { %1280 = vperm.xlu0 %2197, %v1222_v15  }
 0x2c6   : > { %1295 = vperm.xlu1 %2198, %v1225_v51  }
 0x2c7   : > { %1290 = vperm.xlu0 %2197, %v1224_v56  }
 0x2ca   : > { %1305 = vperm.xlu1 %2198, %v1227_v33  }
 0x2cb   : > { %1300 = vperm.xlu0 %2197, %v1226_v34  }
 0x30a   : > { %v1061_v6 = vpop.xlane.xlu1 %1060 }
 0x30b   : > { %v1092_v39 = vmul.f32 0.0078125, %v1061_v6 }
 0x30c   : > { %v1063_v11 = vpop.xlane.xlu0 %1062 }
 0x30d   : > { %v1108_v19 = vadd.f32 1e-05, %v1092_v39  ;;  %v1093_v4 = vmul.f32 0.0078125, %v1063_v11 }
 0x30e   : > { %v1065_v24 = vpop.xlane.xlu1 %1064 }
 0x30f   : > { %2224 = vrsqrt.f32 %v1108_v19  ;;  %v1109_v49 = vadd.f32 1e-05, %v1093_v4  ;;  %v1094_v17 = vmul.f32 0.0078125, %v1065_v24 }
 0x311   : > { %2226 = vrsqrt.f32 %v1109_v49  ;;  %v1110_v25 = vadd.f32 1e-05, %v1094_v17 }
 0x312   : > { %v1069_v40 = vpop.xlane.xlu1 %1068  ;;  %v1067_v15 = vpop.xlane.xlu0 %1066 }
 0x313   : > { %2228 = vrsqrt.f32 %v1110_v25  ;;  %v1096_v51 = vmul.f32 0.0078125, %v1069_v40  ;;  %v1095_v56 = vmul.f32 0.0078125, %v1067_v15 }
 0x315   : > { %v1112_v0 = vadd.f32 1e-05, %v1096_v51  ;;  %v1111_v46 = vadd.f32 1e-05, %v1095_v56 }
 0x316   : > { %v1073_v33 = vpop.xlane.xlu1 %1072  ;;  %v1071_v34 = vpop.xlane.xlu0 %1070 }
 0x317   : > { %2230 = vrsqrt.f32 %v1112_v0  ;;  %v1098_v6 = vmul.f32 0.0078125, %v1073_v33  ;;  %v1097_v48 = vmul.f32 0.0078125, %v1071_v34 }
 0x318   : > { %2232 = vrsqrt.f32 %v1111_v46 }
 0x319   : > { %v2225_v39 = vpop.eup %2224  ;;  %v1114_v11 = vadd.f32 1e-05, %v1098_v6  ;;  %v1113_v19 = vadd.f32 1e-05, %v1097_v48 }
 0x31a   : > { %v1077_v4 = vpop.xlane.xlu1 %1076  ;;  %v1075_v24 = vpop.xlane.xlu0 %1074  ;;  %v1140_v49 = vmul.f32 %v2225_v39, %v2650_v53 }
 0x31b   : > { %v2227_v17 = vpop.eup %2226  ;;  %2234 = vrsqrt.f32 %v1114_v11  ;;  %v1100_v25 = vmul.f32 0.0078125, %v1077_v4  ;;  %v1099_v40 = vmul.f32 0.0078125, %v1075_v24 }
 0x31c   : > { %2236 = vrsqrt.f32 %v1113_v19  ;;  %v1141_v15 = vmul.f32 %v2227_v17, %v2652_v1  ;;  %v1156_v51 = vmul.f32 0.999995, %v1140_v49 }
 0x31d   : > { %v2229_v56 = vpop.eup %2228  ;;  %v1116_v0 = vadd.f32 1e-05, %v1100_v25  ;;  %v1115_v33 = vadd.f32 1e-05, %v1099_v40 }
 0x31e   : > { %v1081_v34 = vpop.xlane.xlu1 %1080  ;;  %v1079_v46 = vpop.xlane.xlu0 %1078  ;;  %v1157_v47 = vmul.f32 0.999995, %v1141_v15  ;;  %v1142_v48 = vmul.f32 %v2229_v56, %v2656_v8  ;;  %v1172_v53 = vmax.f32 %v1156_v51, 0.0 }
 0x31f   : > { %2238 = vrsqrt.f32 %v1116_v0  ;;  %v1102_v6 = vmul.f32 0.0078125, %v1081_v34  ;;  %v1101_v45 = vmul.f32 0.0078125, %v1079_v46 }
 0x320   : > { %2240 = vrsqrt.f32 %v1115_v33  ;;  %v1173_v39 = vmax.f32 %v1157_v47, 0.0  ;;  %v1158_v25 = vmul.f32 0.999995, %v1142_v48 }
 0x321   : > { %v2231_v11 = vpop.eup %2230  ;;  %v1118_v4 = vadd.f32 1e-05, %v1102_v6  ;;  %v1117_v19 = vadd.f32 1e-05, %v1101_v45 }
 0x322   : > { %v2233_v24 = vpop.eup %2232  ;;  %v1085_v1 = vpop.xlane.xlu1 %1084  ;;  %v1204_v17 = vpack.c.bf16 %v1173_v39, %v1172_v53  ;;  %v1144_v8 = vmul.f32 %v2231_v11, %v2662_v22  ;;  %v1174_v46 = vmax.f32 %v1158_v25, 0.0 }
 0x323   : > { %v1083_v49 = vpop.xlane.xlu0 %1082  ;;  %2242 = vrsqrt.f32 %v1118_v4  ;;  %v1104_v40 = vmul.f32 0.0078125, %v1085_v1  ;;  %v1143_v15 = vmul.f32 %v2233_v24, %v2665_v37 }
 0x324   : > { %v1103_v30 = vmul.f32 0.0078125, %v1083_v49  ;;  %2244 = vrsqrt.f32 %v1117_v19  ;;  %2122 = vmatprep.subr.bf16.mxu0 %v1204_v17  ;;  %v1160_v4 = vmul.f32 0.999995, %v1144_v8 }
 0x325   : > { %v2235_v56 = vpop.eup %2234  ;;  %v1120_v51 = vadd.f32 1e-05, %v1104_v40  ;;  %2123 = vmatpush3.bf16.msra.mxu0 %v1204_v17  ;;  %v1159_v0 = vmul.f32 0.999995, %v1143_v15 }
 0x326   : > { %v1119_v47 = vadd.f32 1e-05, %v1103_v30  ;;  %v2237_v45 = vpop.eup %2236  ;;  %v1089_v33 = vpop.xlane.xlu1 %1088  ;;  %v1146_v48 = vmul.f32 %v2235_v56, %v2672_v2  ;;  %v1176_v15 = vmax.f32 %v1160_v4, 0.0 }
 0x327   : > { %v1087_v34 = vpop.xlane.xlu0 %1086  ;;  %2246 = vrsqrt.f32 %v1120_v51  ;;  %v1106_v6 = vmul.f32 0.0078125, %v1089_v33  ;;  %v1175_v39 = vmax.f32 %v1159_v0, 0.0  ;;  %v1145_v37 = vmul.f32 %v2237_v45, %v2675_v36 }
 0x328   : > { %v1105_v53 = vmul.f32 0.0078125, %v1087_v34  ;;  %2248 = vrsqrt.f32 %v1119_v47  ;;  %v1162_v17 = vmul.f32 0.999995, %v1146_v48 }
 0x329   : > { %v2239_v22 = vpop.eup %2238  ;;  %v1122_v11 = vadd.f32 1e-05, %v1106_v6  ;;  %v1205_v30 = vpack.c.bf16 %v1175_v39, %v1174_v46  ;;  %v1161_v49 = vmul.f32 0.999995, %v1145_v37 }
 0x32a   : > { %v1121_v19 = vadd.f32 1e-05, %v1105_v53  ;;  %v2241_v24 = vpop.eup %2240  ;;  %v1148_v25 = vmul.f32 %v2239_v22, %v2682_v28  ;;  %v1178_v45 = vmax.f32 %v1162_v17, 0.0 }
 0x32b   : > { %v1091_v1 = vpop.xlane.xlu0 %1090  ;;  %2250 = vrsqrt.f32 %v1122_v11  ;;  %2124 = vmatprep.subr.bf16.mxu0 %v1205_v30  ;;  %v1147_v40 = vmul.f32 %v2241_v24, %v2685_v42  ;;  %v1177_v36 = vmax.f32 %v1161_v49, 0.0 }
 0x32c   : > { %v1107_v2 = vmul.f32 0.0078125, %v1091_v1  ;;  %2252 = vrsqrt.f32 %v1121_v19  ;;  %2125 = vmatpush3.bf16.msra.mxu0 %v1205_v30  ;;  %v1164_v33 = vmul.f32 0.999995, %v1148_v25 }
 0x32d   : > { %v2243_v8 = vpop.eup %2242  ;;  %v1163_v51 = vmul.f32 0.999995, %v1147_v40  ;;  %v1206_v0 = vpack.c.bf16 %v1177_v36, %v1176_v15 }
 0x32e   : > { %v1123_v56 = vadd.f32 1e-05, %v1107_v2  ;;  %v2245_v47 = vpop.eup %2244  ;;  %v1150_v46 = vmul.f32 %v2243_v8, %v2692_v54  ;;  %v1180_v39 = vmax.f32 %v1164_v33, 0.0  ;;  %v2220_v33 = vld [vmem:[%s3010_s6 + $0x20] sm:$0xff]  }
 0x32f   : > { %v1179_v34 = vmax.f32 %v1163_v51, 0.0  ;;  %v1149_v28 = vmul.f32 %v2245_v47, %v2695_v62  ;;  %2126 = vmatprep.subr.bf16.mxu0 %v1206_v0 }
 0x330   : > { %2254 = vrsqrt.f32 %v1123_v56  ;;  %2127 = vmatpush3.bf16.msra.mxu0 %v1206_v0  ;;  %v1166_v22 = vmul.f32 0.999995, %v1150_v46  ;;  %v2223_v46 = vld [vmem:[%s3010_s6 + $0x38] sm:$0xff]  }
 0x331   : > { %v2247_v48 = vpop.eup %2246  ;;  %v1207_v42 = vpack.c.bf16 %v1179_v34, %v1178_v45  ;;  %v1165_v6 = vmul.f32 0.999995, %v1149_v28  ;;  %v2219_v45 = vld [vmem:[%s3010_s6 + $0x18] sm:$0xff]   ;;  %v2221_v34 = vld [vmem:[%s3010_s6 + $0x28] sm:$0xff]   ;;  %v2222_v28 = vld [vmem:[%s3010_s6 + $0x30] sm:$0xff]  }
 0x332   : > { %v2249_v53 = vpop.eup %2248  ;;  %v1152_v11 = vmul.f32 %v2247_v48, %v2702_v20  ;;  %v1182_v1 = vmax.f32 %v1166_v22, 0.0  ;;  %v1231_v48 = vpop.permute.xlu1 %1230 }
 0x333   : > { %2128 = vmatprep.subr.bf16.mxu0 %v1207_v42  ;;  %v1181_v37 = vmax.f32 %v1165_v6, 0.0  ;;  %v1151_v4 = vmul.f32 %v2249_v53, %v2705_v3  ;;  %v1236_v6 = vpop.permute.xlu0 %1235 }
 0x334   : > { %2129 = vmatpush3.bf16.msra.mxu0 %v1207_v42  ;;  %v1168_v25 = vmul.f32 0.999995, %v1152_v11 }
 0x335   : > { %v2251_v19 = vpop.eup %2250  ;;  %v1208_v30 = vpack.c.bf16 %v1181_v37, %v1180_v39  ;;  %v1167_v62 = vmul.f32 0.999995, %v1151_v4 }
 0x336   : > { %v2253_v24 = vpop.eup %2252  ;;  %v1154_v54 = vmul.f32 %v2251_v19, %v2712_v50  ;;  %v1184_v36 = vmax.f32 %v1168_v25, 0.0  ;;  %v1241_v42 = vpop.permute.xlu1 %1240 }
 0x337   : > { %2130 = vmatprep.subr.bf16.mxu0 %v1208_v30  ;;  %v1183_v49 = vmax.f32 %v1167_v62, 0.0  ;;  %v1153_v17 = vmul.f32 %v2253_v24, %v2715_v18  ;;  %v2217_v18 = vld [vmem:[%s3010_s6 + $0x8] sm:$0xff]   ;;  %v1251_v39 = vpop.permute.xlu0 %1250 }
 0x338   : > { %2131 = vmatpush3.bf16.msra.mxu0 %v1208_v30  ;;  %v1170_v20 = vmul.f32 0.999995, %v1154_v54 }
 0x339   : > { %v1209_v40 = vpack.c.bf16 %v1183_v49, %v1182_v1  ;;  %v1169_v3 = vmul.f32 0.999995, %v1153_v17 }
 0x33a   : > { %v2255_v2 = vpop.eup %2254  ;;  %v1186_v50 = vmax.f32 %v1170_v20, 0.0  ;;  %v1246_v53 = vpop.permute.xlu1 %1245 }
 0x33b   : > { %v1155_v15 = vmul.f32 %v2255_v2, %v2722_v35  ;;  %2132 = vmatprep.subr.bf16.mxu0 %v1209_v40  ;;  %v1185_v8 = vmax.f32 %v1169_v3, 0.0  ;;  %v2218_v35 = vld [vmem:[%s3010_s6 + $0x10] sm:$0xff]   ;;  %v1261_v24 = vpop.permute.xlu0 %1260 }
 0x33c   : > { %2133 = vmatpush3.bf16.msra.mxu0 %v1209_v40 }
 0x33d   : > { %v1171_v56 = vmul.f32 0.999995, %v1155_v15  ;;  %v1210_v51 = vpack.c.bf16 %v1185_v8, %v1184_v36 }
 0x33e   : > { %v1256_v19 = vpop.permute.xlu1 %1255 }
 0x33f   : > { %v1187_v47 = vmax.f32 %v1171_v56, 0.0  ;;  %2134 = vmatprep.subr.bf16.mxu0 %v1210_v51  ;;  %v1271_v3 = vpop.permute.xlu0 %1270 }
 0x340   : > { %2135 = vmatpush3.bf16.msra.mxu0 %v1210_v51 }
 0x341   : > { %v1211_v0 = vpack.c.bf16 %v1187_v47, %v1186_v50 }
 0x342   : > { %v1266_v49 = vpop.permute.xlu1 %1265 }
 0x343   : > { %2136 = vmatprep.subr.bf16.mxu0 %v1211_v0  ;;  %v1281_v51 = vpop.permute.xlu0 %1280 }
 0x344   : > { %2137 = vmatpush3.bf16.msra.mxu0 %v1211_v0 }
 0x346   : > { %v1276_v8 = vpop.permute.xlu1 %1275 }
 0x347   : > { %2139 = vmatmul.mubr.bf16.vlgmr.msra.gmra.mrb[16].mxu0 %v2217_v18 }
 0x348   : > { %2142 = vmatprep.mubr.bf16.mxu0 %v2218_v35 }
 0x34f   : > { %2143 = vmatmul.mubr.bf16.gmra.mrb[20].mxu0 %v2219_v45  ;;  %v1286_v45 = vpop.permute.xlu1 %1285 }
 0x350   : > { %2146 = vmatprep.mubr.bf16.mxu0 %v2220_v33 }
 0x357   : > { %2147 = vmatmul.mubr.bf16.gmra.mrb[24].mxu0 %v2221_v34 }
 0x358   : > { %2150 = vmatprep.mubr.bf16.mxu0 %v2222_v28  ;;  %v1291_v28 = vpop.permute.xlu0 %1290 }
 0x35f   : > { %2151 = vmatmul.mubr.bf16.gmra.mrb[28].mxu0 %v2223_v46 }
 0x41a   : > { %v2140_v37 = vpop.f32.mrb[16].mxu0 }
 0x41b   : > { %v1390_v4 = vpop.f32.mrb[17].mxu0  ;;  %v1399_v54 = vadd.f32 %v2140_v37, %v1241_v42 }
 0x41c   : > { %v1391_v22 = vadd.f32 %v1390_v4, %v1231_v48  ;;  %v2141_v11 = vpop.f32.mrb[18].mxu0  ;;  %v1301_v4 = vpop.permute.xlu0 %1300 }
 0x41d   : > { %v1393_v30 = vpop.f32.mrb[19].mxu0  ;;  %v2814_v25 = vadd.f32 %v2141_v11, %v1246_v53 }
 0x41e   : > { %v1394_v62 = vadd.f32 %v1393_v30, %v1236_v6  ;;  %1453 = vadd.xlane.f32.xlu0 %v1391_v22 }
 0x420   : > { %1455 = vadd.xlane.f32.xlu1 %v1394_v62 }
 0x422   : > { %v2144_v1 = vpop.f32.mrb[20].mxu0  ;;  %1457 = vadd.xlane.f32.xlu0 %v1399_v54 }
 0x423   : > { %v1406_v17 = vpop.f32.mrb[21].mxu0  ;;  %v2817_v20 = vadd.f32 %v2144_v1, %v1261_v24 }
 0x424   : > { %v1407_v2 = vadd.f32 %v1406_v17, %v1251_v39  ;;  %v2145_v40 = vpop.f32.mrb[22].mxu0  ;;  %v1296_v39 = vpop.permute.xlu1 %1295 }
 0x425   : > { %v1409_v15 = vpop.f32.mrb[23].mxu0  ;;  %v2823_v47 = vadd.f32 %v2145_v40, %v1266_v49 }
 0x426   : > { %1459 = vadd.xlane.f32.xlu0 %v2814_v25  ;;  %1461 = vadd.xlane.f32.xlu1 %v1407_v2  ;;  %v2819_v36 = vadd.f32 %v1409_v15, %v1256_v19 }
 0x428   : > { %v1306_v30 = vpop.permute.xlu1 %1305 }
 0x42a   : > { %v2148_v56 = vpop.f32.mrb[24].mxu0  ;;  %1463 = vadd.xlane.f32.xlu0 %v2819_v36  ;;  %1465 = vadd.xlane.f32.xlu1 %v2817_v20 }
 0x42b   : > { %v1422_v50 = vpop.f32.mrb[25].mxu0  ;;  %v2829_v33 = vadd.f32 %v2148_v56, %v1281_v51 }
 0x42c   : > { %v2825_v0 = vadd.f32 %v1422_v50, %v1271_v3  ;;  %v2149_v18 = vpop.f32.mrb[26].mxu0 }
 0x42d   : > { %v1425_v35 = vpop.f32.mrb[27].mxu0  ;;  %v2835_v42 = vadd.f32 %v2149_v18, %v1286_v45 }
 0x42e   : > { %1467 = vadd.xlane.f32.xlu0 %v2823_v47  ;;  %1469 = vadd.xlane.f32.xlu1 %v2825_v0  ;;  %v2831_v34 = vadd.f32 %v1425_v35, %v1276_v8 }
 0x432   : > { %v2152_v46 = vpop.f32.mrb[28].mxu0  ;;  %1471 = vadd.xlane.f32.xlu0 %v2831_v34  ;;  %1473 = vadd.xlane.f32.xlu1 %v2829_v33 }
 0x433   : > { %v1438_v48 = vpop.f32.mrb[29].mxu0  ;;  %v2841_v11 = vadd.f32 %v2152_v46, %v1301_v4 }
 0x434   : > { %v2837_v6 = vadd.f32 %v1438_v48, %v1291_v28  ;;  %v2153_v53 = vpop.f32.mrb[30].mxu0 }
 0x435   : > { %v1441_v37 = vpop.f32.mrb[31].mxu0  ;;  %v2847_v24 = vadd.f32 %v2153_v53, %v1306_v30 }
 0x436   : > { %1475 = vadd.xlane.f32.xlu0 %v2835_v42  ;;  %1477 = vadd.xlane.f32.xlu1 %v2837_v6  ;;  %v2843_v19 = vadd.f32 %v1441_v37, %v1296_v39 }
 0x43a   : > { %1479 = vadd.xlane.f32.xlu0 %v2843_v19  ;;  %1481 = vadd.xlane.f32.xlu1 %v2841_v11 }
 0x43e   : > { %1483 = vadd.xlane.f32.xlu0 %v2847_v24 }
 0x4ab   : > { %v1454_v1 = vpop.xlane.xlu0 %1453 }
 0x4ac   : > { %v1485_v49 = vmul.f32 0.0078125, %v1454_v1 }
 0x4ad   : > { %v1456_v17 = vpop.xlane.xlu1 %1455 }
 0x4ae   : > { %v2850_v40 = vsub.f32 %v1391_v22, %v1485_v49  ;;  %v1486_v3 = vmul.f32 0.0078125, %v1456_v17 }
 0x4af   : > { %v1458_v15 = vpop.xlane.xlu0 %1457 }
 0x4b0   : > { %v2852_v8 = vsub.f32 %v1394_v62, %v1486_v3  ;;  %v1487_v56 = vmul.f32 0.0078125, %v1458_v15  ;;  %v1517_v51 = vmul.f32 %v2850_v40, %v2850_v40 }
 0x4b2   : > { %v2856_v50 = vsub.f32 %v1399_v54, %v1487_v56  ;;  %1533 = vadd.xlane.f32.xlu1 %v1517_v51  ;;  %v1518_v18 = vmul.f32 %v2852_v8, %v2852_v8 }
 0x4b3   : > { %v1462_v35 = vpop.xlane.xlu1 %1461  ;;  %v1460_v45 = vpop.xlane.xlu0 %1459 }
 0x4b4   : > { %v1489_v28 = vmul.f32 0.0078125, %v1462_v35  ;;  %v1488_v46 = vmul.f32 0.0078125, %v1460_v45  ;;  %1535 = vadd.xlane.f32.xlu0 %v1518_v18  ;;  %v1519_v22 = vmul.f32 %v2856_v50, %v2856_v50 }
 0x4b6   : > { %v2862_v62 = vsub.f32 %v1407_v2, %v1489_v28  ;;  %v2865_v48 = vsub.f32 %v2814_v25, %v1488_v46  ;;  %1537 = vadd.xlane.f32.xlu1 %v1519_v22 }
 0x4b7   : > { %v1466_v54 = vpop.xlane.xlu1 %1465  ;;  %v1464_v53 = vpop.xlane.xlu0 %1463 }
 0x4b8   : > { %v1491_v39 = vmul.f32 0.0078125, %v1466_v54  ;;  %v1490_v37 = vmul.f32 0.0078125, %v1464_v53  ;;  %v1521_v4 = vmul.f32 %v2862_v62, %v2862_v62  ;;  %v1520_v30 = vmul.f32 %v2865_v48, %v2865_v48 }
 0x4ba   : > { %v2872_v1 = vsub.f32 %v2817_v20, %v1491_v39  ;;  %v2875_v2 = vsub.f32 %v2819_v36, %v1490_v37  ;;  %1541 = vadd.xlane.f32.xlu1 %v1521_v4  ;;  %1539 = vadd.xlane.f32.xlu0 %v1520_v30 }
 0x4bb   : > { %v1470_v25 = vpop.xlane.xlu1 %1469  ;;  %v1468_v49 = vpop.xlane.xlu0 %1467 }
 0x4bc   : > { %v1493_v17 = vmul.f32 0.0078125, %v1470_v25  ;;  %v1492_v3 = vmul.f32 0.0078125, %v1468_v49  ;;  %v1523_v15 = vmul.f32 %v2872_v1, %v2872_v1  ;;  %v1522_v56 = vmul.f32 %v2875_v2, %v2875_v2 }
 0x4be   : > { %v2882_v51 = vsub.f32 %v2825_v0, %v1493_v17  ;;  %v2885_v20 = vsub.f32 %v2823_v47, %v1492_v3  ;;  %1545 = vadd.xlane.f32.xlu1 %v1523_v15  ;;  %1543 = vadd.xlane.f32.xlu0 %v1522_v56 }
 0x4bf   : > { %v1474_v36 = vpop.xlane.xlu1 %1473  ;;  %v1472_v18 = vpop.xlane.xlu0 %1471 }
 0x4c0   : > { %v1495_v35 = vmul.f32 0.0078125, %v1474_v36  ;;  %v1494_v45 = vmul.f32 0.0078125, %v1472_v18  ;;  %v1525_v28 = vmul.f32 %v2882_v51, %v2882_v51  ;;  %v1524_v46 = vmul.f32 %v2885_v20, %v2885_v20 }
 0x4c2   : > { %v2892_v22 = vsub.f32 %v2829_v33, %v1495_v35  ;;  %v2895_v0 = vsub.f32 %v2831_v34, %v1494_v45  ;;  %1549 = vadd.xlane.f32.xlu1 %v1525_v28  ;;  %1547 = vadd.xlane.f32.xlu0 %v1524_v46  ;;  %v1686_v28 = vld [vmem:[%s3013_s9] sm:$0x3] }
 0x4c3   : > { %v1478_v47 = vpop.xlane.xlu1 %1477  ;;  %v1476_v54 = vpop.xlane.xlu0 %1475 }
 0x4c4   : > { %v1497_v53 = vmul.f32 0.0078125, %v1478_v47  ;;  %v1496_v39 = vmul.f32 0.0078125, %v1476_v54  ;;  %v1527_v37 = vmul.f32 %v2892_v22, %v2892_v22  ;;  %v1526_v4 = vmul.f32 %v2895_v0, %v2895_v0 }
 0x4c6   : > { %v2902_v30 = vsub.f32 %v2837_v6, %v1497_v53  ;;  %v2905_v33 = vsub.f32 %v2835_v42, %v1496_v39  ;;  %1553 = vadd.xlane.f32.xlu1 %v1527_v37  ;;  %1551 = vadd.xlane.f32.xlu0 %v1526_v4 }
 0x4c7   : > { %v1482_v34 = vpop.xlane.xlu1 %1481  ;;  %v1480_v25 = vpop.xlane.xlu0 %1479 }
 0x4c8   : > { %v1499_v49 = vmul.f32 0.0078125, %v1482_v34  ;;  %v1498_v17 = vmul.f32 0.0078125, %v1480_v25  ;;  %v1529_v3 = vmul.f32 %v2902_v30, %v2902_v30  ;;  %v1528_v15 = vmul.f32 %v2905_v33, %v2905_v33 }
 0x4ca   : > { %v2912_v56 = vsub.f32 %v2841_v11, %v1499_v49  ;;  %v2915_v6 = vsub.f32 %v2843_v19, %v1498_v17  ;;  %1557 = vadd.xlane.f32.xlu1 %v1529_v3  ;;  %1555 = vadd.xlane.f32.xlu0 %v1528_v15  ;;  %v2305_v19 = vmov 0.0  }
 0x4cb   : > { %v1484_v42 = vpop.xlane.xlu0 %1483  ;;  %2154 = vmatprep.subr.bf16.mxu1 %v2305_v19  ;;  %2170 = vmatprep.mubr.msk.bf16.mxu1 %vm2306_vm1, %v2305_v19 }
 0x4cc   : > { %v1500_v36 = vmul.f32 0.0078125, %v1484_v42  ;;  %v1531_v18 = vmul.f32 %v2912_v56, %v2912_v56  ;;  %v1530_v35 = vmul.f32 %v2915_v6, %v2915_v6 }
 0x4ce   : > { %v2922_v45 = vsub.f32 %v2847_v24, %v1500_v36  ;;  %1561 = vadd.xlane.f32.xlu1 %v1531_v18  ;;  %1559 = vadd.xlane.f32.xlu0 %v1530_v35 }
 0x4d0   : > { %v1532_v11 = vmul.f32 %v2922_v45, %v2922_v45 }
 0x4d2   : > { %1563 = vadd.xlane.f32.xlu0 %v1532_v11 }
 0x4df   : > { %1689 = vperm.xlu1 %2198, %v1686_v28  }
 0x53f   : > { %v1534_v46 = vpop.xlane.xlu1 %1533 }
 0x540   : > { %v1565_v24 = vmul.f32 0.0078125, %v1534_v46 }
 0x541   : > { %v1536_v47 = vpop.xlane.xlu0 %1535 }
 0x542   : > { %v1581_v54 = vadd.f32 1e-05, %v1565_v24  ;;  %v1566_v53 = vmul.f32 0.0078125, %v1536_v47 }
 0x543   : > { %v1538_v39 = vpop.xlane.xlu1 %1537 }
 0x544   : > { %2256 = vrsqrt.f32 %v1581_v54  ;;  %v1582_v37 = vadd.f32 1e-05, %v1566_v53  ;;  %v1567_v4 = vmul.f32 0.0078125, %v1538_v39 }
 0x546   : > { %2258 = vrsqrt.f32 %v1582_v37  ;;  %v1583_v34 = vadd.f32 1e-05, %v1567_v4 }
 0x547   : > { %v1542_v25 = vpop.xlane.xlu1 %1541  ;;  %v1540_v49 = vpop.xlane.xlu0 %1539 }
 0x548   : > { %2260 = vrsqrt.f32 %v1583_v34  ;;  %v1569_v17 = vmul.f32 0.0078125, %v1542_v25  ;;  %v1568_v3 = vmul.f32 0.0078125, %v1540_v49 }
 0x54a   : > { %v1585_v15 = vadd.f32 1e-05, %v1569_v17  ;;  %v1584_v42 = vadd.f32 1e-05, %v1568_v3 }
 0x54b   : > { %v1546_v36 = vpop.xlane.xlu1 %1545  ;;  %v1544_v18 = vpop.xlane.xlu0 %1543 }
 0x54c   : > { %2262 = vrsqrt.f32 %v1585_v15  ;;  %v1571_v35 = vmul.f32 0.0078125, %v1546_v36  ;;  %v1570_v11 = vmul.f32 0.0078125, %v1544_v18 }
 0x54d   : > { %2264 = vrsqrt.f32 %v1584_v42 }
 0x54e   : > { %v2257_v28 = vpop.eup %2256  ;;  %v1587_v46 = vadd.f32 1e-05, %v1571_v35  ;;  %v1586_v24 = vadd.f32 1e-05, %v1570_v11 }
 0x54f   : > { %v1550_v47 = vpop.xlane.xlu1 %1549  ;;  %v1548_v54 = vpop.xlane.xlu0 %1547  ;;  %v1613_v53 = vmul.f32 %v2257_v28, %v2850_v40 }
 0x550   : > { %v2259_v39 = vpop.eup %2258  ;;  %2266 = vrsqrt.f32 %v1587_v46  ;;  %v1573_v37 = vmul.f32 0.0078125, %v1550_v47  ;;  %v1572_v4 = vmul.f32 0.0078125, %v1548_v54 }
 0x551   : > { %2268 = vrsqrt.f32 %v1586_v24  ;;  %v1614_v34 = vmul.f32 %v2259_v39, %v2852_v8  ;;  %v1629_v25 = vmul.f32 0.999995, %v1613_v53 }
 0x552   : > { %v2261_v49 = vpop.eup %2260  ;;  %v1589_v17 = vadd.f32 1e-05, %v1573_v37  ;;  %v1588_v3 = vadd.f32 1e-05, %v1572_v4 }
 0x553   : > { %v1554_v15 = vpop.xlane.xlu1 %1553  ;;  %v1552_v42 = vpop.xlane.xlu0 %1551  ;;  %v1630_v36 = vmul.f32 0.999995, %v1614_v34  ;;  %v1645_v18 = vadd.f32 %v1629_v25, %v698_v59  ;;  %v1615_v35 = vmul.f32 %v2261_v49, %v2856_v50 }
 0x554   : > { %2270 = vrsqrt.f32 %v1589_v17  ;;  %v1575_v40 = vmul.f32 0.0078125, %v1554_v15  ;;  %v1574_v11 = vmul.f32 0.0078125, %v1552_v42 }
 0x555   : > { %2272 = vrsqrt.f32 %v1588_v3  ;;  %v1646_v28 = vadd.f32 %v1630_v36, %v699_v61  ;;  %v1631_v47 = vmul.f32 0.999995, %v1615_v35  ;;  %v1661_v37 = vmax.f32 %v1645_v18, 0.0 }
 0x556   : > { %v2263_v8 = vpop.eup %2262  ;;  %v1591_v46 = vadd.f32 1e-05, %v1575_v40  ;;  %v1590_v24 = vadd.f32 1e-05, %v1574_v11 }
 0x557   : > { %v2265_v54 = vpop.eup %2264  ;;  %v1558_v53 = vpop.xlane.xlu1 %1557  ;;  %v1662_v4 = vmax.f32 %v1646_v28, 0.0  ;;  %v1617_v52 = vmul.f32 %v2263_v8, %v2862_v62  ;;  %v1647_v3 = vadd.f32 %v1631_v47, %v700_v63 }
 0x558   : > { %v1556_v39 = vpop.xlane.xlu0 %1555  ;;  %2274 = vrsqrt.f32 %v1591_v46  ;;  %v1577_v59 = vmul.f32 0.0078125, %v1558_v53  ;;  %v1616_v34 = vmul.f32 %v2265_v54, %v2865_v48 }
 0x559   : > { %v1576_v50 = vmul.f32 0.0078125, %v1556_v39  ;;  %2276 = vrsqrt.f32 %v1590_v24  ;;  %v1678_v25 = vpack.c.bf16 %v1662_v4, %v1661_v37  ;;  %v1633_v18 = vmul.f32 0.999995, %v1617_v52 }
 0x55a   : > { %v2267_v58 = vpop.eup %2266  ;;  %v1593_v61 = vadd.f32 1e-05, %v1577_v59  ;;  %v1632_v17 = vmul.f32 0.999995, %v1616_v34  ;;  %v1663_v46 = vmax.f32 %v1647_v3, 0.0 }
 0x55b   : > { %v1592_v49 = vadd.f32 1e-05, %v1576_v50  ;;  %v2269_v15 = vpop.eup %2268  ;;  %v1562_v42 = vpop.xlane.xlu1 %1561  ;;  %2155 = vmatpush3.bf16.msra.mxu1 %v1678_v25  ;;  %v1619_v62 = vmul.f32 %v2267_v58, %v2872_v1  ;;  %v1649_v53 = vadd.f32 %v1633_v18, %v702_v12 }
 0x55c   : > { %v1560_v36 = vpop.xlane.xlu0 %1559  ;;  %2278 = vrsqrt.f32 %v1593_v61  ;;  %v1579_v35 = vmul.f32 0.0078125, %v1562_v42  ;;  %2156 = vmatprep.subr.bf16.mxu1 %v2305_v19  ;;  %v1648_v48 = vadd.f32 %v1632_v17, %v701_v60  ;;  %v1618_v11 = vmul.f32 %v2269_v15, %v2875_v2 }
 0x55d   : > { %v1578_v40 = vmul.f32 0.0078125, %v1560_v36  ;;  %2280 = vrsqrt.f32 %v1592_v49  ;;  %v1635_v57 = vmul.f32 0.999995, %v1619_v62 }
 0x55e   : > { %v2271_v63 = vpop.eup %2270  ;;  %v1595_v28 = vadd.f32 1e-05, %v1579_v35  ;;  %v1664_v24 = vmax.f32 %v1648_v48, 0.0  ;;  %v1634_v1 = vmul.f32 0.999995, %v1618_v11 }
 0x55f   : > { %v1594_v8 = vadd.f32 1e-05, %v1578_v40  ;;  %v2273_v47 = vpop.eup %2272  ;;  %v1621_v39 = vmul.f32 %v2271_v63, %v2882_v51  ;;  %v1651_v5 = vadd.f32 %v1635_v57, %v704_v16  ;;  %v1665_v51 = vmax.f32 %v1649_v53, 0.0 }
 0x560   : > { %v1564_v54 = vpop.xlane.xlu0 %1563  ;;  %2282 = vrsqrt.f32 %v1595_v28  ;;  %v1679_v60 = vpack.c.bf16 %v1664_v24, %v1663_v46  ;;  %v1620_v37 = vmul.f32 %v2273_v47, %v2885_v20  ;;  %v1650_v2 = vadd.f32 %v1634_v1, %v703_v14 }
 0x561   : > { %v1580_v55 = vmul.f32 0.0078125, %v1564_v54  ;;  %2284 = vrsqrt.f32 %v1594_v8  ;;  %v1637_v4 = vmul.f32 0.999995, %v1621_v39  ;;  %v1667_v9 = vmax.f32 %v1651_v5, 0.0 }
 0x562   : > { %v2275_v52 = vpop.eup %2274  ;;  %2157 = vmatpush3.bf16.msra.mxu1 %v1679_v60  ;;  %v1636_v50 = vmul.f32 0.999995, %v1620_v37  ;;  %v1666_v34 = vmax.f32 %v1650_v2, 0.0  ;;  %v3023_v8 = vmax.f32 %v2579_v44, 0.0  ;;  %v1754_v44 = vrot.slane %v1733_v41, 6 }
 0x563   : > { %v1596_v59 = vadd.f32 1e-05, %v1580_v55  ;;  %v2277_v12 = vpop.eup %2276  ;;  %2158 = vmatprep.subr.bf16.mxu1 %v2305_v19  ;;  %v1623_v25 = vmul.f32 %v2275_v52, %v2892_v22  ;;  %v1653_v58 = vadd.f32 %v1637_v4, %v706_v29  ;;  %v1757_v60 = vrot.slane %v1733_v41, 7 }
 0x564   : > { %v1652_v10 = vadd.f32 %v1636_v50, %v705_v13  ;;  %v1622_v14 = vmul.f32 %v2277_v12, %v2895_v0  ;;  %v1680_v20 = vpack.c.bf16 %v1666_v34, %v1665_v51  ;;  %v1760_v37 = vrot.slane %v1733_v41, 5 }
 0x565   : > { %2286 = vrsqrt.f32 %v1596_v59  ;;  %v1639_v17 = vmul.f32 0.999995, %v1623_v25  ;;  %v1669_v0 = vmax.f32 %v1653_v58, 0.0  ;;  %v1756_v2 = vmul.f32 %v1754_v44, %v1733_v41 }
 0x566   : > { %v2279_v61 = vpop.eup %2278  ;;  %v1668_v16 = vmax.f32 %v1652_v10, 0.0  ;;  %v1638_v49 = vmul.f32 0.999995, %v1622_v14  ;;  %2159 = vmatpush3.bf16.msra.mxu1 %v1680_v20  ;;  %v1759_v4 = vmul.f32 %v1757_v60, %v1733_v41  ;;  %v1762_v52 = vmul.f32 %v1760_v37, %v1733_v41 }
 0x567   : > { %v2281_v3 = vpop.eup %2280  ;;  %v1625_v15 = vmul.f32 %v2279_v61, %v2902_v30  ;;  %2160 = vmatprep.subr.bf16.mxu1 %v2305_v19  ;;  %v1655_v36 = vadd.f32 %v1639_v17, %v708_v32  ;;  %v1769_v50 = vrot.slane %v1756_v2, 7  ;;  %v1771_v12 = vrot.slane %v1733_v41, 2 }
 0x568   : > { %v1681_v22 = vpack.c.bf16 %v1668_v16, %v1667_v9  ;;  %v1654_v7 = vadd.f32 %v1638_v49, %v707_v31  ;;  %v1624_v13 = vmul.f32 %v2281_v3, %v2905_v33  ;;  %v1767_v59 = vrot.slane %v1759_v4, 1  ;;  %v1690_v9 = vpop.permute.xlu1 %1689 }
 0x569   : > { %v1641_v18 = vmul.f32 0.999995, %v1625_v15  ;;  %v1671_v11 = vmax.f32 %v1655_v36, 0.0  ;;  %v2307_v58 = vmov 1.0  }
 0x56a   : > { %v2283_v21 = vpop.eup %2282  ;;  %v1670_v29 = vmax.f32 %v1654_v7, 0.0  ;;  %v1640_v42 = vmul.f32 0.999995, %v1624_v13  ;;  %2161 = vmatpush3.bf16.msra.mxu1 %v1681_v22 }
 0x56b   : > { %v2285_v62 = vpop.eup %2284  ;;  %v1627_v30 = vmul.f32 %v2283_v21, %v2912_v56  ;;  %2162 = vmatprep.subr.bf16.mxu1 %v2305_v19  ;;  %v1657_v32 = vadd.f32 %v1641_v18, %v3022_v26 }
 0x56c   : > { %v1682_v35 = vpack.c.bf16 %v1670_v29, %v1669_v0  ;;  %v1656_v31 = vadd.f32 %v1640_v42, %v3021_v27  ;;  %v1626_v33 = vmul.f32 %v2285_v62, %v2915_v6  ;;  %v3024_v6 = vmax.f32 %v2577_v43, 0.0  ;;  %v1677_v43 = vld [vmem:[%s3012_s8] sm:$0x1] }
 0x56d   : > { %v1643_v40 = vmul.f32 0.999995, %v1627_v30  ;;  %v1673_v47 = vmax.f32 %v1657_v32, 0.0 }
 0x56e   : > { %v1672_v57 = vmax.f32 %v1656_v31, 0.0  ;;  %v1642_v63 = vmul.f32 0.999995, %v1626_v33  ;;  %2163 = vmatpush3.bf16.msra.mxu1 %v1682_v35  ;;  %v1787_v35 = vlaneseq }
 0x56f   : > { %v2287_v48 = vpop.eup %2286  ;;  %2164 = vmatprep.subr.bf16.mxu1 %v2305_v19  ;;  %v1659_v24 = vadd.f32 %v1643_v40, %v3024_v6 }
 0x570   : > { %v1628_v28 = vmul.f32 %v2287_v48, %v2922_v45  ;;  %v1683_v56 = vpack.c.bf16 %v1672_v57, %v1671_v11  ;;  %v1658_v23 = vadd.f32 %v1642_v63, %v3023_v8  ;;  %v1788_v27 = vshrl.u32 %v1787_v35, 7 }
 0x571   : > { %v1675_v53 = vmax.f32 %v1659_v24, 0.0 }
 0x572   : > { %v1644_v46 = vmul.f32 0.999995, %v1628_v28  ;;  %v1674_v54 = vmax.f32 %v1658_v23, 0.0  ;;  %2165 = vmatpush3.bf16.msra.mxu1 %v1683_v56  ;;  %v1789_v31 = vsub.s32 1, %v1788_v27 }
 0x573   : > { %2166 = vmatprep.subr.bf16.mxu1 %v2305_v19 }
 0x574   : > { %v1660_v1 = vadd.f32 %v1644_v46, %v3025_v38  ;;  %v1684_v45 = vpack.c.bf16 %v1674_v54, %v1673_v47 }
 0x576   : > { %v1676_v39 = vmax.f32 %v1660_v1, 0.0  ;;  %2167 = vmatpush3.bf16.msra.mxu1 %v1684_v45 }
 0x577   : > { %2168 = vmatprep.subr.bf16.mxu1 %v2305_v19  ;;  %v1764_v19 = vrot.slane %v1756_v2, 2 }
 0x578   : > { %v1685_v55 = vpack.c.bf16 %v1676_v39, %v1675_v53 }
 0x579   : > { %v1774_v5 = vsel %vm1773_vm2, %v1764_v19, %v1767_v59 }
 0x57a   : > { %2169 = vmatpush3.bf16.msra.mxu1 %v1685_v55  ;;  %v1776_v51 = vsel %vm1775_vm3, %v1774_v5, %v1733_v41 }
 0x57b   : > { %v1778_v34 = vsel %vm1777_vm4, %v1776_v51, %v1762_v52 }
 0x57c   : > { %v1780_v25 = vsel %vm1779_vm5, %v1778_v34, %v1769_v50 }
 0x57d   : > { %2171 = vmatmul.mubr.bf16.vlgmr.msra.gmra.mrb[16].mxu1 %v1677_v43  ;;  %v1782_v10 = vsel %vm1781_vm6, %v1780_v25, %v1754_v44 }
 0x57e   : > { %v1784_v14 = vsel %vm1783_vm7, %v1782_v10, %v1771_v12 }
 0x57f   : > { %v1786_v20 = vsel %vm1785_vm8, %v1784_v14, %v1771_v12 }
 0x580   : > { %v2181_v61 = vpack.c.bf16 %v2307_v58, %v1786_v20 }
 0x582   : > { %2182 = vmatprep.subr.bf16.mxu0 %v2181_v61 }
 0x583   : > { %2184 = vmatpush3.bf16.xpose.msra.mxu0 %v2181_v61 }
 0x650   : > { %v1726_v16 = vpop.f32.mrb[16].mxu1 }
 0x651   : > { %v1727_v49 = vadd.f32 %v1726_v16, %v1690_v9  ;;  %v2172_v17 = vpop.f32.mrb[17].mxu1 }
 0x652   : > { %v1729_v3 = vpop.f32.mrb[18].mxu1 }
 0x653   : > { %1732 = vst [vmem:[%s409_s25] sm:$0x3] %v1727_v49  ;;  %v2013_v15 = vmul.f32 -1.442695, %v1727_v49  ;;  %v2173_v22 = vpop.f32.mrb[19].mxu1  ;;  %v1740_v0 = vmul.f32 1.442695, %v1727_v49 }
 0x655   : > { %2288 = vpow2.f32 %v2013_v15 }
 0x65f   : > { %v2289_v7 = vpop.eup %2288 }
 0x660   : > { %v1737_v13 = vadd.f32 1.0, %v2289_v7 }
 0x662   : > { %2290 = vrcp.f32 %v1737_v13 }
 0x663   : > { %2292 = vpow2.f32 %v1740_v0 }
 0x66c   : > { %v2291_v21 = vpop.eup %2290 }
 0x66d   : > { %v1743_v29 = vrot.slane %v2291_v21, 7  ;;  %v2293_v42 = vpop.eup %2292 }
 0x66f   : > { %v1745_v36 = vmul.f32 %v2293_v42, %v1743_v29 }
 0x671   : > { %v1747_v18 = vsel %vm1746_vm9, %v1745_v36, 0.0 }
 0x672   : > { %1748 = vadd.xlane.f32.xlu0 %v1747_v18 }
 0x6ff   : > { %v1749_v62 = vpop.xlane.xlu0 %1748 }
 0x700   : > { %v1750_v30 = vadd.f32 1e-05, %v1749_v62 }
 0x702   : > { %2294 = vrcp.f32 %v1750_v30 }
 0x70c   : > { %v2295_v33 = vpop.eup %2294 }
 0x70d   : > { %v1752_v40 = vmul.f32 %v2295_v33, %v1745_v36 }
 0x70f   : > { %v1790_v48 = vrot.slane %v1752_v40, %v1789_v31 }
 0x711   : > { %v1791_v11 = vmul.f32 %v1790_v48, %v1786_v20 }
 0x713   : > { %2178 = vmatprep.mubr.f32.mxu0 %v1791_v11 }
 0x714   : > { %2179 = vmatmul.mubr.f32.vlgmr.msra.gmra.mrb[32].mxu0 %v1790_v48 }
 0x7e7   : > { %v2180_v57 = vpop.f32.mrb[32].mxu0 }
 0x7e8   : > { %1870 = vst.msk [vmem:[%s414_s29 + $0x8] sm:$0x1] %vm1869_vm10, %v2180_v57  ;;  %v1858_v63 = vpop.f32.mrb[33].mxu0 }
 0x7e9   : > { %1868 = vst.msk [vmem:[%s414_s29] sm:$0xff] %vm1867_vm11, %v1858_v63 }
 0x7ea PF: > { %s22_s17 = sadd.s32 1, %s2302_s17  }
 0x7eb   : > { %p19_p4 = scmp.ge.s32.totalorder %s22_s17, 4  }
 0x7ed   :  { %21 = sbr.rel (!%p19_p4) target bundleno = 1 (0x1), region = 105 }

// kernel: ptcnet_forward.7
= control target key start
LH: loop header
LB: loop body
LE: loop exit
PB: predicated region body
PF: predicated region fallthrough
CT: control target
= control target key end

     0   :  { %s522_s12 = smov 0   ;;  %s567_s0 = inlined_call_operand.vmem [shape: f32[2,2,512], index: 0, kind: input, shape index: {}]   ;;  %s568_s1 = inlined_call_operand.vmem [shape: f32[2,2,512], index: 1, kind: input, shape index: {}]   ;;  %s569_s2 = inlined_call_operand.vmem [shape: f32[2,1,9], index: 2, kind: input, shape index: {}]   ;;  %s570_s3 = inlined_call_operand.vmem [shape: f32[2,1,512], index: 3, kind: output, shape index: {}]  }
   0x1 LB: > { %s433_s13 = sadd.s32 4294967295, %s490_s12   ;;  %p437_p0 = scmp.ge.s32.totalorder %s490_s12, 1  ;;  %s490_s12 = sphi %s522_s12, %s13_s12  }
   0x2   : > { %p155_p1 = scmp.lt.s32.totalorder %s490_s12, 3 }
   0x4   : > { %p156_p2 = pnand %p437_p0, %p155_p1 }
   0x5   : > { %p186_p3 = scmp.lt.s32.totalorder (!%p156_p2), %s433_s13, 1  ;;  %v492_v0 = vmov (!%p156_p2), 4   ;;  %v493_v1 = vmov (!%p156_p2), 1   ;;  %v494_v3 = vmov (!%p156_p2), 0   ;;  %v495_v4 = vmov (!%p156_p2), 3  }
   0x6   : > { %159 = sbr.rel (%p156_p2) target bundleno = 192 (0xc0), region = 32  ;;  %473 = vset.pattern.permute.xlu1 (!%p156_p2), %v492_v0  ;;  %471 = vset.pattern.permute.xlu0 (!%p156_p2), %v493_v1  ;;  %v496_v5 = vmov (!%p156_p2), 2   ;;  %v497_v6 = vmov (!%p156_p2), 5   ;;  %v498_v7 = vmov (!%p156_p2), 6   ;;  %v499_v8 = vmov (!%p156_p2), 8  }
   0x7   : > { %v500_v9 = vmov (!%p156_p2), 7   ;;  %v211_v10 = vlaneseq (!%p156_p2) }
   0x9   : > { %v537_v11 = vshrl.u32 (!%p156_p2), %v211_v10, 7  ;;  %vm356_vm0 = vcmp.lt.s32.totalorder (!%p156_p2), %v211_v10, 512 }
   0xb   : > { %v541_v12 = vsub.s32 (!%p156_p2), 0, %v537_v11 }
   0xd   : > { %s572_s13 = smov (!%p186_p3, %s433_s13), 1 }
   0xe   : > { %s198_s16 = scalar_lea.vmem %s569_s2, %s572_s13  ;;  %s451_s17 = sshll.u32 %s572_s13, 3 }
   0xf   : > { %v205_v2 = vld [vmem:[%s198_s16] sm:$0x1]  ;;  %s190_s20 = scalar_lea.vmem %s567_s0, %s451_s17  ;;  %s195_s23 = scalar_lea.vmem %s568_s1, %s451_s17 }
  0x10   : > { %249 = vperm.xlu1 %473, %v205_v2   ;;  %217 = vperm.xlu0 %471, %v205_v2   ;;  %v203_v15 = vld [vmem:[%s190_s20] sm:$0xff]  ;;  %s442_s24 = sshll.u32 %s572_s13, 2 }
  0x11   : > { %v204_v28 = vld [vmem:[%s195_s23] sm:$0xff]  ;;  %s202_s27 = scalar_lea.vmem %s570_s3, %s442_s24 }
  0x14   : > { %474 = vset.pattern.permute.xlu1 %v494_v3  ;;  %472 = vset.pattern.permute.xlu0 %v495_v4 }
  0x15   : > { %208 = vperm.xlu1 %474, %v205_v2   ;;  %240 = vperm.xlu0 %472, %v205_v2  }
  0x19   : > { %475 = vset.pattern.permute.xlu1 %v496_v5  ;;  %476 = vset.pattern.permute.xlu0 %v497_v6  ;;  %v501_v5 = vmov 1966171168  }
  0x1a   : > { %231 = vperm.xlu1 %475, %v205_v2   ;;  %263 = vperm.xlu0 %476, %v205_v2   ;;  %v347_v6 = vunpack.c.l.s4 %v501_v5 }
  0x1e   : > { %477 = vset.pattern.permute.xlu1 %v498_v7  ;;  %479 = vset.pattern.permute.xlu0 %v499_v8 }
  0x1f   : > { %272 = vperm.xlu1 %477, %v205_v2   ;;  %295 = vperm.xlu0 %479, %v205_v2  }
  0x23   : > { %478 = vset.pattern.permute.xlu1 %v500_v9  ;;  %v348_v9 = vunpack.c.0.s8 %v347_v6 }
  0x24   : > { %281 = vperm.xlu1 %478, %v205_v2  }
  0x8f   : > { %v250_v13 = vpop.permute.xlu1 %249  ;;  %v218_v14 = vpop.permute.xlu0 %217 }
  0x90   : > { %v255_v16 = vrot.slane %v250_v13, %v541_v12  ;;  %v223_v17 = vrot.slane %v218_v14, %v541_v12 }
  0x92   : > { %v224_v18 = vmul.f32 %v223_v17, %v203_v15  ;;  %v256_v19 = vmul.f32 %v255_v16, %v203_v15  ;;  %v312_v36 = vmul.f32 %v255_v16, %v204_v28  ;;  %v311_v42 = vmul.f32 %v223_v17, %v204_v28 }
  0x94   : > { %v209_v20 = vpop.permute.xlu1 %208  ;;  %v241_v21 = vpop.permute.xlu0 %240  ;;  %v443_v22 = vrot.slane %v224_v18, 9  ;;  %v444_v25 = vrot.slane %v256_v19, 9  ;;  %v447_v41 = vrot.slane %v312_v36, 9 }
  0x95   : > { %v214_v23 = vrot.slane %v209_v20, %v541_v12  ;;  %v246_v24 = vrot.slane %v241_v21, %v541_v12 }
  0x96   : > { %v317_v51 = vadd.f32 %v447_v41, %v311_v42 }
  0x97   : > { %v215_v26 = vmul.f32 %v214_v23, %v203_v15  ;;  %v247_v27 = vmul.f32 %v246_v24, %v203_v15  ;;  %v304_v33 = vmul.f32 %v246_v24, %v204_v28  ;;  %v303_v43 = vmul.f32 %v214_v23, %v204_v28 }
  0x99   : > { %v232_v29 = vpop.permute.xlu1 %231  ;;  %v229_v30 = vadd.f32 %v443_v22, %v215_v26  ;;  %v264_v31 = vpop.permute.xlu0 %263  ;;  %v261_v32 = vadd.f32 %v444_v25, %v247_v27  ;;  %v446_v39 = vrot.slane %v304_v33, 9 }
  0x9a   : > { %v237_v34 = vrot.slane %v232_v29, %v541_v12  ;;  %v269_v35 = vrot.slane %v264_v31, %v541_v12 }
  0x9b   : > { %v309_v47 = vadd.f32 %v446_v39, %v303_v43 }
  0x9c   : > { %v238_v37 = vadd.f32 %v237_v34, %v229_v30  ;;  %v270_v38 = vadd.f32 %v269_v35, %v261_v32 }
  0x9e   : > { %v273_v40 = vpop.permute.xlu1 %272  ;;  %v331_v45 = vmul.f32 %v238_v37, %v238_v37  ;;  %v332_v46 = vmul.f32 %v270_v38, %v270_v38  ;;  %v321_v55 = vrot.slane %v270_v38, 7  ;;  %v296_v61 = vpop.permute.xlu0 %295  ;;  %v319_v4 = vmul.f32 %v238_v37, %v204_v28 }
  0x9f   : > { %v278_v44 = vrot.slane %v273_v40, %v541_v12  ;;  %v301_v2 = vrot.slane %v296_v61, %v541_v12 }
  0xa0   : > { %v333_v52 = vadd.f32 %v332_v46, %v331_v45  ;;  %v323_v62 = vmul.f32 %v321_v55, %v204_v28 }
  0xa1   : > { %v310_v49 = vadd.f32 %v309_v47, %v278_v44  ;;  %v279_v63 = vmul.f32 %v278_v44, %v203_v15 }
  0xa2   : > { %v334_v58 = vadd.f32 1e-15, %v333_v52  ;;  %v448_v3 = vrot.slane %v323_v62, 9 }
  0xa3   : > { %v282_v48 = vpop.permute.xlu1 %281  ;;  %v337_v56 = vmul.f32 %v310_v49, %v310_v49 }
  0xa4   : > { %v287_v50 = vrot.slane %v282_v48, %v541_v12  ;;  %480 = vrcp.f32 %v334_v58  ;;  %v328_v8 = vadd.f32 %v448_v3, %v319_v4 }
  0xa6   : > { %v288_v53 = vmul.f32 %v287_v50, %v203_v15  ;;  %v318_v54 = vadd.f32 %v317_v51, %v287_v50  ;;  %v351_v15 = vsub.s32 %v348_v9, %v537_v11 }
  0xa8   : > { %v338_v57 = vmul.f32 %v318_v54, %v318_v54  ;;  %v445_v59 = vrot.slane %v288_v53, 9 }
  0xaa   : > { %v339_v60 = vadd.f32 %v338_v57, %v337_v56  ;;  %v293_v1 = vadd.f32 %v445_v59, %v279_v63 }
  0xac   : > { %v340_v0 = vadd.f32 1e-15, %v339_v60  ;;  %v302_v7 = vadd.f32 %v301_v2, %v293_v1 }
  0xae   : > { %482 = vrcp.f32 %v340_v0  ;;  %v329_v13 = vadd.f32 %v328_v8, %v302_v7  ;;  %v481_v14 = vpop.eup %480 }
  0xb0   : > { %v330_v17 = vmul.f32 %v329_v13, %v329_v13 }
  0xb8   : > { %v483_v16 = vpop.eup %482 }
  0xb9   : > { %v343_v18 = vadd.f32 %v483_v16, %v481_v14 }
  0xbb   : > { %v344_v19 = vmul.f32 %v343_v18, %v330_v17 }
  0xbd   : > { %v352_v12 = vrot.slane %v344_v19, %v351_v15 }
  0xbf   : > { %358 = vst.msk [vmem:[%s202_s27] sm:$0xf] %vm356_vm0, %v352_v12 }
  0xc0 PF: > { %s13_s12 = sadd.s32 1, %s490_s12  }
  0xc1   : > { %p10_p4 = scmp.ge.s32.totalorder %s13_s12, 4  }
  0xc3   :  { %12 = sbr.rel (!%p10_p4) target bundleno = 1 (0x1), region = 68 }

</bundles_post_ra>
